<compile_context>
chip_gen: v7x
topology: tpu7x:2x2x1
jax: 0.10.0
libtpu: 0.0.40
codegen_flags: <defaults>
</compile_context>

<pallas_src>
import jax
import jax.numpy as jnp
from jax.experimental import pallas as pl
from jax.experimental.pallas import tpu as pltpu

# ---------------- problem configuration (small, consistent with the module) ----
NUM_NODES = 32          # num_nodes
HIDDEN = 40             # hidden_channels (must be divisible by num_blocks=5)
NUM_RELATIONS = 35      # encodeEdgeTypes() produces 35 relation types
NUM_BLOCKS = 5          # RGCNConv(..., num_blocks=5)
HB = HIDDEN // NUM_BLOCKS
NUM_EDGES = 64


# ---------------- Pallas kernel: fused encoder (conv1 -> relu -> conv2) --------
def _rgcn_encoder_kernel(a_ref, x_ref, w1_ref, root1_ref, b1_ref,
                         w2_ref, root2_ref, b2_ref, out_ref,
                         hw_ref, stk_ref):
    """All operands VMEM-resident; no grid.

    a_ref    : (N, R*N)   lane-major adjacency, a[dst, r*N+src] = mean-norm A_r[dst, src]
    x_ref    : (N, H)     node features (node_emb)
    w*_ref   : (H, R*H)   hstacked dense block-diagonal relation weights (W_r in cols r*H:(r+1)*H)
    root*    : (H, H)     root (self-loop) weights
    b*_ref   : (1, H)     biases
    out_ref  : (N, H)     encoder output
    hw_ref   : (N, R*H)   scratch: h @ W_hstack
    stk_ref  : (R*N, H)   scratch: per-relation transformed features stacked on rows
    """
    a_wide = a_ref[...]                                  # (N, R*N), lane-dense

    def conv(h, w_ref, root_ref, b_ref):
        # (1) all 35 relation transforms in ONE matmul: (N,H)@(H,R*H).
        hw_ref[...] = jnp.dot(h, w_ref[...], preferred_element_type=jnp.float32)
        # (2) relayout lanes -> sublanes: relation r's H columns become row block r.
        #     Static slices/stores only; runs on XLU/VPU slots that are otherwise idle.
        for r in range(NUM_RELATIONS):
            stk_ref[r * NUM_NODES:(r + 1) * NUM_NODES, :] = (
                hw_ref[:, r * HIDDEN:(r + 1) * HIDDEN])
        # (3) mean aggregation + sum over relations in ONE big-K matmul:
        #     (N, R*N) @ (R*N, H); the relation sum rides the MXU accumulator.
        msg = jnp.dot(a_wide, stk_ref[...], preferred_element_type=jnp.float32)
        return (msg
                + jnp.dot(h, root_ref[...], preferred_element_type=jnp.float32)
                + b_ref[...])

    h1 = jnp.maximum(conv(x_ref[...], w1_ref, root1_ref, b1_ref), 0.0)   # .relu_()
    # TODO(synk): F.dropout(p=0.2, training=self.training) — identity at inference/eval.
    out_ref[...] = conv(h1, w2_ref, root2_ref, b2_ref)


# ---------------- one-time prepacking (OUTSIDE the jitted forward) --------------
def prepack_conv_params(w_blocks, root, bias):
    """(R, B, HB, HB) block weights -> (H, R*H) hstack of dense block-diagonal W_r."""
    R = w_blocks.shape[0]
    wbd = jnp.zeros((R, HIDDEN, HIDDEN), jnp.float32)
    for b in range(NUM_BLOCKS):
        wbd = wbd.at[:, b * HB:(b + 1) * HB, b * HB:(b + 1) * HB].set(w_blocks[:, b])
    # W_hstack[k, r*H + j] = W_r[k, j]
    w_hstack = jnp.transpose(wbd, (1, 0, 2)).reshape(HIDDEN, R * HIDDEN)
    return w_hstack, root, bias.reshape(1, HIDDEN)


def prepack_adjacency(adj):
    """(R, N, N) [r, dst, src] -> lane-major (N, R*N) with A_wide[dst, r*N+src]."""
    R, N, _ = adj.shape
    return jnp.transpose(adj, (1, 0, 2)).reshape(N, R * N)


# ---------------- wrapper -------------------------------------------------------
_COST = pl.CostEstimate(flops=13_107_200, transcendentals=0, bytes_accessed=614_720)


@jax.jit
def rgcn_encoder_forward(a_wide, node_emb, conv1_packed, conv2_packed):
    N, H = node_emb.shape
    w1, root1, b1 = conv1_packed
    w2, root2, b2 = conv2_packed
    args = (a_wide, node_emb, w1, root1, b1, w2, root2, b2)
    vmem = pl.BlockSpec(memory_space=pltpu.MemorySpace.VMEM)
    return pl.pallas_call(
        _rgcn_encoder_kernel,
        out_shape=jax.ShapeDtypeStruct((N, H), jnp.float32),
        in_specs=[vmem] * len(args),
        out_specs=vmem,
        scratch_shapes=[
            pltpu.VMEM((N, NUM_RELATIONS * H), jnp.float32),      # hw_ref
            pltpu.VMEM((NUM_RELATIONS * N, H), jnp.float32),      # stk_ref
        ],
        cost_estimate=_COST,
    )(*args)


# ---------------- glue: adjacency construction ----------------------------------
def build_relation_adjacency(edge_index, edge_type, num_nodes, num_relations):
    """A[r, dst, src] = count / in-degree_r(dst)  (matches PyG mean aggregation)."""
    src = edge_index[0]
    dst = edge_index[1]
    adj = jnp.zeros((num_relations, num_nodes, num_nodes), jnp.float32)
    adj = adj.at[edge_type, dst, src].add(1.0)
    deg = adj.sum(axis=2, keepdims=True)
    return adj / jnp.maximum(deg, 1.0)


# ---------------- pure-JAX reference (for correctness check) --------------------
def rgcn_conv_ref(x, adj, w_blocks, root, bias):
    R, N, _ = adj.shape
    agg = jnp.einsum("rij,jh->rih", adj, x)                        # (R, N, H)
    agg_b = agg.reshape(R, N, NUM_BLOCKS, HB)
    msg = jnp.einsum("rnbc,rbcd->rnbd", agg_b, w_blocks).reshape(R, N, HIDDEN)
    return msg.sum(0) + x @ root + bias[None, :]


def rgcn_encoder_ref(node_emb, adj, conv1_params, conv2_params):
    x = rgcn_conv_ref(node_emb, adj, *conv1_params)
    x = jnp.maximum(x, 0.0)
    return rgcn_conv_ref(x, adj, *conv2_params)


# ---------------- deterministic parameter init -----------------------------------
def glorot(key, shape, fan_in, fan_out):
    bound = (6.0 / (fan_in + fan_out)) ** 0.5
    return jax.random.uniform(key, shape, jnp.float32, -bound, bound)


def init_conv_params(key):
    k_w, k_root = jax.random.split(key)
    w_blocks = glorot(k_w, (NUM_RELATIONS, NUM_BLOCKS, HB, HB), HB, HB)
    root = glorot(k_root, (HIDDEN, HIDDEN), HIDDEN, HIDDEN)
    bias = jnp.zeros((HIDDEN,), jnp.float32)
    return w_blocks, root, bias


if __name__ == "__main__":
    key = jax.random.PRNGKey(0)
    k_emb, k_src, k_dst, k_rel, k_c1, k_c2 = jax.random.split(key, 6)

    # node_emb: Parameter(num_nodes, hidden_channels), xavier_uniform_
    node_emb = glorot(k_emb, (NUM_NODES, HIDDEN), NUM_NODES, HIDDEN)

    # synthetic graph: edge_index (2, E) int32, edge_type (E,) int32 in [0, R)
    src = jax.random.randint(k_src, (NUM_EDGES,), 0, NUM_NODES, jnp.int32)
    dst = jax.random.randint(k_dst, (NUM_EDGES,), 0, NUM_NODES, jnp.int32)
    edge_index = jnp.stack([src, dst], axis=0)
    edge_type = jax.random.randint(k_rel, (NUM_EDGES,), 0, NUM_RELATIONS, jnp.int32)

    adj = build_relation_adjacency(edge_index, edge_type, NUM_NODES, NUM_RELATIONS)

    conv1_params = init_conv_params(k_c1)
    conv2_params = init_conv_params(k_c2)

    # One-time prepacking (hoisted out of the jitted forward: graph/param load time).
    a_wide = prepack_adjacency(adj)
    conv1_packed = prepack_conv_params(*conv1_params)
    conv2_packed = prepack_conv_params(*conv2_params)

    out = rgcn_encoder_forward(a_wide, node_emb, conv1_packed, conv2_packed)
    out = jax.block_until_ready(out)

    ref = rgcn_encoder_ref(node_emb, adj, conv1_params, conv2_params)
    assert out.shape == (NUM_NODES, HIDDEN)
    assert jnp.allclose(out, ref, atol=1e-4, rtol=1e-4)

    print("KERNEL_OK")
</pallas_src>

<mosaic_0001>
module attributes {stable_mosaic.version = 11 : i64} {
  func.func @_rgcn_encoder_kernel(%arg0: memref<32x1120xf32, #tpu.memory_space<vmem>>, %arg1: memref<32x40xf32, #tpu.memory_space<vmem>>, %arg2: memref<40x1400xf32, #tpu.memory_space<vmem>>, %arg3: memref<40x40xf32, #tpu.memory_space<vmem>>, %arg4: memref<1x40xf32, #tpu.memory_space<vmem>>, %arg5: memref<40x1400xf32, #tpu.memory_space<vmem>>, %arg6: memref<40x40xf32, #tpu.memory_space<vmem>>, %arg7: memref<1x40xf32, #tpu.memory_space<vmem>>, %arg8: memref<32x40xf32, #tpu.memory_space<vmem>>, %arg9: memref<32x1400xf32, #tpu.memory_space<vmem>>, %arg10: memref<1120x40xf32, #tpu.memory_space<vmem>>) attributes {dimension_semantics = [], scalar_prefetch = 0 : i64, scratch_operands = 2 : i64, tpu.core_type = #tpu.core_type<tc>} {
    %c0 = arith.constant 0 : index
    %c0_0 = arith.constant 0 : index
    %0 = vector.load %arg0[%c0, %c0_0] : memref<32x1120xf32, #tpu.memory_space<vmem>>, vector<32x1120xf32>
    %c0_1 = arith.constant 0 : index
    %c0_2 = arith.constant 0 : index
    %1 = vector.load %arg1[%c0_1, %c0_2] : memref<32x40xf32, #tpu.memory_space<vmem>>, vector<32x40xf32>
    %c0_3 = arith.constant 0 : index
    %c0_4 = arith.constant 0 : index
    %2 = vector.load %arg2[%c0_3, %c0_4] : memref<40x1400xf32, #tpu.memory_space<vmem>>, vector<40x1400xf32>
    %cst = arith.constant dense<0.000000e+00> : vector<32x1400xf32>
    %3 = tpu.matmul %1, %2, %cst {dimension_numbers = #tpu.dot_dimension_numbers<[1], [0], [0], [1], [0, 0, 1, 1], [], []>} : vector<32x40xf32>, vector<40x1400xf32>, vector<32x1400xf32> -> vector<32x1400xf32>
    %c0_5 = arith.constant 0 : index
    %c0_6 = arith.constant 0 : index
    %4 = vector.load %arg9[%c0_5, %c0_6] : memref<32x1400xf32, #tpu.memory_space<vmem>>, vector<32x1400xf32>
    tpu.vector_store %arg9[%c0_5, %c0_6], %3 {strides = array<i32>} : memref<32x1400xf32, #tpu.memory_space<vmem>>, vector<32x1400xf32>,
    %c0_7 = arith.constant 0 : index
    %c0_8 = arith.constant 0 : index
    %5 = vector.load %arg9[%c0_7, %c0_8] : memref<32x1400xf32, #tpu.memory_space<vmem>>, vector<32x40xf32>
    %c0_9 = arith.constant 0 : index
    %c0_10 = arith.constant 0 : index
    %6 = vector.load %arg10[%c0_9, %c0_10] : memref<1120x40xf32, #tpu.memory_space<vmem>>, vector<32x40xf32>
    tpu.vector_store %arg10[%c0_9, %c0_10], %5 {strides = array<i32>} : memref<1120x40xf32, #tpu.memory_space<vmem>>, vector<32x40xf32>,
    %c0_11 = arith.constant 0 : index
    %c40 = arith.constant 40 : index
    %7 = vector.load %arg9[%c0_11, %c40] : memref<32x1400xf32, #tpu.memory_space<vmem>>, vector<32x40xf32>
    %c32 = arith.constant 32 : index
    %c0_12 = arith.constant 0 : index
    %8 = vector.load %arg10[%c32, %c0_12] : memref<1120x40xf32, #tpu.memory_space<vmem>>, vector<32x40xf32>
    tpu.vector_store %arg10[%c32, %c0_12], %7 {strides = array<i32>} : memref<1120x40xf32, #tpu.memory_space<vmem>>, vector<32x40xf32>,
    %c0_13 = arith.constant 0 : index
    %c80 = arith.constant 80 : index
    %9 = vector.load %arg9[%c0_13, %c80] : memref<32x1400xf32, #tpu.memory_space<vmem>>, vector<32x40xf32>
    %c64 = arith.constant 64 : index
    %c0_14 = arith.constant 0 : index
    %10 = vector.load %arg10[%c64, %c0_14] : memref<1120x40xf32, #tpu.memory_space<vmem>>, vector<32x40xf32>
    tpu.vector_store %arg10[%c64, %c0_14], %9 {strides = array<i32>} : memref<1120x40xf32, #tpu.memory_space<vmem>>, vector<32x40xf32>,
    %c0_15 = arith.constant 0 : index
    %c120 = arith.constant 120 : index
    %11 = vector.load %arg9[%c0_15, %c120] : memref<32x1400xf32, #tpu.memory_space<vmem>>, vector<32x40xf32>
    %c96 = arith.constant 96 : index
    %c0_16 = arith.constant 0 : index
    %12 = vector.load %arg10[%c96, %c0_16] : memref<1120x40xf32, #tpu.memory_space<vmem>>, vector<32x40xf32>
    tpu.vector_store %arg10[%c96, %c0_16], %11 {strides = array<i32>} : memref<1120x40xf32, #tpu.memory_space<vmem>>, vector<32x40xf32>,
    %c0_17 = arith.constant 0 : index
    %c160 = arith.constant 160 : index
    %13 = vector.load %arg9[%c0_17, %c160] : memref<32x1400xf32, #tpu.memory_space<vmem>>, vector<32x40xf32>
    %c128 = arith.constant 128 : index
    %c0_18 = arith.constant 0 : index
    %14 = vector.load %arg10[%c128, %c0_18] : memref<1120x40xf32, #tpu.memory_space<vmem>>, vector<32x40xf32>
    tpu.vector_store %arg10[%c128, %c0_18], %13 {strides = array<i32>} : memref<1120x40xf32, #tpu.memory_space<vmem>>, vector<32x40xf32>,
    %c0_19 = arith.constant 0 : index
    %c200 = arith.constant 200 : index
    %15 = vector.load %arg9[%c0_19, %c200] : memref<32x1400xf32, #tpu.memory_space<vmem>>, vector<32x40xf32>
    %c160_20 = arith.constant 160 : index
    %c0_21 = arith.constant 0 : index
    %16 = vector.load %arg10[%c160_20, %c0_21] : memref<1120x40xf32, #tpu.memory_space<vmem>>, vector<32x40xf32>
    tpu.vector_store %arg10[%c160_20, %c0_21], %15 {strides = array<i32>} : memref<1120x40xf32, #tpu.memory_space<vmem>>, vector<32x40xf32>,
    %c0_22 = arith.constant 0 : index
    %c240 = arith.constant 240 : index
    %17 = vector.load %arg9[%c0_22, %c240] : memref<32x1400xf32, #tpu.memory_space<vmem>>, vector<32x40xf32>
    %c192 = arith.constant 192 : index
    %c0_23 = arith.constant 0 : index
    %18 = vector.load %arg10[%c192, %c0_23] : memref<1120x40xf32, #tpu.memory_space<vmem>>, vector<32x40xf32>
    tpu.vector_store %arg10[%c192, %c0_23], %17 {strides = array<i32>} : memref<1120x40xf32, #tpu.memory_space<vmem>>, vector<32x40xf32>,
    %c0_24 = arith.constant 0 : index
    %c280 = arith.constant 280 : index
    %19 = vector.load %arg9[%c0_24, %c280] : memref<32x1400xf32, #tpu.memory_space<vmem>>, vector<32x40xf32>
    %c224 = arith.constant 224 : index
    %c0_25 = arith.constant 0 : index
    %20 = vector.load %arg10[%c224, %c0_25] : memref<1120x40xf32, #tpu.memory_space<vmem>>, vector<32x40xf32>
    tpu.vector_store %arg10[%c224, %c0_25], %19 {strides = array<i32>} : memref<1120x40xf32, #tpu.memory_space<vmem>>, vector<32x40xf32>,
    %c0_26 = arith.constant 0 : index
    %c320 = arith.constant 320 : index
    %21 = vector.load %arg9[%c0_26, %c320] : memref<32x1400xf32, #tpu.memory_space<vmem>>, vector<32x40xf32>
    %c256 = arith.constant 256 : index
    %c0_27 = arith.constant 0 : index
    %22 = vector.load %arg10[%c256, %c0_27] : memref<1120x40xf32, #tpu.memory_space<vmem>>, vector<32x40xf32>
    tpu.vector_store %arg10[%c256, %c0_27], %21 {strides = array<i32>} : memref<1120x40xf32, #tpu.memory_space<vmem>>, vector<32x40xf32>,
    %c0_28 = arith.constant 0 : index
    %c360 = arith.constant 360 : index
    %23 = vector.load %arg9[%c0_28, %c360] : memref<32x1400xf32, #tpu.memory_space<vmem>>, vector<32x40xf32>
    %c288 = arith.constant 288 : index
    %c0_29 = arith.constant 0 : index
    %24 = vector.load %arg10[%c288, %c0_29] : memref<1120x40xf32, #tpu.memory_space<vmem>>, vector<32x40xf32>
    tpu.vector_store %arg10[%c288, %c0_29], %23 {strides = array<i32>} : memref<1120x40xf32, #tpu.memory_space<vmem>>, vector<32x40xf32>,
    %c0_30 = arith.constant 0 : index
    %c400 = arith.constant 400 : index
    %25 = vector.load %arg9[%c0_30, %c400] : memref<32x1400xf32, #tpu.memory_space<vmem>>, vector<32x40xf32>
    %c320_31 = arith.constant 320 : index
    %c0_32 = arith.constant 0 : index
    %26 = vector.load %arg10[%c320_31, %c0_32] : memref<1120x40xf32, #tpu.memory_space<vmem>>, vector<32x40xf32>
    tpu.vector_store %arg10[%c320_31, %c0_32], %25 {strides = array<i32>} : memref<1120x40xf32, #tpu.memory_space<vmem>>, vector<32x40xf32>,
    %c0_33 = arith.constant 0 : index
    %c440 = arith.constant 440 : index
    %27 = vector.load %arg9[%c0_33, %c440] : memref<32x1400xf32, #tpu.memory_space<vmem>>, vector<32x40xf32>
    %c352 = arith.constant 352 : index
    %c0_34 = arith.constant 0 : index
    %28 = vector.load %arg10[%c352, %c0_34] : memref<1120x40xf32, #tpu.memory_space<vmem>>, vector<32x40xf32>
    tpu.vector_store %arg10[%c352, %c0_34], %27 {strides = array<i32>} : memref<1120x40xf32, #tpu.memory_space<vmem>>, vector<32x40xf32>,
    %c0_35 = arith.constant 0 : index
    %c480 = arith.constant 480 : index
    %29 = vector.load %arg9[%c0_35, %c480] : memref<32x1400xf32, #tpu.memory_space<vmem>>, vector<32x40xf32>
    %c384 = arith.constant 384 : index
    %c0_36 = arith.constant 0 : index
    %30 = vector.load %arg10[%c384, %c0_36] : memref<1120x40xf32, #tpu.memory_space<vmem>>, vector<32x40xf32>
    tpu.vector_store %arg10[%c384, %c0_36], %29 {strides = array<i32>} : memref<1120x40xf32, #tpu.memory_space<vmem>>, vector<32x40xf32>,
    %c0_37 = arith.constant 0 : index
    %c520 = arith.constant 520 : index
    %31 = vector.load %arg9[%c0_37, %c520] : memref<32x1400xf32, #tpu.memory_space<vmem>>, vector<32x40xf32>
    %c416 = arith.constant 416 : index
    %c0_38 = arith.constant 0 : index
    %32 = vector.load %arg10[%c416, %c0_38] : memref<1120x40xf32, #tpu.memory_space<vmem>>, vector<32x40xf32>
    tpu.vector_store %arg10[%c416, %c0_38], %31 {strides = array<i32>} : memref<1120x40xf32, #tpu.memory_space<vmem>>, vector<32x40xf32>,
    %c0_39 = arith.constant 0 : index
    %c560 = arith.constant 560 : index
    %33 = vector.load %arg9[%c0_39, %c560] : memref<32x1400xf32, #tpu.memory_space<vmem>>, vector<32x40xf32>
    %c448 = arith.constant 448 : index
    %c0_40 = arith.constant 0 : index
    %34 = vector.load %arg10[%c448, %c0_40] : memref<1120x40xf32, #tpu.memory_space<vmem>>, vector<32x40xf32>
    tpu.vector_store %arg10[%c448, %c0_40], %33 {strides = array<i32>} : memref<1120x40xf32, #tpu.memory_space<vmem>>, vector<32x40xf32>,
    %c0_41 = arith.constant 0 : index
    %c600 = arith.constant 600 : index
    %35 = vector.load %arg9[%c0_41, %c600] : memref<32x1400xf32, #tpu.memory_space<vmem>>, vector<32x40xf32>
    %c480_42 = arith.constant 480 : index
    %c0_43 = arith.constant 0 : index
    %36 = vector.load %arg10[%c480_42, %c0_43] : memref<1120x40xf32, #tpu.memory_space<vmem>>, vector<32x40xf32>
    tpu.vector_store %arg10[%c480_42, %c0_43], %35 {strides = array<i32>} : memref<1120x40xf32, #tpu.memory_space<vmem>>, vector<32x40xf32>,
    %c0_44 = arith.constant 0 : index
    %c640 = arith.constant 640 : index
    %37 = vector.load %arg9[%c0_44, %c640] : memref<32x1400xf32, #tpu.memory_space<vmem>>, vector<32x40xf32>
    %c512 = arith.constant 512 : index
    %c0_45 = arith.constant 0 : index
    %38 = vector.load %arg10[%c512, %c0_45] : memref<1120x40xf32, #tpu.memory_space<vmem>>, vector<32x40xf32>
    tpu.vector_store %arg10[%c512, %c0_45], %37 {strides = array<i32>} : memref<1120x40xf32, #tpu.memory_space<vmem>>, vector<32x40xf32>,
    %c0_46 = arith.constant 0 : index
    %c680 = arith.constant 680 : index
    %39 = vector.load %arg9[%c0_46, %c680] : memref<32x1400xf32, #tpu.memory_space<vmem>>, vector<32x40xf32>
    %c544 = arith.constant 544 : index
    %c0_47 = arith.constant 0 : index
    %40 = vector.load %arg10[%c544, %c0_47] : memref<1120x40xf32, #tpu.memory_space<vmem>>, vector<32x40xf32>
    tpu.vector_store %arg10[%c544, %c0_47], %39 {strides = array<i32>} : memref<1120x40xf32, #tpu.memory_space<vmem>>, vector<32x40xf32>,
    %c0_48 = arith.constant 0 : index
    %c720 = arith.constant 720 : index
    %41 = vector.load %arg9[%c0_48, %c720] : memref<32x1400xf32, #tpu.memory_space<vmem>>, vector<32x40xf32>
    %c576 = arith.constant 576 : index
    %c0_49 = arith.constant 0 : index
    %42 = vector.load %arg10[%c576, %c0_49] : memref<1120x40xf32, #tpu.memory_space<vmem>>, vector<32x40xf32>
    tpu.vector_store %arg10[%c576, %c0_49], %41 {strides = array<i32>} : memref<1120x40xf32, #tpu.memory_space<vmem>>, vector<32x40xf32>,
    %c0_50 = arith.constant 0 : index
    %c760 = arith.constant 760 : index
    %43 = vector.load %arg9[%c0_50, %c760] : memref<32x1400xf32, #tpu.memory_space<vmem>>, vector<32x40xf32>
    %c608 = arith.constant 608 : index
    %c0_51 = arith.constant 0 : index
    %44 = vector.load %arg10[%c608, %c0_51] : memref<1120x40xf32, #tpu.memory_space<vmem>>, vector<32x40xf32>
    tpu.vector_store %arg10[%c608, %c0_51], %43 {strides = array<i32>} : memref<1120x40xf32, #tpu.memory_space<vmem>>, vector<32x40xf32>,
    %c0_52 = arith.constant 0 : index
    %c800 = arith.constant 800 : index
    %45 = vector.load %arg9[%c0_52, %c800] : memref<32x1400xf32, #tpu.memory_space<vmem>>, vector<32x40xf32>
    %c640_53 = arith.constant 640 : index
    %c0_54 = arith.constant 0 : index
    %46 = vector.load %arg10[%c640_53, %c0_54] : memref<1120x40xf32, #tpu.memory_space<vmem>>, vector<32x40xf32>
    tpu.vector_store %arg10[%c640_53, %c0_54], %45 {strides = array<i32>} : memref<1120x40xf32, #tpu.memory_space<vmem>>, vector<32x40xf32>,
    %c0_55 = arith.constant 0 : index
    %c840 = arith.constant 840 : index
    %47 = vector.load %arg9[%c0_55, %c840] : memref<32x1400xf32, #tpu.memory_space<vmem>>, vector<32x40xf32>
    %c672 = arith.constant 672 : index
    %c0_56 = arith.constant 0 : index
    %48 = vector.load %arg10[%c672, %c0_56] : memref<1120x40xf32, #tpu.memory_space<vmem>>, vector<32x40xf32>
    tpu.vector_store %arg10[%c672, %c0_56], %47 {strides = array<i32>} : memref<1120x40xf32, #tpu.memory_space<vmem>>, vector<32x40xf32>,
    %c0_57 = arith.constant 0 : index
    %c880 = arith.constant 880 : index
    %49 = vector.load %arg9[%c0_57, %c880] : memref<32x1400xf32, #tpu.memory_space<vmem>>, vector<32x40xf32>
    %c704 = arith.constant 704 : index
    %c0_58 = arith.constant 0 : index
    %50 = vector.load %arg10[%c704, %c0_58] : memref<1120x40xf32, #tpu.memory_space<vmem>>, vector<32x40xf32>
    tpu.vector_store %arg10[%c704, %c0_58], %49 {strides = array<i32>} : memref<1120x40xf32, #tpu.memory_space<vmem>>, vector<32x40xf32>,
    %c0_59 = arith.constant 0 : index
    %c920 = arith.constant 920 : index
    %51 = vector.load %arg9[%c0_59, %c920] : memref<32x1400xf32, #tpu.memory_space<vmem>>, vector<32x40xf32>
    %c736 = arith.constant 736 : index
    %c0_60 = arith.constant 0 : index
    %52 = vector.load %arg10[%c736, %c0_60] : memref<1120x40xf32, #tpu.memory_space<vmem>>, vector<32x40xf32>
    tpu.vector_store %arg10[%c736, %c0_60], %51 {strides = array<i32>} : memref<1120x40xf32, #tpu.memory_space<vmem>>, vector<32x40xf32>,
    %c0_61 = arith.constant 0 : index
    %c960 = arith.constant 960 : index
    %53 = vector.load %arg9[%c0_61, %c960] : memref<32x1400xf32, #tpu.memory_space<vmem>>, vector<32x40xf32>
    %c768 = arith.constant 768 : index
    %c0_62 = arith.constant 0 : index
    %54 = vector.load %arg10[%c768, %c0_62] : memref<1120x40xf32, #tpu.memory_space<vmem>>, vector<32x40xf32>
    tpu.vector_store %arg10[%c768, %c0_62], %53 {strides = array<i32>} : memref<1120x40xf32, #tpu.memory_space<vmem>>, vector<32x40xf32>,
    %c0_63 = arith.constant 0 : index
    %c1000 = arith.constant 1000 : index
    %55 = vector.load %arg9[%c0_63, %c1000] : memref<32x1400xf32, #tpu.memory_space<vmem>>, vector<32x40xf32>
    %c800_64 = arith.constant 800 : index
    %c0_65 = arith.constant 0 : index
    %56 = vector.load %arg10[%c800_64, %c0_65] : memref<1120x40xf32, #tpu.memory_space<vmem>>, vector<32x40xf32>
    tpu.vector_store %arg10[%c800_64, %c0_65], %55 {strides = array<i32>} : memref<1120x40xf32, #tpu.memory_space<vmem>>, vector<32x40xf32>,
    %c0_66 = arith.constant 0 : index
    %c1040 = arith.constant 1040 : index
    %57 = vector.load %arg9[%c0_66, %c1040] : memref<32x1400xf32, #tpu.memory_space<vmem>>, vector<32x40xf32>
    %c832 = arith.constant 832 : index
    %c0_67 = arith.constant 0 : index
    %58 = vector.load %arg10[%c832, %c0_67] : memref<1120x40xf32, #tpu.memory_space<vmem>>, vector<32x40xf32>
    tpu.vector_store %arg10[%c832, %c0_67], %57 {strides = array<i32>} : memref<1120x40xf32, #tpu.memory_space<vmem>>, vector<32x40xf32>,
    %c0_68 = arith.constant 0 : index
    %c1080 = arith.constant 1080 : index
    %59 = vector.load %arg9[%c0_68, %c1080] : memref<32x1400xf32, #tpu.memory_space<vmem>>, vector<32x40xf32>
    %c864 = arith.constant 864 : index
    %c0_69 = arith.constant 0 : index
    %60 = vector.load %arg10[%c864, %c0_69] : memref<1120x40xf32, #tpu.memory_space<vmem>>, vector<32x40xf32>
    tpu.vector_store %arg10[%c864, %c0_69], %59 {strides = array<i32>} : memref<1120x40xf32, #tpu.memory_space<vmem>>, vector<32x40xf32>,
    %c0_70 = arith.constant 0 : index
    %c1120 = arith.constant 1120 : index
    %61 = vector.load %arg9[%c0_70, %c1120] : memref<32x1400xf32, #tpu.memory_space<vmem>>, vector<32x40xf32>
    %c896 = arith.constant 896 : index
    %c0_71 = arith.constant 0 : index
    %62 = vector.load %arg10[%c896, %c0_71] : memref<1120x40xf32, #tpu.memory_space<vmem>>, vector<32x40xf32>
    tpu.vector_store %arg10[%c896, %c0_71], %61 {strides = array<i32>} : memref<1120x40xf32, #tpu.memory_space<vmem>>, vector<32x40xf32>,
    %c0_72 = arith.constant 0 : index
    %c1160 = arith.constant 1160 : index
    %63 = vector.load %arg9[%c0_72, %c1160] : memref<32x1400xf32, #tpu.memory_space<vmem>>, vector<32x40xf32>
    %c928 = arith.constant 928 : index
    %c0_73 = arith.constant 0 : index
    %64 = vector.load %arg10[%c928, %c0_73] : memref<1120x40xf32, #tpu.memory_space<vmem>>, vector<32x40xf32>
    tpu.vector_store %arg10[%c928, %c0_73], %63 {strides = array<i32>} : memref<1120x40xf32, #tpu.memory_space<vmem>>, vector<32x40xf32>,
    %c0_74 = arith.constant 0 : index
    %c1200 = arith.constant 1200 : index
    %65 = vector.load %arg9[%c0_74, %c1200] : memref<32x1400xf32, #tpu.memory_space<vmem>>, vector<32x40xf32>
    %c960_75 = arith.constant 960 : index
    %c0_76 = arith.constant 0 : index
    %66 = vector.load %arg10[%c960_75, %c0_76] : memref<1120x40xf32, #tpu.memory_space<vmem>>, vector<32x40xf32>
    tpu.vector_store %arg10[%c960_75, %c0_76], %65 {strides = array<i32>} : memref<1120x40xf32, #tpu.memory_space<vmem>>, vector<32x40xf32>,
    %c0_77 = arith.constant 0 : index
    %c1240 = arith.constant 1240 : index
    %67 = vector.load %arg9[%c0_77, %c1240] : memref<32x1400xf32, #tpu.memory_space<vmem>>, vector<32x40xf32>
    %c992 = arith.constant 992 : index
    %c0_78 = arith.constant 0 : index
    %68 = vector.load %arg10[%c992, %c0_78] : memref<1120x40xf32, #tpu.memory_space<vmem>>, vector<32x40xf32>
    tpu.vector_store %arg10[%c992, %c0_78], %67 {strides = array<i32>} : memref<1120x40xf32, #tpu.memory_space<vmem>>, vector<32x40xf32>,
    %c0_79 = arith.constant 0 : index
    %c1280 = arith.constant 1280 : index
    %69 = vector.load %arg9[%c0_79, %c1280] : memref<32x1400xf32, #tpu.memory_space<vmem>>, vector<32x40xf32>
    %c1024 = arith.constant 1024 : index
    %c0_80 = arith.constant 0 : index
    %70 = vector.load %arg10[%c1024, %c0_80] : memref<1120x40xf32, #tpu.memory_space<vmem>>, vector<32x40xf32>
    tpu.vector_store %arg10[%c1024, %c0_80], %69 {strides = array<i32>} : memref<1120x40xf32, #tpu.memory_space<vmem>>, vector<32x40xf32>,
    %c0_81 = arith.constant 0 : index
    %c1320 = arith.constant 1320 : index
    %71 = vector.load %arg9[%c0_81, %c1320] : memref<32x1400xf32, #tpu.memory_space<vmem>>, vector<32x40xf32>
    %c1056 = arith.constant 1056 : index
    %c0_82 = arith.constant 0 : index
    %72 = vector.load %arg10[%c1056, %c0_82] : memref<1120x40xf32, #tpu.memory_space<vmem>>, vector<32x40xf32>
    tpu.vector_store %arg10[%c1056, %c0_82], %71 {strides = array<i32>} : memref<1120x40xf32, #tpu.memory_space<vmem>>, vector<32x40xf32>,
    %c0_83 = arith.constant 0 : index
    %c1360 = arith.constant 1360 : index
    %73 = vector.load %arg9[%c0_83, %c1360] : memref<32x1400xf32, #tpu.memory_space<vmem>>, vector<32x40xf32>
    %c1088 = arith.constant 1088 : index
    %c0_84 = arith.constant 0 : index
    %74 = vector.load %arg10[%c1088, %c0_84] : memref<1120x40xf32, #tpu.memory_space<vmem>>, vector<32x40xf32>
    tpu.vector_store %arg10[%c1088, %c0_84], %73 {strides = array<i32>} : memref<1120x40xf32, #tpu.memory_space<vmem>>, vector<32x40xf32>,
    %c0_85 = arith.constant 0 : index
    %c0_86 = arith.constant 0 : index
    %75 = vector.load %arg10[%c0_85, %c0_86] : memref<1120x40xf32, #tpu.memory_space<vmem>>, vector<1120x40xf32>
    %cst_87 = arith.constant dense<0.000000e+00> : vector<32x40xf32>
    %76 = tpu.matmul %0, %75, %cst_87 {dimension_numbers = #tpu.dot_dimension_numbers<[1], [0], [0], [1], [0, 0, 1, 1], [], []>} : vector<32x1120xf32>, vector<1120x40xf32>, vector<32x40xf32> -> vector<32x40xf32>
    %c0_88 = arith.constant 0 : index
    %c0_89 = arith.constant 0 : index
    %77 = vector.load %arg3[%c0_88, %c0_89] : memref<40x40xf32, #tpu.memory_space<vmem>>, vector<40x40xf32>
    %cst_90 = arith.constant dense<0.000000e+00> : vector<32x40xf32>
    %78 = tpu.matmul %1, %77, %cst_90 {dimension_numbers = #tpu.dot_dimension_numbers<[1], [0], [0], [1], [0, 0, 1, 1], [], []>} : vector<32x40xf32>, vector<40x40xf32>, vector<32x40xf32> -> vector<32x40xf32>
    %79 = arith.addf %76, %78 : vector<32x40xf32>
    %c0_91 = arith.constant 0 : index
    %c0_92 = arith.constant 0 : index
    %80 = vector.load %arg4[%c0_91, %c0_92] : memref<1x40xf32, #tpu.memory_space<vmem>>, vector<1x40xf32>
    %81 = vector.broadcast %80 : vector<1x40xf32> to vector<32x40xf32>
    %82 = arith.addf %79, %81 : vector<32x40xf32>
    %cst_93 = arith.constant 0.000000e+00 : f32
    %83 = vector.broadcast %cst_93 : f32 to vector<32x40xf32>
    %84 = arith.maximumf %82, %83 : vector<32x40xf32>
    %c0_94 = arith.constant 0 : index
    %c0_95 = arith.constant 0 : index
    %85 = vector.load %arg5[%c0_94, %c0_95] : memref<40x1400xf32, #tpu.memory_space<vmem>>, vector<40x1400xf32>
    %cst_96 = arith.constant dense<0.000000e+00> : vector<32x1400xf32>
    %86 = tpu.matmul %84, %85, %cst_96 {dimension_numbers = #tpu.dot_dimension_numbers<[1], [0], [0], [1], [0, 0, 1, 1], [], []>} : vector<32x40xf32>, vector<40x1400xf32>, vector<32x1400xf32> -> vector<32x1400xf32>
    %c0_97 = arith.constant 0 : index
    %c0_98 = arith.constant 0 : index
    %87 = vector.load %arg9[%c0_97, %c0_98] : memref<32x1400xf32, #tpu.memory_space<vmem>>, vector<32x1400xf32>
    tpu.vector_store %arg9[%c0_97, %c0_98], %86 {strides = array<i32>} : memref<32x1400xf32, #tpu.memory_space<vmem>>, vector<32x1400xf32>,
    %c0_99 = arith.constant 0 : index
    %c0_100 = arith.constant 0 : index
    %88 = vector.load %arg9[%c0_99, %c0_100] : memref<32x1400xf32, #tpu.memory_space<vmem>>, vector<32x40xf32>
    %c0_101 = arith.constant 0 : index
    %c0_102 = arith.constant 0 : index
    %89 = vector.load %arg10[%c0_101, %c0_102] : memref<1120x40xf32, #tpu.memory_space<vmem>>, vector<32x40xf32>
    tpu.vector_store %arg10[%c0_101, %c0_102], %88 {strides = array<i32>} : memref<1120x40xf32, #tpu.memory_space<vmem>>, vector<32x40xf32>,
    %c0_103 = arith.constant 0 : index
    %c40_104 = arith.constant 40 : index
    %90 = vector.load %arg9[%c0_103, %c40_104] : memref<32x1400xf32, #tpu.memory_space<vmem>>, vector<32x40xf32>
    %c32_105 = arith.constant 32 : index
    %c0_106 = arith.constant 0 : index
    %91 = vector.load %arg10[%c32_105, %c0_106] : memref<1120x40xf32, #tpu.memory_space<vmem>>, vector<32x40xf32>
    tpu.vector_store %arg10[%c32_105, %c0_106], %90 {strides = array<i32>} : memref<1120x40xf32, #tpu.memory_space<vmem>>, vector<32x40xf32>,
    %c0_107 = arith.constant 0 : index
    %c80_108 = arith.constant 80 : index
    %92 = vector.load %arg9[%c0_107, %c80_108] : memref<32x1400xf32, #tpu.memory_space<vmem>>, vector<32x40xf32>
    %c64_109 = arith.constant 64 : index
    %c0_110 = arith.constant 0 : index
    %93 = vector.load %arg10[%c64_109, %c0_110] : memref<1120x40xf32, #tpu.memory_space<vmem>>, vector<32x40xf32>
    tpu.vector_store %arg10[%c64_109, %c0_110], %92 {strides = array<i32>} : memref<1120x40xf32, #tpu.memory_space<vmem>>, vector<32x40xf32>,
    %c0_111 = arith.constant 0 : index
    %c120_112 = arith.constant 120 : index
    %94 = vector.load %arg9[%c0_111, %c120_112] : memref<32x1400xf32, #tpu.memory_space<vmem>>, vector<32x40xf32>
    %c96_113 = arith.constant 96 : index
    %c0_114 = arith.constant 0 : index
    %95 = vector.load %arg10[%c96_113, %c0_114] : memref<1120x40xf32, #tpu.memory_space<vmem>>, vector<32x40xf32>
    tpu.vector_store %arg10[%c96_113, %c0_114], %94 {strides = array<i32>} : memref<1120x40xf32, #tpu.memory_space<vmem>>, vector<32x40xf32>,
    %c0_115 = arith.constant 0 : index
    %c160_116 = arith.constant 160 : index
    %96 = vector.load %arg9[%c0_115, %c160_116] : memref<32x1400xf32, #tpu.memory_space<vmem>>, vector<32x40xf32>
    %c128_117 = arith.constant 128 : index
    %c0_118 = arith.constant 0 : index
    %97 = vector.load %arg10[%c128_117, %c0_118] : memref<1120x40xf32, #tpu.memory_space<vmem>>, vector<32x40xf32>
    tpu.vector_store %arg10[%c128_117, %c0_118], %96 {strides = array<i32>} : memref<1120x40xf32, #tpu.memory_space<vmem>>, vector<32x40xf32>,
    %c0_119 = arith.constant 0 : index
    %c200_120 = arith.constant 200 : index
    %98 = vector.load %arg9[%c0_119, %c200_120] : memref<32x1400xf32, #tpu.memory_space<vmem>>, vector<32x40xf32>
    %c160_121 = arith.constant 160 : index
    %c0_122 = arith.constant 0 : index
    %99 = vector.load %arg10[%c160_121, %c0_122] : memref<1120x40xf32, #tpu.memory_space<vmem>>, vector<32x40xf32>
    tpu.vector_store %arg10[%c160_121, %c0_122], %98 {strides = array<i32>} : memref<1120x40xf32, #tpu.memory_space<vmem>>, vector<32x40xf32>,
    %c0_123 = arith.constant 0 : index
    %c240_124 = arith.constant 240 : index
    %100 = vector.load %arg9[%c0_123, %c240_124] : memref<32x1400xf32, #tpu.memory_space<vmem>>, vector<32x40xf32>
    %c192_125 = arith.constant 192 : index
    %c0_126 = arith.constant 0 : index
    %101 = vector.load %arg10[%c192_125, %c0_126] : memref<1120x40xf32, #tpu.memory_space<vmem>>, vector<32x40xf32>
    tpu.vector_store %arg10[%c192_125, %c0_126], %100 {strides = array<i32>} : memref<1120x40xf32, #tpu.memory_space<vmem>>, vector<32x40xf32>,
    %c0_127 = arith.constant 0 : index
    %c280_128 = arith.constant 280 : index
    %102 = vector.load %arg9[%c0_127, %c280_128] : memref<32x1400xf32, #tpu.memory_space<vmem>>, vector<32x40xf32>
    %c224_129 = arith.constant 224 : index
    %c0_130 = arith.constant 0 : index
    %103 = vector.load %arg10[%c224_129, %c0_130] : memref<1120x40xf32, #tpu.memory_space<vmem>>, vector<32x40xf32>
    tpu.vector_store %arg10[%c224_129, %c0_130], %102 {strides = array<i32>} : memref<1120x40xf32, #tpu.memory_space<vmem>>, vector<32x40xf32>,
    %c0_131 = arith.constant 0 : index
    %c320_132 = arith.constant 320 : index
    %104 = vector.load %arg9[%c0_131, %c320_132] : memref<32x1400xf32, #tpu.memory_space<vmem>>, vector<32x40xf32>
    %c256_133 = arith.constant 256 : index
    %c0_134 = arith.constant 0 : index
    %105 = vector.load %arg10[%c256_133, %c0_134] : memref<1120x40xf32, #tpu.memory_space<vmem>>, vector<32x40xf32>
    tpu.vector_store %arg10[%c256_133, %c0_134], %104 {strides = array<i32>} : memref<1120x40xf32, #tpu.memory_space<vmem>>, vector<32x40xf32>,
    %c0_135 = arith.constant 0 : index
    %c360_136 = arith.constant 360 : index
    %106 = vector.load %arg9[%c0_135, %c360_136] : memref<32x1400xf32, #tpu.memory_space<vmem>>, vector<32x40xf32>
    %c288_137 = arith.constant 288 : index
    %c0_138 = arith.constant 0 : index
    %107 = vector.load %arg10[%c288_137, %c0_138] : memref<1120x40xf32, #tpu.memory_space<vmem>>, vector<32x40xf32>
    tpu.vector_store %arg10[%c288_137, %c0_138], %106 {strides = array<i32>} : memref<1120x40xf32, #tpu.memory_space<vmem>>, vector<32x40xf32>,
    %c0_139 = arith.constant 0 : index
    %c400_140 = arith.constant 400 : index
    %108 = vector.load %arg9[%c0_139, %c400_140] : memref<32x1400xf32, #tpu.memory_space<vmem>>, vector<32x40xf32>
    %c320_141 = arith.constant 320 : index
    %c0_142 = arith.constant 0 : index
    %109 = vector.load %arg10[%c320_141, %c0_142] : memref<1120x40xf32, #tpu.memory_space<vmem>>, vector<32x40xf32>
    tpu.vector_store %arg10[%c320_141, %c0_142], %108 {strides = array<i32>} : memref<1120x40xf32, #tpu.memory_space<vmem>>, vector<32x40xf32>,
    %c0_143 = arith.constant 0 : index
    %c440_144 = arith.constant 440 : index
    %110 = vector.load %arg9[%c0_143, %c440_144] : memref<32x1400xf32, #tpu.memory_space<vmem>>, vector<32x40xf32>
    %c352_145 = arith.constant 352 : index
    %c0_146 = arith.constant 0 : index
    %111 = vector.load %arg10[%c352_145, %c0_146] : memref<1120x40xf32, #tpu.memory_space<vmem>>, vector<32x40xf32>
    tpu.vector_store %arg10[%c352_145, %c0_146], %110 {strides = array<i32>} : memref<1120x40xf32, #tpu.memory_space<vmem>>, vector<32x40xf32>,
    %c0_147 = arith.constant 0 : index
    %c480_148 = arith.constant 480 : index
    %112 = vector.load %arg9[%c0_147, %c480_148] : memref<32x1400xf32, #tpu.memory_space<vmem>>, vector<32x40xf32>
    %c384_149 = arith.constant 384 : index
    %c0_150 = arith.constant 0 : index
    %113 = vector.load %arg10[%c384_149, %c0_150] : memref<1120x40xf32, #tpu.memory_space<vmem>>, vector<32x40xf32>
    tpu.vector_store %arg10[%c384_149, %c0_150], %112 {strides = array<i32>} : memref<1120x40xf32, #tpu.memory_space<vmem>>, vector<32x40xf32>,
    %c0_151 = arith.constant 0 : index
    %c520_152 = arith.constant 520 : index
    %114 = vector.load %arg9[%c0_151, %c520_152] : memref<32x1400xf32, #tpu.memory_space<vmem>>, vector<32x40xf32>
    %c416_153 = arith.constant 416 : index
    %c0_154 = arith.constant 0 : index
    %115 = vector.load %arg10[%c416_153, %c0_154] : memref<1120x40xf32, #tpu.memory_space<vmem>>, vector<32x40xf32>
    tpu.vector_store %arg10[%c416_153, %c0_154], %114 {strides = array<i32>} : memref<1120x40xf32, #tpu.memory_space<vmem>>, vector<32x40xf32>,
    %c0_155 = arith.constant 0 : index
    %c560_156 = arith.constant 560 : index
    %116 = vector.load %arg9[%c0_155, %c560_156] : memref<32x1400xf32, #tpu.memory_space<vmem>>, vector<32x40xf32>
    %c448_157 = arith.constant 448 : index
    %c0_158 = arith.constant 0 : index
    %117 = vector.load %arg10[%c448_157, %c0_158] : memref<1120x40xf32, #tpu.memory_space<vmem>>, vector<32x40xf32>
    tpu.vector_store %arg10[%c448_157, %c0_158], %116 {strides = array<i32>} : memref<1120x40xf32, #tpu.memory_space<vmem>>, vector<32x40xf32>,
    %c0_159 = arith.constant 0 : index
    %c600_160 = arith.constant 600 : index
    %118 = vector.load %arg9[%c0_159, %c600_160] : memref<32x1400xf32, #tpu.memory_space<vmem>>, vector<32x40xf32>
    %c480_161 = arith.constant 480 : index
    %c0_162 = arith.constant 0 : index
    %119 = vector.load %arg10[%c480_161, %c0_162] : memref<1120x40xf32, #tpu.memory_space<vmem>>, vector<32x40xf32>
    tpu.vector_store %arg10[%c480_161, %c0_162], %118 {strides = array<i32>} : memref<1120x40xf32, #tpu.memory_space<vmem>>, vector<32x40xf32>,
    %c0_163 = arith.constant 0 : index
    %c640_164 = arith.constant 640 : index
    %120 = vector.load %arg9[%c0_163, %c640_164] : memref<32x1400xf32, #tpu.memory_space<vmem>>, vector<32x40xf32>
    %c512_165 = arith.constant 512 : index
    %c0_166 = arith.constant 0 : index
    %121 = vector.load %arg10[%c512_165, %c0_166] : memref<1120x40xf32, #tpu.memory_space<vmem>>, vector<32x40xf32>
    tpu.vector_store %arg10[%c512_165, %c0_166], %120 {strides = array<i32>} : memref<1120x40xf32, #tpu.memory_space<vmem>>, vector<32x40xf32>,
    %c0_167 = arith.constant 0 : index
    %c680_168 = arith.constant 680 : index
    %122 = vector.load %arg9[%c0_167, %c680_168] : memref<32x1400xf32, #tpu.memory_space<vmem>>, vector<32x40xf32>
    %c544_169 = arith.constant 544 : index
    %c0_170 = arith.constant 0 : index
    %123 = vector.load %arg10[%c544_169, %c0_170] : memref<1120x40xf32, #tpu.memory_space<vmem>>, vector<32x40xf32>
    tpu.vector_store %arg10[%c544_169, %c0_170], %122 {strides = array<i32>} : memref<1120x40xf32, #tpu.memory_space<vmem>>, vector<32x40xf32>,
    %c0_171 = arith.constant 0 : index
    %c720_172 = arith.constant 720 : index
    %124 = vector.load %arg9[%c0_171, %c720_172] : memref<32x1400xf32, #tpu.memory_space<vmem>>, vector<32x40xf32>
    %c576_173 = arith.constant 576 : index
    %c0_174 = arith.constant 0 : index
    %125 = vector.load %arg10[%c576_173, %c0_174] : memref<1120x40xf32, #tpu.memory_space<vmem>>, vector<32x40xf32>
    tpu.vector_store %arg10[%c576_173, %c0_174], %124 {strides = array<i32>} : memref<1120x40xf32, #tpu.memory_space<vmem>>, vector<32x40xf32>,
    %c0_175 = arith.constant 0 : index
    %c760_176 = arith.constant 760 : index
    %126 = vector.load %arg9[%c0_175, %c760_176] : memref<32x1400xf32, #tpu.memory_space<vmem>>, vector<32x40xf32>
    %c608_177 = arith.constant 608 : index
    %c0_178 = arith.constant 0 : index
    %127 = vector.load %arg10[%c608_177, %c0_178] : memref<1120x40xf32, #tpu.memory_space<vmem>>, vector<32x40xf32>
    tpu.vector_store %arg10[%c608_177, %c0_178], %126 {strides = array<i32>} : memref<1120x40xf32, #tpu.memory_space<vmem>>, vector<32x40xf32>,
    %c0_179 = arith.constant 0 : index
    %c800_180 = arith.constant 800 : index
    %128 = vector.load %arg9[%c0_179, %c800_180] : memref<32x1400xf32, #tpu.memory_space<vmem>>, vector<32x40xf32>
    %c640_181 = arith.constant 640 : index
    %c0_182 = arith.constant 0 : index
    %129 = vector.load %arg10[%c640_181, %c0_182] : memref<1120x40xf32, #tpu.memory_space<vmem>>, vector<32x40xf32>
    tpu.vector_store %arg10[%c640_181, %c0_182], %128 {strides = array<i32>} : memref<1120x40xf32, #tpu.memory_space<vmem>>, vector<32x40xf32>,
    %c0_183 = arith.constant 0 : index
    %c840_184 = arith.constant 840 : index
    %130 = vector.load %arg9[%c0_183, %c840_184] : memref<32x1400xf32, #tpu.memory_space<vmem>>, vector<32x40xf32>
    %c672_185 = arith.constant 672 : index
    %c0_186 = arith.constant 0 : index
    %131 = vector.load %arg10[%c672_185, %c0_186] : memref<1120x40xf32, #tpu.memory_space<vmem>>, vector<32x40xf32>
    tpu.vector_store %arg10[%c672_185, %c0_186], %130 {strides = array<i32>} : memref<1120x40xf32, #tpu.memory_space<vmem>>, vector<32x40xf32>,
    %c0_187 = arith.constant 0 : index
    %c880_188 = arith.constant 880 : index
    %132 = vector.load %arg9[%c0_187, %c880_188] : memref<32x1400xf32, #tpu.memory_space<vmem>>, vector<32x40xf32>
    %c704_189 = arith.constant 704 : index
    %c0_190 = arith.constant 0 : index
    %133 = vector.load %arg10[%c704_189, %c0_190] : memref<1120x40xf32, #tpu.memory_space<vmem>>, vector<32x40xf32>
    tpu.vector_store %arg10[%c704_189, %c0_190], %132 {strides = array<i32>} : memref<1120x40xf32, #tpu.memory_space<vmem>>, vector<32x40xf32>,
    %c0_191 = arith.constant 0 : index
    %c920_192 = arith.constant 920 : index
    %134 = vector.load %arg9[%c0_191, %c920_192] : memref<32x1400xf32, #tpu.memory_space<vmem>>, vector<32x40xf32>
    %c736_193 = arith.constant 736 : index
    %c0_194 = arith.constant 0 : index
    %135 = vector.load %arg10[%c736_193, %c0_194] : memref<1120x40xf32, #tpu.memory_space<vmem>>, vector<32x40xf32>
    tpu.vector_store %arg10[%c736_193, %c0_194], %134 {strides = array<i32>} : memref<1120x40xf32, #tpu.memory_space<vmem>>, vector<32x40xf32>,
    %c0_195 = arith.constant 0 : index
    %c960_196 = arith.constant 960 : index
    %136 = vector.load %arg9[%c0_195, %c960_196] : memref<32x1400xf32, #tpu.memory_space<vmem>>, vector<32x40xf32>
    %c768_197 = arith.constant 768 : index
    %c0_198 = arith.constant 0 : index
    %137 = vector.load %arg10[%c768_197, %c0_198] : memref<1120x40xf32, #tpu.memory_space<vmem>>, vector<32x40xf32>
    tpu.vector_store %arg10[%c768_197, %c0_198], %136 {strides = array<i32>} : memref<1120x40xf32, #tpu.memory_space<vmem>>, vector<32x40xf32>,
    %c0_199 = arith.constant 0 : index
    %c1000_200 = arith.constant 1000 : index
    %138 = vector.load %arg9[%c0_199, %c1000_200] : memref<32x1400xf32, #tpu.memory_space<vmem>>, vector<32x40xf32>
    %c800_201 = arith.constant 800 : index
    %c0_202 = arith.constant 0 : index
    %139 = vector.load %arg10[%c800_201, %c0_202] : memref<1120x40xf32, #tpu.memory_space<vmem>>, vector<32x40xf32>
    tpu.vector_store %arg10[%c800_201, %c0_202], %138 {strides = array<i32>} : memref<1120x40xf32, #tpu.memory_space<vmem>>, vector<32x40xf32>,
    %c0_203 = arith.constant 0 : index
    %c1040_204 = arith.constant 1040 : index
    %140 = vector.load %arg9[%c0_203, %c1040_204] : memref<32x1400xf32, #tpu.memory_space<vmem>>, vector<32x40xf32>
    %c832_205 = arith.constant 832 : index
    %c0_206 = arith.constant 0 : index
    %141 = vector.load %arg10[%c832_205, %c0_206] : memref<1120x40xf32, #tpu.memory_space<vmem>>, vector<32x40xf32>
    tpu.vector_store %arg10[%c832_205, %c0_206], %140 {strides = array<i32>} : memref<1120x40xf32, #tpu.memory_space<vmem>>, vector<32x40xf32>,
    %c0_207 = arith.constant 0 : index
    %c1080_208 = arith.constant 1080 : index
    %142 = vector.load %arg9[%c0_207, %c1080_208] : memref<32x1400xf32, #tpu.memory_space<vmem>>, vector<32x40xf32>
    %c864_209 = arith.constant 864 : index
    %c0_210 = arith.constant 0 : index
    %143 = vector.load %arg10[%c864_209, %c0_210] : memref<1120x40xf32, #tpu.memory_space<vmem>>, vector<32x40xf32>
    tpu.vector_store %arg10[%c864_209, %c0_210], %142 {strides = array<i32>} : memref<1120x40xf32, #tpu.memory_space<vmem>>, vector<32x40xf32>,
    %c0_211 = arith.constant 0 : index
    %c1120_212 = arith.constant 1120 : index
    %144 = vector.load %arg9[%c0_211, %c1120_212] : memref<32x1400xf32, #tpu.memory_space<vmem>>, vector<32x40xf32>
    %c896_213 = arith.constant 896 : index
    %c0_214 = arith.constant 0 : index
    %145 = vector.load %arg10[%c896_213, %c0_214] : memref<1120x40xf32, #tpu.memory_space<vmem>>, vector<32x40xf32>
    tpu.vector_store %arg10[%c896_213, %c0_214], %144 {strides = array<i32>} : memref<1120x40xf32, #tpu.memory_space<vmem>>, vector<32x40xf32>,
    %c0_215 = arith.constant 0 : index
    %c1160_216 = arith.constant 1160 : index
    %146 = vector.load %arg9[%c0_215, %c1160_216] : memref<32x1400xf32, #tpu.memory_space<vmem>>, vector<32x40xf32>
    %c928_217 = arith.constant 928 : index
    %c0_218 = arith.constant 0 : index
    %147 = vector.load %arg10[%c928_217, %c0_218] : memref<1120x40xf32, #tpu.memory_space<vmem>>, vector<32x40xf32>
    tpu.vector_store %arg10[%c928_217, %c0_218], %146 {strides = array<i32>} : memref<1120x40xf32, #tpu.memory_space<vmem>>, vector<32x40xf32>,
    %c0_219 = arith.constant 0 : index
    %c1200_220 = arith.constant 1200 : index
    %148 = vector.load %arg9[%c0_219, %c1200_220] : memref<32x1400xf32, #tpu.memory_space<vmem>>, vector<32x40xf32>
    %c960_221 = arith.constant 960 : index
    %c0_222 = arith.constant 0 : index
    %149 = vector.load %arg10[%c960_221, %c0_222] : memref<1120x40xf32, #tpu.memory_space<vmem>>, vector<32x40xf32>
    tpu.vector_store %arg10[%c960_221, %c0_222], %148 {strides = array<i32>} : memref<1120x40xf32, #tpu.memory_space<vmem>>, vector<32x40xf32>,
    %c0_223 = arith.constant 0 : index
    %c1240_224 = arith.constant 1240 : index
    %150 = vector.load %arg9[%c0_223, %c1240_224] : memref<32x1400xf32, #tpu.memory_space<vmem>>, vector<32x40xf32>
    %c992_225 = arith.constant 992 : index
    %c0_226 = arith.constant 0 : index
    %151 = vector.load %arg10[%c992_225, %c0_226] : memref<1120x40xf32, #tpu.memory_space<vmem>>, vector<32x40xf32>
    tpu.vector_store %arg10[%c992_225, %c0_226], %150 {strides = array<i32>} : memref<1120x40xf32, #tpu.memory_space<vmem>>, vector<32x40xf32>,
    %c0_227 = arith.constant 0 : index
    %c1280_228 = arith.constant 1280 : index
    %152 = vector.load %arg9[%c0_227, %c1280_228] : memref<32x1400xf32, #tpu.memory_space<vmem>>, vector<32x40xf32>
    %c1024_229 = arith.constant 1024 : index
    %c0_230 = arith.constant 0 : index
    %153 = vector.load %arg10[%c1024_229, %c0_230] : memref<1120x40xf32, #tpu.memory_space<vmem>>, vector<32x40xf32>
    tpu.vector_store %arg10[%c1024_229, %c0_230], %152 {strides = array<i32>} : memref<1120x40xf32, #tpu.memory_space<vmem>>, vector<32x40xf32>,
    %c0_231 = arith.constant 0 : index
    %c1320_232 = arith.constant 1320 : index
    %154 = vector.load %arg9[%c0_231, %c1320_232] : memref<32x1400xf32, #tpu.memory_space<vmem>>, vector<32x40xf32>
    %c1056_233 = arith.constant 1056 : index
    %c0_234 = arith.constant 0 : index
    %155 = vector.load %arg10[%c1056_233, %c0_234] : memref<1120x40xf32, #tpu.memory_space<vmem>>, vector<32x40xf32>
    tpu.vector_store %arg10[%c1056_233, %c0_234], %154 {strides = array<i32>} : memref<1120x40xf32, #tpu.memory_space<vmem>>, vector<32x40xf32>,
    %c0_235 = arith.constant 0 : index
    %c1360_236 = arith.constant 1360 : index
    %156 = vector.load %arg9[%c0_235, %c1360_236] : memref<32x1400xf32, #tpu.memory_space<vmem>>, vector<32x40xf32>
    %c1088_237 = arith.constant 1088 : index
    %c0_238 = arith.constant 0 : index
    %157 = vector.load %arg10[%c1088_237, %c0_238] : memref<1120x40xf32, #tpu.memory_space<vmem>>, vector<32x40xf32>
    tpu.vector_store %arg10[%c1088_237, %c0_238], %156 {strides = array<i32>} : memref<1120x40xf32, #tpu.memory_space<vmem>>, vector<32x40xf32>,
    %c0_239 = arith.constant 0 : index
    %c0_240 = arith.constant 0 : index
    %158 = vector.load %arg10[%c0_239, %c0_240] : memref<1120x40xf32, #tpu.memory_space<vmem>>, vector<1120x40xf32>
    %cst_241 = arith.constant dense<0.000000e+00> : vector<32x40xf32>
    %159 = tpu.matmul %0, %158, %cst_241 {dimension_numbers = #tpu.dot_dimension_numbers<[1], [0], [0], [1], [0, 0, 1, 1], [], []>} : vector<32x1120xf32>, vector<1120x40xf32>, vector<32x40xf32> -> vector<32x40xf32>
    %c0_242 = arith.constant 0 : index
    %c0_243 = arith.constant 0 : index
    %160 = vector.load %arg6[%c0_242, %c0_243] : memref<40x40xf32, #tpu.memory_space<vmem>>, vector<40x40xf32>
    %cst_244 = arith.constant dense<0.000000e+00> : vector<32x40xf32>
    %161 = tpu.matmul %84, %160, %cst_244 {dimension_numbers = #tpu.dot_dimension_numbers<[1], [0], [0], [1], [0, 0, 1, 1], [], []>} : vector<32x40xf32>, vector<40x40xf32>, vector<32x40xf32> -> vector<32x40xf32>
    %162 = arith.addf %159, %161 : vector<32x40xf32>
    %c0_245 = arith.constant 0 : index
    %c0_246 = arith.constant 0 : index
    %163 = vector.load %arg7[%c0_245, %c0_246] : memref<1x40xf32, #tpu.memory_space<vmem>>, vector<1x40xf32>
    %164 = vector.broadcast %163 : vector<1x40xf32> to vector<32x40xf32>
    %165 = arith.addf %162, %164 : vector<32x40xf32>
    %c0_247 = arith.constant 0 : index
    %c0_248 = arith.constant 0 : index
    %166 = vector.load %arg8[%c0_247, %c0_248] : memref<32x40xf32, #tpu.memory_space<vmem>>, vector<32x40xf32>
    tpu.vector_store %arg8[%c0_247, %c0_248], %165 {strides = array<i32>} : memref<32x40xf32, #tpu.memory_space<vmem>>, vector<32x40xf32>,
    return
  }
}

</mosaic_0001>

<bundles_post_ra>
// kernel: rgcn_encoder_forward.1
= control target key start
LH: loop header
LB: loop body
LE: loop exit
PB: predicated region body
PF: predicated region fallthrough
CT: control target
= control target key end

     0   :  { %13 = vsyncpa [#allocation5], 0  ;;  %s7554_s0 = inlined_call_operand.hbm [shape: f32[32,1120], index: 0, kind: input, shape index: {}]   ;;  %s7555_s1 = inlined_call_operand.hbm [shape: f32[32,40], index: 1, kind: input, shape index: {}]   ;;  %s7556_s2 = inlined_call_operand.hbm [shape: f32[40,1400], index: 2, kind: input, shape index: {}]   ;;  %s7557_s3 = inlined_call_operand.hbm [shape: f32[40,40], index: 3, kind: input, shape index: {}]   ;;  %s7558_s4 = inlined_call_operand.vmem [shape: f32[1,40], index: 4, kind: input, shape index: {}]   ;;  %s7559_s5 = inlined_call_operand.hbm [shape: f32[40,1400], index: 5, kind: input, shape index: {}]   ;;  %s7560_s6 = inlined_call_operand.hbm [shape: f32[40,40], index: 6, kind: input, shape index: {}]   ;;  %s7561_s7 = inlined_call_operand.vmem [shape: f32[1,40], index: 7, kind: input, shape index: {}]   ;;  %s7562_s8 = inlined_call_operand.hbm [shape: f32[32,40], index: 8, kind: output, shape index: {}]  }
   0x1   :  { %14 = vsyncpa [#allocation8], 0 }
   0x2   :  { %15 = vsyncpa [#allocation11], 0 }
   0x3   :  { %16 = vsyncpa [#allocation14], 0 }
   0x4   :  { %17 = vsyncpa [#allocation6], 0  ;;  %s6009_s27 = smov [#allocation7]   ;;  %s5845_s9 = scalar_lea.hbm %s7555_s1, 512 }
   0x5   :  { %s35_s28 = sshll.u32 %s6009_s27, 4  ;;  %p5846_p0 = scmp.ne.s32.totalorder %s7555_s1, %s5845_s9  ;;  %s36_s28 = int_to_ptr.vmem [resolvable:$true] %s35_s28 }
   0x6   :  { %p5849_p1 = scmp.lt.u32.totalorder %s5845_s9, %s7555_s1 }
   0x8   :  { %p5851_p2 = pnand %p5849_p1, %p5846_p0 }
   0xa   :  { %5854 = shalt.err (!%p5851_p2)
}
   0xb   :  { %s5855_s14 = scalar_lea.vmem %s36_s28, 512  ;;  %p5860_p4 = scmp.lt.s32.totalorder %s36_s28, %s36_s28 }
   0xc   :  { %p5856_p3 = scmp.ne.s32.totalorder %s36_s28, %s5855_s14  ;;  %p5861_p5 = scmp.lt.s32.totalorder %s5855_s14, %s5855_s14 }
   0xe   :  { %p5862_p6 = por %p5861_p5, %p5860_p4 }
  0x10   :  { %p5863_p7 = pnand %p5862_p6, %p5856_p3 }
  0x12   :  { %5866 = shalt.err (!%p5863_p7)
}
  0x13   :  { %s6010_s15 = smov 128   ;;  %s6011_s16 = smov 8  }
  0x14   :  { %41 = dma.hbm_to_vmem [thread:$0]  %s7555_s1, 512, %s36_s28, [#allocation8], %s6010_s15, %s6010_s15, %s6011_s16  }
  0x15   :  { %s6012_s19 = smov [#allocation10]   ;;  %s6013_s21 = smov [#allocation4]  }
  0x16   :  { %s59_s20 = sshll.u32 %s6012_s19, 4  ;;  %s23_s22 = sshll.u32 %s6013_s21, 4  ;;  %s60_s20 = int_to_ptr.vmem [resolvable:$true] %s59_s20  ;;  %s24_s22 = int_to_ptr.vmem [resolvable:$true] %s23_s22 }
  0x17   :  { %s5867_s25 = scalar_lea.hbm %s7557_s3, 640 }
  0x18   :  { %p5868_p8 = scmp.ne.s32.totalorder %s7557_s3, %s5867_s25  ;;  %p5871_p9 = scmp.lt.u32.totalorder %s5867_s25, %s7557_s3 }
  0x1a   :  { %p5873_p10 = pnand %p5871_p9, %p5868_p8 }
  0x1c   :  { %5876 = shalt.err (!%p5873_p10)
}
  0x1d   :  { %s5877_s1 = scalar_lea.vmem %s60_s20, 640  ;;  %p5882_p12 = scmp.lt.s32.totalorder %s60_s20, %s60_s20 }
  0x1e   :  { %p5878_p11 = scmp.ne.s32.totalorder %s60_s20, %s5877_s1  ;;  %p5883_p13 = scmp.lt.s32.totalorder %s5877_s1, %s5877_s1 }
  0x20   :  { %p5884_p0 = por %p5883_p13, %p5882_p12 }
  0x22   :  { %p5885_p1 = pnand %p5884_p0, %p5878_p11 }
  0x24   :  { %5888 = shalt.err (!%p5885_p1)
}
  0x25   :  { %65 = dma.hbm_to_vmem [thread:$0]  %s7557_s3, 640, %s60_s20, [#allocation11], %s6010_s15, %s6010_s15, %s6011_s16  }
  0x26   :  { %s5889_s12 = scalar_lea.hbm %s7554_s0, 4608 }
  0x27   :  { %p5890_p2 = scmp.ne.s32.totalorder %s7554_s0, %s5889_s12  ;;  %p5893_p3 = scmp.lt.u32.totalorder %s5889_s12, %s7554_s0 }
  0x29   :  { %p5895_p4 = pnand %p5893_p3, %p5890_p2 }
  0x2b   :  { %5898 = shalt.err (!%p5895_p4)
}
  0x2c   :  { %s5899_s19 = scalar_lea.vmem %s24_s22, 4608  ;;  %p5904_p6 = scmp.lt.s32.totalorder %s24_s22, %s24_s22 }
  0x2d   :  { %p5900_p5 = scmp.ne.s32.totalorder %s24_s22, %s5899_s19  ;;  %p5905_p7 = scmp.lt.s32.totalorder %s5899_s19, %s5899_s19 }
  0x2f   :  { %p5906_p8 = por %p5905_p7, %p5904_p6 }
  0x31   :  { %p5907_p9 = pnand %p5906_p8, %p5900_p5 }
  0x33   :  { %5910 = shalt.err (!%p5907_p9)
}
  0x34   :  { %s6014_s3 = smov 1152   ;;  %s6015_s20 = smov 72  }
  0x35   :  { %29 = dma.hbm_to_vmem [thread:$0]  %s7554_s0, 4608, %s24_s22, [#allocation5], %s6014_s3, %s6014_s3, %s6015_s20  }
  0x36   :  { %s6016_s24 = smov [#allocation9]   ;;  %s5911_s29 = scalar_lea.hbm %s7556_s2, 7040 }
  0x37   :  { %s47_s25 = sshll.u32 %s6016_s24, 4  ;;  %p5912_p10 = scmp.ne.s32.totalorder %s7556_s2, %s5911_s29  ;;  %s48_s25 = int_to_ptr.vmem [resolvable:$true] %s47_s25 }
  0x38   :  { %p5915_p11 = scmp.lt.u32.totalorder %s5911_s29, %s7556_s2 }
  0x3a   :  { %p5917_p12 = pnand %p5915_p11, %p5912_p10 }
  0x3c   :  { %5920 = shalt.err (!%p5917_p12)
}
  0x3d   :  { %s5921_s10 = scalar_lea.vmem %s48_s25, 7040  ;;  %p5926_p0 = scmp.lt.s32.totalorder %s48_s25, %s48_s25 }
  0x3e   :  { %p5922_p13 = scmp.ne.s32.totalorder %s48_s25, %s5921_s10  ;;  %p5927_p1 = scmp.lt.s32.totalorder %s5921_s10, %s5921_s10 }
  0x40   :  { %p5928_p2 = por %p5927_p1, %p5926_p0 }
  0x42   :  { %p5929_p3 = pnand %p5928_p2, %p5922_p13 }
  0x44   :  { %5932 = shalt.err (!%p5929_p3)
}
  0x45   :  { %s6017_s0 = smov 1408   ;;  %s6018_s22 = smov 88  }
  0x46   :  { %53 = dma.hbm_to_vmem [thread:$0]  %s7556_s2, 7040, %s48_s25, [#allocation8], %s6017_s0, %s6017_s0, %s6018_s22  }
  0x47   :  { %s6019_s13 = smov [#allocation12]   ;;  %s6020_s17 = smov [#allocation13]  }
  0x48   :  { %s73_s14 = sshll.u32 %s6019_s13, 4  ;;  %s85_s18 = sshll.u32 %s6020_s17, 4  ;;  %s74_s14 = int_to_ptr.vmem [resolvable:$true] %s73_s14  ;;  %s6136_s18 = int_to_ptr.vmem [resolvable:$true] %s85_s18 }
  0x49   :  { %s5933_s21 = scalar_lea.hbm %s7559_s5, 7040 }
  0x4a   :  { %p5934_p4 = scmp.ne.s32.totalorder %s7559_s5, %s5933_s21  ;;  %p5937_p5 = scmp.lt.u32.totalorder %s5933_s21, %s7559_s5 }
  0x4c   :  { %p5939_p6 = pnand %p5937_p5, %p5934_p4 }
  0x4e   :  { %5942 = shalt.err (!%p5939_p6)
}
  0x4f   :  { %s5943_s2 = scalar_lea.vmem %s74_s14, 7040  ;;  %p5948_p8 = scmp.lt.s32.totalorder %s74_s14, %s74_s14 }
  0x50   :  { %p5944_p7 = scmp.ne.s32.totalorder %s74_s14, %s5943_s2  ;;  %p5949_p9 = scmp.lt.s32.totalorder %s5943_s2, %s5943_s2 }
  0x52   :  { %p5950_p10 = por %p5949_p9, %p5948_p8 }
  0x54   :  { %p5951_p11 = pnand %p5950_p10, %p5944_p7 }
  0x56   :  { %5954 = shalt.err (!%p5951_p11)
}
  0x57   :  { %79 = dma.hbm_to_vmem [thread:$0]  %s7559_s5, 7040, %s74_s14, [#allocation11], %s6017_s0, %s6017_s0, %s6018_s22  }
  0x58   :  { %s5955_s28 = scalar_lea.hbm %s7560_s6, 640 }
  0x59   :  { %p5956_p12 = scmp.ne.s32.totalorder %s7560_s6, %s5955_s28  ;;  %p5959_p13 = scmp.lt.u32.totalorder %s5955_s28, %s7560_s6 }
  0x5b   :  { %p5961_p0 = pnand %p5959_p13, %p5956_p12 }
  0x5d   :  { %5964 = shalt.err (!%p5961_p0)
}
  0x5e   :  { %s5965_s13 = scalar_lea.vmem %s6136_s18, 640  ;;  %p5970_p2 = scmp.lt.s32.totalorder %s6136_s18, %s6136_s18 }
  0x5f   :  { %p5966_p1 = scmp.ne.s32.totalorder %s6136_s18, %s5965_s13  ;;  %p5971_p3 = scmp.lt.s32.totalorder %s5965_s13, %s5965_s13 }
  0x61   :  { %p5972_p4 = por %p5971_p3, %p5970_p2 }
  0x63   :  { %p5973_p5 = pnand %p5972_p4, %p5966_p1 }
  0x65   :  { %5976 = shalt.err (!%p5973_p5)
}
  0x66   :  { %91 = dma.hbm_to_vmem [thread:$0]  %s7560_s6, 640, %s6136_s18, [#allocation14], %s6010_s15, %s6010_s15, %s6011_s16  }
  0x67   :  { %5999 = dma.done.wait [#allocation5], 4608  }
  0x68   :  { %6000 = vsyncadd [#allocation5], 4294962688 }
  0x69   :  { %6001 = dma.done.wait [#allocation8], 7552  }
  0x6a   :  { %6002 = vsyncadd [#allocation8], 4294959744 }
  0x6b   :  { %6003 = dma.done.wait [#allocation11], 7680  }
  0x6c   :  { %6004 = vsyncadd [#allocation11], 4294959616 }
  0x6d   :  { %6005 = dma.done.wait [#allocation14], 640  }
  0x6e   :  { %6006 = vsyncadd [#allocation14], 4294966656  ;;  %v6021_v0 = vmov 0.0   ;;  %v153_v1 = vld [vmem:[#allocation9 + $0x8] sm:$0xff]  ;;  %v164_v2 = vld [vmem:[#allocation9 + $0x60] sm:$0xff]  ;;  %vm207_vm0 = vcmask 326656  }
  0x6f   :  { %284 = vmatprep.mubr.f32.mxu1 %v6021_v0  ;;  %462 = vmatprep.mubr.f32.mxu0 %v6021_v0  ;;  %v157_v3 = vld [vmem:[#allocation9 + $0x28] sm:$0xff]  ;;  %v5327_v4 = vpack.c.bf16 %v164_v2, %v153_v1  ;;  %v168_v5 = vld [vmem:[#allocation9 + $0x80] sm:$0xff]  ;;  %v163_v7 = vld [vmem:[#allocation9 + $0x58] sm:$0xff]  ;;  %s6022_s6 = smov 32   ;;  %s6023_s14 = smov 120   ;;  %vm883_vm1 = vcmask 64512  }
  0x70   :  { %v152_v6 = vld [vmem:[#allocation9] sm:$0xff]  ;;  %v5343_v8 = vpack.c.bf16 %v168_v5, %v157_v3  ;;  %v167_v11 = vld [vmem:[#allocation9 + $0x78] sm:$0xff]  ;;  %v186_v14 = vld [vmem:[#allocation9 + $0x110] sm:$0xff]  ;;  %s6024_s17 = smov 80   ;;  %s6025_s18 = smov 40   ;;  %vm760_vm2 = vcmask 982016  }
  0x71   :  { %v5329_v9 = vpack.c.bf16 %v163_v7, %v152_v6  ;;  %v156_v10 = vld [vmem:[#allocation9 + $0x20] sm:$0xff]  ;;  %v175_v12 = vld [vmem:[#allocation9 + $0xb8] sm:$0xff]  ;;  %5328 = vmatprep.subr.bf16.mxu1 %v5327_v4  ;;  %v190_v16 = vld [vmem:[#allocation9 + $0x130] sm:$0xff]  ;;  %s6026_s19 = smov 48   ;;  %s6027_s3 = smov 96   ;;  %vm976_vm3 = vcmask 130048  }
  0x72   :  { %v5345_v13 = vpack.c.bf16 %v167_v11, %v156_v10  ;;  %v179_v15 = vld [vmem:[#allocation9 + $0xd8] sm:$0xff]  ;;  %5344 = vmatprep.subr.bf16.mxu0 %v5343_v8  ;;  %v5331_v17 = vpack.c.bf16 %v186_v14, %v175_v12  ;;  %v174_v19 = vld [vmem:[#allocation9 + $0xb0] sm:$0xff]  ;;  %v185_v20 = vld [vmem:[#allocation9 + $0x108] sm:$0xff]  ;;  %s6028_s21 = smov 56   ;;  %s6029_s23 = smov 16   ;;  %vm1069_vm4 = vcmask 195584  }
  0x73   :  { %5330 = vmatpush1.bf16.msra.mxu1 %v5329_v9  ;;  %v5347_v18 = vpack.c.bf16 %v190_v16, %v179_v15  ;;  %v178_v21 = vld [vmem:[#allocation9 + $0xd0] sm:$0xff]  ;;  %v5333_v22 = vpack.c.bf16 %v185_v20, %v174_v19  ;;  %v189_v23 = vld [vmem:[#allocation9 + $0x128] sm:$0xff]  ;;  %v196_v27 = vld [vmem:[#allocation9 + $0x160] sm:$0xff]  ;;  %s6030_s24 = smov 24   ;;  %s6031_s26 = smov 64   ;;  %vm1162_vm5 = vcmask 261120  }
  0x74   :  { %5346 = vmatpush1.bf16.msra.mxu0 %v5345_v13  ;;  %5332 = vmatprep.subr.bf16.mxu1 %v5331_v17  ;;  %v5349_v24 = vpack.c.bf16 %v189_v23, %v178_v21  ;;  %v197_v25 = vld [vmem:[#allocation9 + $0x168] sm:$0xff]  ;;  %v200_v28 = vld [vmem:[#allocation9 + $0x180] sm:$0xff]  ;;  %v155_v29 = vld [vmem:[#allocation9 + $0x18] sm:$0xff]  ;;  %s6032_s27 = smov 104   ;;  %s6033_s2 = smov 112   ;;  %vm1981_vm6 = vcmask 785408  }
  0x75   :  { %5348 = vmatprep.subr.bf16.mxu0 %v5347_v18  ;;  %v201_v26 = vld [vmem:[#allocation9 + $0x188] sm:$0xff]  ;;  %v166_v30 = vld [vmem:[#allocation9 + $0x70] sm:$0xff]  ;;  %v172_v34 = vld [vmem:[#allocation9 + $0xa0] sm:$0xff] }
  0x76   :  { %v154_v31 = vld [vmem:[#allocation9 + $0x10] sm:$0xff]  ;;  %v165_v32 = vld [vmem:[#allocation9 + $0x68] sm:$0xff]  ;;  %v6173_v35 = vld [vmem:[#allocation7] sm:$0xff]  ;;  %v5335_v38 = vpack.c.bf16 %v166_v30, %v155_v29 }
  0x77   :  { %5334 = vmatpush1.bf16.msra.mxu1 %v5333_v22  ;;  %v161_v33 = vld [vmem:[#allocation9 + $0x48] sm:$0xff]  ;;  %v160_v36 = vld [vmem:[#allocation9 + $0x40] sm:$0xff]  ;;  %v171_v37 = vld [vmem:[#allocation9 + $0x98] sm:$0xff]  ;;  %v5337_v39 = vpack.c.bf16 %v165_v32, %v154_v31 }
  0x78   :  { %5350 = vmatpush1.bf16.msra.mxu0 %v5349_v24  ;;  %228 = vmatprep.subr.mxu1 %v197_v25  ;;  %v5359_v40 = vpack.c.bf16 %v172_v34, %v161_v33  ;;  %v177_v41 = vld [vmem:[#allocation9 + $0xc8] sm:$0xff]  ;;  %v188_v42 = vld [vmem:[#allocation9 + $0x120] sm:$0xff]  ;;  %v5361_v44 = vpack.c.bf16 %v171_v37, %v160_v36  ;;  %v187_v45 = vld [vmem:[#allocation9 + $0x118] sm:$0xff] }
  0x79   :  { %406 = vmatprep.subr.mxu0 %v201_v26  ;;  %v176_v43 = vld [vmem:[#allocation9 + $0xc0] sm:$0xff]  ;;  %v183_v46 = vld [vmem:[#allocation9 + $0xf8] sm:$0xff]  ;;  %v194_v47 = vld [vmem:[#allocation9 + $0x150] sm:$0xff]  ;;  %v5339_v49 = vpack.c.bf16 %v188_v42, %v177_v41 }
  0x7a   :  { %v6180_v48 = vld [vmem:[#allocation7 + $0x8] sm:$0xff]  ;;  %v5341_v50 = vpack.c.bf16 %v187_v45, %v176_v43  ;;  %v5363_v51 = vpack.c.bf16 %v194_v47, %v183_v46  ;;  %v182_v52 = vld [vmem:[#allocation9 + $0xf0] sm:$0xff]  ;;  %v199_v54 = vld [vmem:[#allocation9 + $0x178] sm:$0xff] }
  0x7b   :  { %229 = vmatpush1.msra.mxu1 %v196_v27  ;;  %v193_v53 = vld [vmem:[#allocation9 + $0x148] sm:$0xff]  ;;  %v159_v55 = vld [vmem:[#allocation9 + $0x38] sm:$0xff]  ;;  %v170_v56 = vld [vmem:[#allocation9 + $0x90] sm:$0xff] }
  0x7c   :  { %407 = vmatpush1.msra.mxu0 %v200_v28  ;;  %4717 = vmatmul.mubr.msk.f32.vlgmr.msra.gmra.mrb[0].mxu1 %vm207_vm0, %v6173_v35  ;;  %v6189_v57 = vld [vmem:[#allocation7 + $0x10] sm:$0xff]  ;;  %v5365_v58 = vpack.c.bf16 %v193_v53, %v182_v52  ;;  %v205_v60 = vld [vmem:[#allocation9 + $0x1a8] sm:$0xff]  ;;  %v5351_v61 = vpack.c.bf16 %v170_v56, %v159_v55  ;;  %v6197_v62 = vld [vmem:[#allocation7 + $0x18] sm:$0xff] }
  0x7d   :  { %4725 = vmatmul.mubr.msk.f32.vlgmr.msra.gmra.mrb[0].mxu0 %vm207_vm0, %v6173_v35  ;;  %290 = vmatprep.mubr.f32.mxu1 %v6021_v0  ;;  %v198_v59 = vld [vmem:[#allocation9 + $0x170] sm:$0xff]  ;;  %v204_v63 = vld [vmem:[#allocation9 + $0x1a0] sm:$0xff]  ;;  %v169_v2 = vld [vmem:[#allocation9 + $0x88] sm:$0xff] }
  0x7e   :  { %468 = vmatprep.mubr.f32.mxu0 %v6021_v0  ;;  %5336 = vmatprep.subr.bf16.mxu1 %v5335_v38  ;;  %v158_v1 = vld [vmem:[#allocation9 + $0x30] sm:$0xff]  ;;  %v181_v4 = vld [vmem:[#allocation9 + $0xe8] sm:$0xff]  ;;  %v192_v5 = vld [vmem:[#allocation9 + $0x140] sm:$0xff] }
  0x7f   :  { %5338 = vmatpush1.bf16.msra.mxu1 %v5337_v39  ;;  %5360 = vmatprep.subr.bf16.mxu0 %v5359_v40  ;;  %v5353_v3 = vpack.c.bf16 %v169_v2, %v158_v1  ;;  %v5355_v6 = vpack.c.bf16 %v192_v5, %v181_v4  ;;  %v180_v7 = vld [vmem:[#allocation9 + $0xe0] sm:$0xff]  ;;  %v191_v8 = vld [vmem:[#allocation9 + $0x138] sm:$0xff]  ;;  %v202_v11 = vld [vmem:[#allocation9 + $0x190] sm:$0xff] }
  0x80   :  { %4718 = vmatmul.mubr.msk.f32.gmra.mrb[2].mxu1 %vm207_vm0, %v6180_v48  ;;  %5362 = vmatpush1.bf16.msra.mxu0 %v5361_v44  ;;  %v5357_v9 = vpack.c.bf16 %v191_v8, %v180_v7  ;;  %v203_v10 = vld [vmem:[#allocation9 + $0x198] sm:$0xff]  ;;  %v162_v12 = vld [vmem:[#allocation9 + $0x50] sm:$0xff]  ;;  %v173_v13 = vld [vmem:[#allocation9 + $0xa8] sm:$0xff] }
  0x81   :  { %4726 = vmatmul.mubr.msk.f32.gmra.mrb[2].mxu0 %vm207_vm0, %v6180_v48  ;;  %296 = vmatprep.mubr.f32.mxu1 %v6021_v0  ;;  %v5367_v14 = vpack.c.bf16 %v173_v13, %v162_v12  ;;  %v184_v15 = vld [vmem:[#allocation9 + $0x100] sm:$0xff]  ;;  %v195_v16 = vld [vmem:[#allocation9 + $0x158] sm:$0xff]  ;;  %v206_v18 = vld [vmem:[#allocation9 + $0x1b0] sm:$0xff] }
  0x82   :  { %474 = vmatprep.mubr.f32.mxu0 %v6021_v0  ;;  %5340 = vmatprep.subr.bf16.mxu1 %v5339_v49  ;;  %v5371_v17 = vpack.c.bf16 %v195_v16, %v184_v15  ;;  %v1892_v4 = vld [vmem:[#allocation10 + $0x8] sm:$0xff]  ;;  %v1895_v15 = vld [vmem:[#allocation10 + $0x20] sm:$0xff] }
  0x83   :  { %5342 = vmatpush1.bf16.msra.mxu1 %v5341_v50  ;;  %5364 = vmatprep.subr.bf16.mxu0 %v5363_v51 }
  0x84   :  { %4719 = vmatmul.mubr.msk.f32.gmra.mrb[4].mxu1 %vm207_vm0, %v6189_v57  ;;  %317 = vmatprep.subr.mxu1 %v199_v54 }
  0x85   :  { %4727 = vmatmul.mubr.msk.f32.gmra.mrb[4].mxu0 %vm207_vm0, %v6189_v57  ;;  %302 = vmatprep.mubr.f32.mxu1 %v6021_v0 }
  0x86   :  { %480 = vmatprep.mubr.f32.mxu0 %v6021_v0  ;;  %5366 = vmatpush1.bf16.msra.mxu0 %v5365_v58 }
  0x87   :  { %318 = vmatpush1.msra.mxu1 %v198_v59  ;;  %584 = vmatprep.subr.mxu0 %v205_v60 }
  0x88   :  { %4720 = vmatmul.mubr.msk.f32.gmra.mrb[6].mxu1 %vm207_vm0, %v6197_v62  ;;  %5352 = vmatprep.subr.bf16.mxu1 %v5351_v61 }
  0x89   :  { %4728 = vmatmul.mubr.msk.f32.gmra.mrb[6].mxu0 %vm207_vm0, %v6197_v62  ;;  %373 = vmatprep.mubr.f32.mxu1 %v6021_v0 }
  0x8a   :  { %585 = vmatpush1.msra.mxu0 %v204_v63  ;;  %640 = vmatprep.mubr.f32.mxu0 %v6021_v0 }
  0x8c   :  { %4721 = vmatmul.mubr.msk.f32.vlgmr.msra.gmra.mrb[8].mxu1 %vm207_vm0, %v6173_v35 }
  0x8d   :  { %4733 = vmatmul.mubr.msk.f32.vlgmr.msra.gmra.mrb[8].mxu0 %vm207_vm0, %v6173_v35  ;;  %379 = vmatprep.mubr.f32.mxu1 %v6021_v0 }
  0x8e   :  { %646 = vmatprep.mubr.f32.mxu0 %v6021_v0  ;;  %5354 = vmatpush1.bf16.msra.mxu1 %v5353_v3  ;;  %v1891_v3 = vld [vmem:[#allocation10] sm:$0xff] }
  0x8f   :  { %5356 = vmatprep.subr.bf16.mxu1 %v5355_v6  ;;  %v5375_v5 = vpack.c.bf16 %v1892_v4, %v1891_v3 }
  0x90   :  { %4722 = vmatmul.mubr.msk.f32.gmra.mrb[10].mxu1 %vm207_vm0, %v6180_v48 }
  0x91   :  { %4734 = vmatmul.mubr.msk.f32.gmra.mrb[10].mxu0 %vm207_vm0, %v6180_v48  ;;  %385 = vmatprep.mubr.f32.mxu1 %v6021_v0 }
  0x92   :  { %652 = vmatprep.mubr.f32.mxu0 %v6021_v0  ;;  %5358 = vmatpush1.bf16.msra.mxu1 %v5357_v9 }
  0x93   :  { %495 = vmatprep.subr.mxu1 %v203_v10  ;;  %v1893_v10 = vld [vmem:[#allocation10 + $0x10] sm:$0xff] }
  0x94   :  { %4723 = vmatmul.mubr.msk.f32.gmra.mrb[12].mxu1 %vm207_vm0, %v6189_v57 }
  0x95   :  { %4735 = vmatmul.mubr.msk.f32.gmra.mrb[12].mxu0 %vm207_vm0, %v6189_v57  ;;  %391 = vmatprep.mubr.f32.mxu1 %v6021_v0 }
  0x96   :  { %658 = vmatprep.mubr.f32.mxu0 %v6021_v0  ;;  %496 = vmatpush1.msra.mxu1 %v202_v11  ;;  %v1894_v11 = vld [vmem:[#allocation10 + $0x18] sm:$0xff] }
  0x97   :  { %5368 = vmatprep.subr.bf16.mxu1 %v5367_v14  ;;  %v5379_v12 = vpack.c.bf16 %v1894_v11, %v1893_v10 }
  0x98   :  { %4724 = vmatmul.mubr.msk.f32.gmra.mrb[14].mxu1 %vm207_vm0, %v6197_v62 }
  0x99   :  { %4736 = vmatmul.mubr.msk.f32.gmra.mrb[14].mxu0 %vm207_vm0, %v6197_v62  ;;  %551 = vmatprep.mubr.f32.mxu1 %v6021_v0 }
  0x9c   :  { %4729 = vmatmul.mubr.msk.f32.vlgmr.msra.gmra.mrb[16].mxu1 %vm207_vm0, %v6173_v35 }
  0x9d   :  { %557 = vmatprep.mubr.f32.mxu1 %v6021_v0  ;;  %5370 = vmatpush3.bf16.msra.mxu1 %v5367_v14 }
  0x9e   :  { %5372 = vmatprep.subr.bf16.mxu1 %v5371_v17 }
  0xa0   :  { %4730 = vmatmul.mubr.msk.f32.gmra.mrb[18].mxu1 %vm207_vm0, %v6180_v48 }
  0xa1   :  { %563 = vmatprep.mubr.f32.mxu1 %v6021_v0  ;;  %5374 = vmatpush3.bf16.msra.mxu1 %v5371_v17 }
  0xa2   :  { %5211 = vmatprep.subr.mxu1 %v206_v18 }
  0xa4   :  { %4731 = vmatmul.mubr.msk.f32.gmra.mrb[20].mxu1 %vm207_vm0, %v6189_v57 }
  0xa5   :  { %569 = vmatprep.mubr.f32.mxu1 %v6021_v0  ;;  %5212 = vmatpush3.msra.mxu1 %v206_v18 }
  0xa6   :  { %5376 = vmatprep.subr.bf16.mxu1 %v5375_v5 }
  0xa8   :  { %4732 = vmatmul.mubr.msk.f32.gmra.mrb[22].mxu1 %vm207_vm0, %v6197_v62 }
  0xa9   :  { %5213 = vmatprep.mubr.msk.f32.mxu1 %vm207_vm0, %v6173_v35 }
  0xac   :  { %5214 = vmatmul.mubr.msk.f32.vlgmr.msra.gmra.mrb[24].mxu1 %vm207_vm0, %v6180_v48 }
  0xad   :  { %5216 = vmatprep.mubr.msk.f32.mxu1 %vm207_vm0, %v6189_v57  ;;  %5378 = vmatpush3.bf16.msra.mxu1 %v5375_v5 }
  0xae   :  { %5380 = vmatprep.subr.bf16.mxu1 %v5379_v12 }
  0xb0   :  { %5217 = vmatmul.mubr.msk.f32.gmra.mrb[26].mxu1 %vm207_vm0, %v6197_v62 }
  0xb1   :  { %5229 = vmatprep.mubr.msk.f32.mxu1 %vm207_vm0, %v6173_v35  ;;  %5382 = vmatpush3.bf16.msra.mxu1 %v5379_v12 }
  0xb2   :  { %5227 = vmatprep.subr.mxu1 %v1895_v15 }
  0xb5   :  { %5228 = vmatpush3.msra.mxu1 %v1895_v15 }
  0xb6   :  { %5230 = vmatmul.mubr.msk.f32.vlgmr.msra.gmra.mrb[28].mxu1 %vm207_vm0, %v6180_v48 }
  0xb7   :  { %5232 = vmatprep.mubr.msk.f32.mxu1 %vm207_vm0, %v6189_v57 }
  0xba   :  { %5233 = vmatmul.mubr.msk.f32.gmra.mrb[30].mxu1 %vm207_vm0, %v6197_v62 }
 0x14f   :  { %v286_v19 = vpop.f32.mrb[0].mxu1 }
 0x150   :  { %799 = vst.msk [vmem:[#allocation3] sm:$0xff] %vm207_vm0, %v286_v19  ;;  %v464_v20 = vpop.f32.mrb[0].mxu0  ;;  %v288_v21 = vpop.f32.mrb[1].mxu1 }
 0x151   :  { %v6250_v22 = vpop.f32.mrb[1].mxu0  ;;  %1148 = vrot.lane.b32.xlu0 %v464_v20, %s6022_s6  ;;  %869 = vrot.lane.b32.xlu1 %v288_v21, %s6011_s16 }
 0x152   :  { %755 = vst [vmem:[#allocation2 + $0x28] sm:$0xff] %v6250_v22  ;;  %1251 = vst.msk [vmem:[#allocation3 + $0x200] sm:$0xff] %vm207_vm0, %v6250_v22 }
 0x153   :  { %v292_v23 = vpop.f32.mrb[2].mxu1 }
 0x154   :  { %800 = vst.msk [vmem:[#allocation3 + $0x8] sm:$0xff] %vm207_vm0, %v292_v23  ;;  %v470_v24 = vpop.f32.mrb[2].mxu0  ;;  %v294_v25 = vpop.f32.mrb[3].mxu1 }
 0x155   :  { %v472_v26 = vpop.f32.mrb[3].mxu0  ;;  %1183 = vrot.lane.b32.xlu0 %v464_v20, %s6023_s14  ;;  %1152 = vrot.lane.b32.xlu1 %v470_v24, %s6022_s6 }
 0x156   :  { %767 = vst [vmem:[#allocation2 + $0x80] sm:$0xff] %v472_v26  ;;  %1252 = vst.msk [vmem:[#allocation3 + $0x208] sm:$0xff] %vm207_vm0, %v472_v26 }
 0x157   :  { %v6261_v27 = vpop.f32.mrb[4].mxu1 }
 0x158   :  { %v476_v28 = vpop.f32.mrb[4].mxu0  ;;  %801 = vst.msk [vmem:[#allocation3 + $0x10] sm:$0xff] %vm207_vm0, %v6261_v27  ;;  %v6265_v29 = vpop.f32.mrb[5].mxu1 }
 0x159   :  { %1207 = vrot.lane.b32.xlu0 %v464_v20, %s6024_s17  ;;  %1185 = vrot.lane.b32.xlu1 %v470_v24, %s6023_s14  ;;  %v6269_v30 = vpop.f32.mrb[5].mxu0 }
 0x15a   :  { %778 = vst [vmem:[#allocation2 + $0xd8] sm:$0xff] %v6269_v30  ;;  %1253 = vst.msk [vmem:[#allocation3 + $0x210] sm:$0xff] %vm207_vm0, %v6269_v30 }
 0x15b   :  { %v6274_v31 = vpop.f32.mrb[6].mxu1 }
 0x15c   :  { %v482_v32 = vpop.f32.mrb[6].mxu0  ;;  %802 = vst.msk [vmem:[#allocation3 + $0x18] sm:$0xff] %vm207_vm0, %v6274_v31  ;;  %v6278_v33 = vpop.f32.mrb[7].mxu1 }
 0x15d   :  { %1231 = vrot.lane.b32.xlu0 %v464_v20, %s6025_s18  ;;  %1209 = vrot.lane.b32.xlu1 %v470_v24, %s6024_s17  ;;  %v484_v34 = vpop.f32.mrb[7].mxu0 }
 0x15e   :  { %789 = vst [vmem:[#allocation2 + $0x130] sm:$0xff] %v484_v34  ;;  %1254 = vst.msk [vmem:[#allocation3 + $0x218] sm:$0xff] %vm207_vm0, %v484_v34 }
 0x15f   :  { %v6283_v35 = vpop.f32.mrb[8].mxu1 }
 0x160   :  { %v6285_v36 = vpop.f32.mrb[9].mxu1  ;;  %v6287_v37 = vpop.f32.mrb[8].mxu0 }
 0x161   :  { %811 = vrot.lane.b32.xlu0 %v286_v19, %s6018_s22  ;;  %1233 = vrot.lane.b32.xlu1 %v470_v24, %s6025_s18  ;;  %v6291_v38 = vpop.f32.mrb[9].mxu0 }
 0x163   :  { %v6293_v39 = vpop.f32.mrb[10].mxu1 }
 0x164   :  { %v6295_v40 = vpop.f32.mrb[11].mxu1  ;;  %v6297_v41 = vpop.f32.mrb[10].mxu0 }
 0x165   :  { %835 = vrot.lane.b32.xlu0 %v286_v19, %s6026_s19  ;;  %813 = vrot.lane.b32.xlu1 %v292_v23, %s6018_s22  ;;  %v6301_v42 = vpop.f32.mrb[11].mxu0 }
 0x167   :  { %v6305_v43 = vpop.f32.mrb[12].mxu1 }
 0x168   :  { %v6309_v44 = vpop.f32.mrb[13].mxu1  ;;  %v6315_v45 = vpop.f32.mrb[12].mxu0 }
 0x169   :  { %867 = vrot.lane.b32.xlu0 %v286_v19, %s6011_s16  ;;  %837 = vrot.lane.b32.xlu1 %v292_v23, %s6026_s19  ;;  %v6317_v46 = vpop.f32.mrb[13].mxu0 }
 0x16b   :  { %v6325_v47 = vpop.f32.mrb[14].mxu1 }
 0x16c   :  { %v6329_v49 = vpop.f32.mrb[15].mxu1  ;;  %v6334_v50 = vpop.f32.mrb[14].mxu0 }
 0x16d   :  { %904 = vrot.lane.b32.xlu0 %v288_v21, %s6027_s3  ;;  %906 = vrot.lane.b32.xlu1 %v294_v25, %s6027_s3  ;;  %v6338_v51 = vpop.f32.mrb[15].mxu0 }
 0x16f   :  { %v6370_v52 = vpop.f32.mrb[16].mxu1 }
 0x170   :  { %v6372_v53 = vpop.f32.mrb[17].mxu1 }
 0x171   :  { %928 = vrot.lane.b32.xlu0 %v288_v21, %s6028_s21  ;;  %930 = vrot.lane.b32.xlu1 %v294_v25, %s6028_s21 }
 0x173   :  { %v6386_v54 = vpop.f32.mrb[18].mxu1 }
 0x174   :  { %v6388_v55 = vpop.f32.mrb[19].mxu1 }
 0x175   :  { %960 = vrot.lane.b32.xlu0 %v288_v21, %s6029_s23  ;;  %873 = vrot.lane.b32.xlu1 %v294_v25, %s6011_s16 }
 0x177   :  { %v6400_v59 = vpop.f32.mrb[20].mxu1 }
 0x178   :  { %v6406_v60 = vpop.f32.mrb[21].mxu1 }
 0x179   :  { %1263 = vrot.lane.b32.xlu0 %v6250_v22, %s6018_s22  ;;  %1265 = vrot.lane.b32.xlu1 %v472_v26, %s6018_s22 }
 0x17b   :  { %v6421_v6 = vpop.f32.mrb[22].mxu1 }
 0x17c   :  { %v6423_v7 = vpop.f32.mrb[23].mxu1 }
 0x17d   :  { %1287 = vrot.lane.b32.xlu0 %v6250_v22, %s6026_s19  ;;  %1289 = vrot.lane.b32.xlu1 %v472_v26, %s6026_s19  ;;  %v1752_v22 = vld [vmem:[#allocation3 + $0x8] sm:$0xff] }
 0x181   :  { %871 = vrot.lane.b32.xlu0 %v292_v23, %s6011_s16  ;;  %1156 = vrot.lane.b32.xlu1 %v476_v28, %s6022_s6 }
 0x185   :  { %964 = vrot.lane.b32.xlu0 %v294_v25, %s6029_s23  ;;  %877 = vrot.lane.b32.xlu1 %v6265_v29, %s6011_s16 }
 0x189   :  { %1187 = vrot.lane.b32.xlu0 %v476_v28, %s6023_s14  ;;  %1160 = vrot.lane.b32.xlu1 %v482_v32, %s6022_s6 }
 0x18d   :  { %1211 = vrot.lane.b32.xlu0 %v476_v28, %s6024_s17  ;;  %1189 = vrot.lane.b32.xlu1 %v482_v32, %s6023_s14 }
 0x191   :  { %1235 = vrot.lane.b32.xlu0 %v476_v28, %s6025_s18  ;;  %1213 = vrot.lane.b32.xlu1 %v482_v32, %s6024_s17  ;;  %v1751_v28 = vld [vmem:[#allocation3] sm:$0xff] }
 0x195   :  { %815 = vrot.lane.b32.xlu0 %v6261_v27, %s6018_s22  ;;  %1237 = vrot.lane.b32.xlu1 %v482_v32, %s6025_s18 }
 0x199   :  { %839 = vrot.lane.b32.xlu0 %v6261_v27, %s6026_s19  ;;  %817 = vrot.lane.b32.xlu1 %v6274_v31, %s6018_s22 }
 0x19d   :  { %875 = vrot.lane.b32.xlu0 %v6261_v27, %s6011_s16  ;;  %841 = vrot.lane.b32.xlu1 %v6274_v31, %s6026_s19 }
 0x1a1   :  { %908 = vrot.lane.b32.xlu0 %v6265_v29, %s6027_s3  ;;  %910 = vrot.lane.b32.xlu1 %v6278_v33, %s6027_s3 }
 0x1a5   :  { %932 = vrot.lane.b32.xlu0 %v6265_v29, %s6028_s21  ;;  %934 = vrot.lane.b32.xlu1 %v6278_v33, %s6028_s21 }
 0x1a9   :  { %968 = vrot.lane.b32.xlu0 %v6265_v29, %s6029_s23  ;;  %881 = vrot.lane.b32.xlu1 %v6278_v33, %s6011_s16  ;;  %v5215_v29 = vpop.f32.mrb[24].mxu1 }
 0x1aa   :  { %772 = vst.msk [vmem:[#allocation2 + $0xa8] sm:$0xff] %vm760_vm2, %v5215_v29 }
 0x1ad   :  { %1267 = vrot.lane.b32.xlu0 %v6269_v30, %s6018_s22  ;;  %1269 = vrot.lane.b32.xlu1 %v484_v34, %s6018_s22 }
 0x1b1   :  { %1291 = vrot.lane.b32.xlu0 %v6269_v30, %s6026_s19  ;;  %962 = vrot.lane.b32.xlu1 %v6283_v35, %s6029_s23  ;;  %v5385_v30 = vpack.c.bf16 %v1752_v22, %v1751_v28 }
 0x1b5   :  { %879 = vrot.lane.b32.xlu0 %v6274_v31, %s6011_s16  ;;  %1505 = vrot.lane.b32.xlu1 %v6287_v37, %s6030_s24  ;;  %v731_v31 = vpop.f32.mrb[25].mxu1 }
 0x1b6   :  { %761 = vst.msk [vmem:[#allocation2 + $0x50] sm:$0xff] %vm760_vm2, %v731_v31 }
 0x1b9   :  { %972 = vrot.lane.b32.xlu0 %v6278_v33, %s6029_s23  ;;  %1055 = vrot.lane.b32.xlu1 %v6285_v36, %s6030_s24 }
 0x1bd   :  { %1021 = vrot.lane.b32.xlu0 %v6283_v35, %s6031_s26  ;;  %1597 = vrot.lane.b32.xlu1 %v6291_v38, %s6022_s6 }
 0x1c1   :  { %1053 = vrot.lane.b32.xlu0 %v6283_v35, %s6030_s24  ;;  %1023 = vrot.lane.b32.xlu1 %v6293_v39, %s6031_s26 }
 0x1c3   :  { %v6398_v56 = vpop.permute.xlu0 %1148  ;;  %v870_v58 = vpop.permute.xlu1 %869 }
 0x1c5   :  { %1595 = vrot.lane.b32.xlu0 %v6287_v37, %s6022_s6  ;;  %966 = vrot.lane.b32.xlu1 %v6293_v39, %s6029_s23 }
 0x1c7   :  { %v1184_v61 = vpop.permute.xlu0 %1183  ;;  %v6408_v63 = vpop.permute.xlu1 %1152 }
 0x1c8   :  { %1195 = vst.msk [vmem:[#allocation3 + $0x1a0] sm:$0xff] %vm207_vm0, %v1184_v61 }
 0x1c9   :  { %997 = vrot.lane.b32.xlu0 %v6283_v35, %s6032_s27  ;;  %1509 = vrot.lane.b32.xlu1 %v6297_v41, %s6030_s24 }
 0x1cb   :  { %v1208_v1 = vpop.permute.xlu0 %1207  ;;  %v1186_v2 = vpop.permute.xlu1 %1185 }
 0x1cc   :  { %1219 = vst.msk [vmem:[#allocation3 + $0x1c0] sm:$0xff] %vm207_vm0, %v1208_v1  ;;  %1196 = vst.msk [vmem:[#allocation3 + $0x1a8] sm:$0xff] %vm207_vm0, %v1186_v2 }
 0x1cd   :  { %1539 = vrot.lane.b32.xlu0 %v6287_v37, %s6033_s2  ;;  %999 = vrot.lane.b32.xlu1 %v6293_v39, %s6032_s27 }
 0x1cf   :  { %v1232_v8 = vpop.permute.xlu0 %1231  ;;  %v1210_v9 = vpop.permute.xlu1 %1209 }
 0x1d0   :  { %1243 = vst.msk [vmem:[#allocation3 + $0x1e0] sm:$0xff] %vm207_vm0, %v1232_v8  ;;  %1220 = vst.msk [vmem:[#allocation3 + $0x1c8] sm:$0xff] %vm207_vm0, %v1210_v9 }
 0x1d1   :  { %1563 = vrot.lane.b32.xlu0 %v6287_v37, %s6015_s20  ;;  %1541 = vrot.lane.b32.xlu1 %v6297_v41, %s6033_s2  ;;  %v5218_v37 = vpop.f32.mrb[26].mxu1 }
 0x1d2   :  { %794 = vst.msk [vmem:[#allocation2 + $0x158] sm:$0xff] %vm760_vm2, %v5218_v37 }
 0x1d3   :  { %v812_v13 = vpop.permute.xlu0 %811  ;;  %v1234_v14 = vpop.permute.xlu1 %1233 }
 0x1d4   :  { %823 = vst.msk [vmem:[#allocation3 + $0x20] sm:$0xff] %vm207_vm0, %v812_v13  ;;  %1244 = vst.msk [vmem:[#allocation3 + $0x1e8] sm:$0xff] %vm207_vm0, %v1234_v14 }
 0x1d5   :  { %1146 = vrot.lane.b32.xlu0 %v6285_v36, %s6022_s6  ;;  %1565 = vrot.lane.b32.xlu1 %v6297_v41, %s6015_s20 }
 0x1d7   :  { %v836_v16 = vpop.permute.xlu0 %835  ;;  %v814_v17 = vpop.permute.xlu1 %813 }
 0x1d8   :  { %847 = vst.msk [vmem:[#allocation3 + $0x40] sm:$0xff] %vm207_vm0, %v836_v16  ;;  %824 = vst.msk [vmem:[#allocation3 + $0x28] sm:$0xff] %vm207_vm0, %v814_v17 }
 0x1d9   :  { %1090 = vrot.lane.b32.xlu0 %v6285_v36, %s6033_s2  ;;  %1150 = vrot.lane.b32.xlu1 %v6295_v40, %s6022_s6  ;;  %v6508_v2 = vld [vmem:[#allocation2 + $0x158] sm:$0xff] }
 0x1da   :  { %1702 = vst.msk [vmem:[#allocation3 + $0x418] sm:$0xff] %vm207_vm0, %v6508_v2 }
 0x1db   :  { %v868_v18 = vpop.permute.xlu0 %867  ;;  %v838_v19 = vpop.permute.xlu1 %837 }
 0x1dc   :  { %v884_v20 = vsel %vm883_vm1, %v868_v18, %v870_v58  ;;  %848 = vst.msk [vmem:[#allocation3 + $0x48] sm:$0xff] %vm207_vm0, %v838_v19 }
 0x1dd   :  { %892 = vst.msk [vmem:[#allocation3 + $0x60] sm:$0xff] %vm207_vm0, %v884_v20  ;;  %1114 = vrot.lane.b32.xlu0 %v6285_v36, %s6015_s20  ;;  %1059 = vrot.lane.b32.xlu1 %v6295_v40, %s6030_s24  ;;  %v6484_v36 = vld [vmem:[#allocation2 + $0xa8] sm:$0xff]  ;;  %v1753_v20 = vld [vmem:[#allocation3 + $0x10] sm:$0xff] }
 0x1de   :  { %1700 = vst.msk [vmem:[#allocation3 + $0x408] sm:$0xff] %vm207_vm0, %v6484_v36 }
 0x1df   :  { %v905_v48 = vpop.permute.xlu0 %904  ;;  %v907_v21 = vpop.permute.xlu1 %906  ;;  %v1756_v28 = vld [vmem:[#allocation3 + $0x28] sm:$0xff] }
 0x1e0   :  { %916 = vst.msk [vmem:[#allocation3 + $0x80] sm:$0xff] %vm207_vm0, %v905_v48  ;;  %917 = vst.msk [vmem:[#allocation3 + $0x88] sm:$0xff] %vm207_vm0, %v907_v21  ;;  %v1754_v48 = vld [vmem:[#allocation3 + $0x18] sm:$0xff] }
 0x1e1   :  { %1631 = vrot.lane.b32.xlu0 %v6291_v38, %s6023_s14  ;;  %1092 = vrot.lane.b32.xlu1 %v6295_v40, %s6033_s2 }
 0x1e3   :  { %v929_v57 = vpop.permute.xlu0 %928  ;;  %v931_v62 = vpop.permute.xlu1 %930 }
 0x1e4   :  { %940 = vst.msk [vmem:[#allocation3 + $0xa0] sm:$0xff] %vm207_vm0, %v929_v57  ;;  %941 = vst.msk [vmem:[#allocation3 + $0xa8] sm:$0xff] %vm207_vm0, %v931_v62 }
 0x1e5   :  { %1655 = vrot.lane.b32.xlu0 %v6291_v38, %s6024_s17  ;;  %1116 = vrot.lane.b32.xlu1 %v6295_v40, %s6015_s20 }
 0x1e7   :  { %v6468_v23 = vpop.permute.xlu0 %960  ;;  %v874_v24 = vpop.permute.xlu1 %873  ;;  %v1767_v25 = vld [vmem:[#allocation3 + $0x80] sm:$0xff]  ;;  %v1768_v26 = vld [vmem:[#allocation3 + $0x88] sm:$0xff] }
 0x1e8   :  { %v5383_v27 = vpack.c.bf16 %v1768_v26, %v1767_v25  ;;  %v5389_v26 = vpack.c.bf16 %v1754_v48, %v1753_v20  ;;  %v1759_v48 = vld [vmem:[#allocation3 + $0x40] sm:$0xff] }
 0x1e9   :  { %1679 = vrot.lane.b32.xlu0 %v6291_v38, %s6025_s18  ;;  %1601 = vrot.lane.b32.xlu1 %v6301_v42, %s6022_s6  ;;  %v6492_v38 = vld [vmem:[#allocation2 + $0x50] sm:$0xff] }
 0x1ea   :  { %5384 = vmatprep.subr.bf16.mxu0 %v5383_v27  ;;  %1699 = vst.msk [vmem:[#allocation3 + $0x400] sm:$0xff] %vm207_vm0, %v6492_v38 }
 0x1eb   :  { %v1264_v32 = vpop.permute.xlu0 %1263  ;;  %5386 = vmatpush3.bf16.msra.mxu0 %v5385_v30  ;;  %v1266_v33 = vpop.permute.xlu1 %1265  ;;  %v1771_v21 = vld [vmem:[#allocation3 + $0xa0] sm:$0xff] }
 0x1ec   :  { %1275 = vst.msk [vmem:[#allocation3 + $0x220] sm:$0xff] %vm207_vm0, %v1264_v32  ;;  %1276 = vst.msk [vmem:[#allocation3 + $0x228] sm:$0xff] %vm207_vm0, %v1266_v33  ;;  %v1755_v33 = vld [vmem:[#allocation3 + $0x20] sm:$0xff] }
 0x1ed   :  { %1057 = vrot.lane.b32.xlu0 %v6293_v39, %s6030_s24  ;;  %1633 = vrot.lane.b32.xlu1 %v6301_v42, %s6023_s14  ;;  %v741_v39 = vpop.f32.mrb[27].mxu1 }
 0x1ee   :  { %783 = vst.msk [vmem:[#allocation2 + $0x100] sm:$0xff] %vm760_vm2, %v741_v39 }
 0x1ef   :  { %v1288_v34 = vpop.permute.xlu0 %1287  ;;  %v1290_v35 = vpop.permute.xlu1 %1289 }
 0x1f0   :  { %1299 = vst.msk [vmem:[#allocation3 + $0x240] sm:$0xff] %vm207_vm0, %v1288_v34  ;;  %1300 = vst.msk [vmem:[#allocation3 + $0x248] sm:$0xff] %vm207_vm0, %v1290_v35  ;;  %v5393_v34 = vpack.c.bf16 %v1756_v28, %v1755_v33 }
 0x1f1   :  { %1599 = vrot.lane.b32.xlu0 %v6297_v41, %s6022_s6  ;;  %1657 = vrot.lane.b32.xlu1 %v6301_v42, %s6024_s17 }
 0x1f3   :  { %v872_v40 = vpop.permute.xlu0 %871  ;;  %v6498_v58 = vpop.permute.xlu1 %1156 }
 0x1f4   :  { %v885_v41 = vsel %vm883_vm1, %v872_v40, %v874_v24  ;;  %v1772_v24 = vld [vmem:[#allocation3 + $0xa8] sm:$0xff] }
 0x1f5   :  { %893 = vst.msk [vmem:[#allocation3 + $0x68] sm:$0xff] %vm207_vm0, %v885_v41  ;;  %1025 = vrot.lane.b32.xlu0 %v6305_v43, %s6031_s26  ;;  %1681 = vrot.lane.b32.xlu1 %v6301_v42, %s6025_s18  ;;  %v6516_v3 = vld [vmem:[#allocation2 + $0x100] sm:$0xff]  ;;  %v5391_v27 = vpack.c.bf16 %v1772_v24, %v1771_v21 }
 0x1f6   :  { %1701 = vst.msk [vmem:[#allocation3 + $0x410] sm:$0xff] %vm207_vm0, %v6516_v3 }
 0x1f7   :  { %v6506_v61 = vpop.permute.xlu0 %964  ;;  %v878_v1 = vpop.permute.xlu1 %877 }
 0x1f9   :  { %1061 = vrot.lane.b32.xlu0 %v6305_v43, %s6030_s24  ;;  %970 = vrot.lane.b32.xlu1 %v6305_v43, %s6029_s23 }
 0x1fb   :  { %v1188_v42 = vpop.permute.xlu0 %1187  ;;  %v6520_v4 = vpop.permute.xlu1 %1160 }
 0x1fc   :  { %1197 = vst.msk [vmem:[#allocation3 + $0x1b0] sm:$0xff] %vm207_vm0, %v1188_v42 }
 0x1fd   :  { %1603 = vrot.lane.b32.xlu0 %v6315_v45, %s6022_s6  ;;  %1513 = vrot.lane.b32.xlu1 %v6315_v45, %s6030_s24 }
 0x1ff   :  { %v1212_v5 = vpop.permute.xlu0 %1211  ;;  %v1190_v8 = vpop.permute.xlu1 %1189 }
 0x200   :  { %1221 = vst.msk [vmem:[#allocation3 + $0x1d0] sm:$0xff] %vm207_vm0, %v1212_v5  ;;  %1198 = vst.msk [vmem:[#allocation3 + $0x1b8] sm:$0xff] %vm207_vm0, %v1190_v8 }
 0x201   :  { %1001 = vrot.lane.b32.xlu0 %v6305_v43, %s6032_s27  ;;  %1063 = vrot.lane.b32.xlu1 %v6309_v44, %s6030_s24 }
 0x203   :  { %v1236_v9 = vpop.permute.xlu0 %1235  ;;  %v1214_v10 = vpop.permute.xlu1 %1213 }
 0x204   :  { %1245 = vst.msk [vmem:[#allocation3 + $0x1f0] sm:$0xff] %vm207_vm0, %v1236_v9  ;;  %1222 = vst.msk [vmem:[#allocation3 + $0x1d8] sm:$0xff] %vm207_vm0, %v1214_v10 }
 0x205   :  { %1543 = vrot.lane.b32.xlu0 %v6315_v45, %s6033_s2  ;;  %1605 = vrot.lane.b32.xlu1 %v6317_v46, %s6022_s6 }
 0x207   :  { %v816_v11 = vpop.permute.xlu0 %815  ;;  %v1238_v12 = vpop.permute.xlu1 %1237 }
 0x208   :  { %825 = vst.msk [vmem:[#allocation3 + $0x30] sm:$0xff] %vm207_vm0, %v816_v11  ;;  %1246 = vst.msk [vmem:[#allocation3 + $0x1f8] sm:$0xff] %vm207_vm0, %v1238_v12 }
 0x209   :  { %1567 = vrot.lane.b32.xlu0 %v6315_v45, %s6015_s20  ;;  %1027 = vrot.lane.b32.xlu1 %v6325_v47, %s6031_s26 }
 0x20b   :  { %v840_v43 = vpop.permute.xlu0 %839  ;;  %v818_v13 = vpop.permute.xlu1 %817 }
 0x20c   :  { %849 = vst.msk [vmem:[#allocation3 + $0x50] sm:$0xff] %vm207_vm0, %v840_v43  ;;  %826 = vst.msk [vmem:[#allocation3 + $0x38] sm:$0xff] %vm207_vm0, %v818_v13 }
 0x20d   :  { %1154 = vrot.lane.b32.xlu0 %v6309_v44, %s6022_s6  ;;  %974 = vrot.lane.b32.xlu1 %v6325_v47, %s6029_s23 }
 0x20f   :  { %v876_v14 = vpop.permute.xlu0 %875  ;;  %v842_v15 = vpop.permute.xlu1 %841 }
 0x210   :  { %v886_v16 = vsel %vm883_vm1, %v876_v14, %v878_v1  ;;  %850 = vst.msk [vmem:[#allocation3 + $0x58] sm:$0xff] %vm207_vm0, %v842_v15  ;;  %v1757_v1 = vld [vmem:[#allocation3 + $0x30] sm:$0xff] }
 0x211   :  { %894 = vst.msk [vmem:[#allocation3 + $0x70] sm:$0xff] %vm207_vm0, %v886_v16  ;;  %1094 = vrot.lane.b32.xlu0 %v6309_v44, %s6033_s2  ;;  %1517 = vrot.lane.b32.xlu1 %v6334_v50, %s6030_s24 }
 0x213   :  { %v909_v45 = vpop.permute.xlu0 %908  ;;  %v911_v17 = vpop.permute.xlu1 %910  ;;  %v1758_v37 = vld [vmem:[#allocation3 + $0x38] sm:$0xff] }
 0x214   :  { %918 = vst.msk [vmem:[#allocation3 + $0x90] sm:$0xff] %vm207_vm0, %v909_v45  ;;  %919 = vst.msk [vmem:[#allocation3 + $0x98] sm:$0xff] %vm207_vm0, %v911_v17 }
 0x215   :  { %1118 = vrot.lane.b32.xlu0 %v6309_v44, %s6015_s20  ;;  %1003 = vrot.lane.b32.xlu1 %v6325_v47, %s6032_s27 }
 0x217   :  { %v933_v18 = vpop.permute.xlu0 %932  ;;  %v935_v19 = vpop.permute.xlu1 %934 }
 0x218   :  { %942 = vst.msk [vmem:[#allocation3 + $0xb0] sm:$0xff] %vm207_vm0, %v933_v18  ;;  %943 = vst.msk [vmem:[#allocation3 + $0xb8] sm:$0xff] %vm207_vm0, %v935_v19  ;;  %v1760_v18 = vld [vmem:[#allocation3 + $0x48] sm:$0xff] }
 0x219   :  { %1635 = vrot.lane.b32.xlu0 %v6317_v46, %s6023_s14  ;;  %1545 = vrot.lane.b32.xlu1 %v6334_v50, %s6033_s2  ;;  %v5401_v21 = vpack.c.bf16 %v1760_v18, %v1759_v48 }
 0x21b   :  { %v6570_v57 = vpop.permute.xlu0 %968  ;;  %v882_v44 = vpop.permute.xlu1 %881  ;;  %v1769_v62 = vld [vmem:[#allocation3 + $0x90] sm:$0xff]  ;;  %v1770_v22 = vld [vmem:[#allocation3 + $0x98] sm:$0xff] }
 0x21c   :  { %v5387_v25 = vpack.c.bf16 %v1770_v22, %v1769_v62  ;;  %v115_v22 = vld [vmem:[#allocation4 + $0x18] sm:$0xff] }
 0x21d   :  { %1659 = vrot.lane.b32.xlu0 %v6317_v46, %s6024_s17  ;;  %1569 = vrot.lane.b32.xlu1 %v6334_v50, %s6015_s20 }
 0x21e   :  { %5388 = vmatprep.subr.bf16.mxu0 %v5387_v25  ;;  %2143 = vmatprep.mubr.f32.mxu1 %v115_v22 }
 0x21f   :  { %v1268_v29 = vpop.permute.xlu0 %1267  ;;  %5390 = vmatpush3.bf16.msra.mxu0 %v5389_v26  ;;  %v1270_v30 = vpop.permute.xlu1 %1269  ;;  %v1773_v31 = vld [vmem:[#allocation3 + $0xb0] sm:$0xff]  ;;  %v1774_v32 = vld [vmem:[#allocation3 + $0xb8] sm:$0xff] }
 0x220   :  { %1277 = vst.msk [vmem:[#allocation3 + $0x230] sm:$0xff] %vm207_vm0, %v1268_v29  ;;  %1278 = vst.msk [vmem:[#allocation3 + $0x238] sm:$0xff] %vm207_vm0, %v1270_v30  ;;  %5392 = vmatprep.subr.bf16.mxu0 %v5391_v27  ;;  %v5395_v35 = vpack.c.bf16 %v1774_v32, %v1773_v31 }
 0x221   :  { %1683 = vrot.lane.b32.xlu0 %v6317_v46, %s6025_s18  ;;  %1067 = vrot.lane.b32.xlu1 %v6329_v49, %s6030_s24  ;;  %v5397_v46 = vpack.c.bf16 %v1758_v37, %v1757_v1 }
 0x223   :  { %v1292_v39 = vpop.permute.xlu0 %1291  ;;  %5394 = vmatpush3.bf16.msra.mxu0 %v5393_v34  ;;  %v963_v40 = vpop.permute.xlu1 %962 }
 0x224   :  { %1301 = vst.msk [vmem:[#allocation3 + $0x250] sm:$0xff] %vm207_vm0, %v1292_v39  ;;  %v977_v41 = vsel %vm976_vm3, %v6468_v23, %v963_v40  ;;  %5396 = vmatprep.subr.bf16.mxu0 %v5395_v35 }
 0x225   :  { %985 = vst.msk [vmem:[#allocation3 + $0xc0] sm:$0xff] %vm207_vm0, %v977_v41  ;;  %1065 = vrot.lane.b32.xlu0 %v6325_v47, %s6030_s24  ;;  %1096 = vrot.lane.b32.xlu1 %v6329_v49, %s6033_s2 }
 0x227   :  { %v880_v42 = vpop.permute.xlu0 %879  ;;  %5398 = vmatpush3.bf16.msra.mxu0 %v5397_v46  ;;  %v6590_v5 = vpop.permute.xlu1 %1505 }
 0x228   :  { %v887_v8 = vsel %vm883_vm1, %v880_v42, %v882_v44 }
 0x229   :  { %895 = vst.msk [vmem:[#allocation3 + $0x78] sm:$0xff] %vm207_vm0, %v887_v8  ;;  %1607 = vrot.lane.b32.xlu0 %v6334_v50, %s6022_s6  ;;  %1120 = vrot.lane.b32.xlu1 %v6329_v49, %s6015_s20 }
 0x22b   :  { %v6598_v23 = vpop.permute.xlu0 %972  ;;  %v1056_v47 = vpop.permute.xlu1 %1055 }
 0x22d   :  { %1158 = vrot.lane.b32.xlu0 %v6329_v49, %s6022_s6  ;;  %1609 = vrot.lane.b32.xlu1 %v6338_v51, %s6022_s6 }
 0x22f   :  { %v1022_v9 = vpop.permute.xlu0 %1021  ;;  %v1598_v10 = vpop.permute.xlu1 %1597 }
 0x230   :  { %1033 = vst.msk [vmem:[#allocation3 + $0x100] sm:$0xff] %vm207_vm0, %v1022_v9  ;;  %v1282_v9 = vld [vmem:[#allocation2 + $0x130] sm:$0xff] }
 0x231   :  { %1355 = vrot.lane.b32.xlu0 %v6370_v52, %s6027_s3  ;;  %1637 = vrot.lane.b32.xlu1 %v6338_v51, %s6023_s14 }
 0x233   :  { %v1054_v50 = vpop.permute.xlu0 %1053  ;;  %v1024_v11 = vpop.permute.xlu1 %1023 }
 0x234   :  { %v1070_v12 = vsel %vm1069_vm4, %v1054_v50, %v1056_v47  ;;  %1034 = vst.msk [vmem:[#allocation3 + $0x108] sm:$0xff] %vm207_vm0, %v1024_v11 }
 0x235   :  { %1078 = vst.msk [vmem:[#allocation3 + $0x120] sm:$0xff] %vm207_vm0, %v1070_v12  ;;  %1379 = vrot.lane.b32.xlu0 %v6370_v52, %s6028_s21  ;;  %1661 = vrot.lane.b32.xlu1 %v6338_v51, %s6024_s17 }
 0x237   :  { %v1596_v49 = vpop.permute.xlu0 %1595  ;;  %v967_v43 = vpop.permute.xlu1 %966  ;;  %v1783_v37 = vld [vmem:[#allocation3 + $0x100] sm:$0xff] }
 0x238   :  { %v1611_v13 = vsel %vm1162_vm5, %v1596_v49, %v1598_v10  ;;  %v978_v14 = vsel %vm976_vm3, %v6506_v61, %v967_v43  ;;  %v113_v61 = vld [vmem:[#allocation4 + $0x8] sm:$0xff] }
 0x239   :  { %1619 = vst.msk [vmem:[#allocation3 + $0x380] sm:$0xff] %vm207_vm0, %v1611_v13  ;;  %986 = vst.msk [vmem:[#allocation3 + $0xc8] sm:$0xff] %vm207_vm0, %v978_v14  ;;  %1411 = vrot.lane.b32.xlu0 %v6370_v52, %s6029_s23  ;;  %1685 = vrot.lane.b32.xlu1 %v6338_v51, %s6025_s18  ;;  %v1775_v51 = vld [vmem:[#allocation3 + $0xc0] sm:$0xff]  ;;  %v1303_v43 = vld [vmem:[#allocation2 + $0x28] sm:$0xff] }
 0x23a   :  { %2058 = vmatprep.mubr.f32.mxu0 %v113_v61  ;;  %v1305_v61 = vld [vmem:[#allocation2 + $0x80] sm:$0xff] }
 0x23b   :  { %v998_v15 = vpop.permute.xlu0 %997  ;;  %v6625_v16 = vpop.permute.xlu1 %1509  ;;  %v1784_v32 = vld [vmem:[#allocation3 + $0x108] sm:$0xff] }
 0x23c   :  { %1009 = vst.msk [vmem:[#allocation3 + $0xe0] sm:$0xff] %vm207_vm0, %v998_v15  ;;  %v5417_v39 = vpack.c.bf16 %v1784_v32, %v1783_v37 }
 0x23d   :  { %1471 = vrot.lane.b32.xlu0 %v6372_v53, %s6031_s26  ;;  %1413 = vrot.lane.b32.xlu1 %v6372_v53, %s6029_s23 }
 0x23f   :  { %v1540_v45 = vpop.permute.xlu0 %1539  ;;  %v1000_v17 = vpop.permute.xlu1 %999 }
 0x240   :  { %1551 = vst.msk [vmem:[#allocation3 + $0x340] sm:$0xff] %vm207_vm0, %v1540_v45  ;;  %1010 = vst.msk [vmem:[#allocation3 + $0xe8] sm:$0xff] %vm207_vm0, %v1000_v17  ;;  %v1776_v19 = vld [vmem:[#allocation3 + $0xc8] sm:$0xff] }
 0x241   :  { %1503 = vrot.lane.b32.xlu0 %v6372_v53, %s6030_s24  ;;  %1357 = vrot.lane.b32.xlu1 %v6386_v54, %s6027_s3  ;;  %v5399_v20 = vpack.c.bf16 %v1776_v19, %v1775_v51 }
 0x243   :  { %v1564_v44 = vpop.permute.xlu0 %1563  ;;  %5400 = vmatprep.subr.bf16.mxu0 %v5399_v20  ;;  %v1542_v62 = vpop.permute.xlu1 %1541 }
 0x244   :  { %1575 = vst.msk [vmem:[#allocation3 + $0x360] sm:$0xff] %vm207_vm0, %v1564_v44  ;;  %1552 = vst.msk [vmem:[#allocation3 + $0x348] sm:$0xff] %vm207_vm0, %v1542_v62  ;;  %5402 = vmatpush3.bf16.msra.mxu0 %v5401_v21 }
 0x245   :  { %1415 = vrot.lane.b32.xlu0 %v6386_v54, %s6029_s23  ;;  %1381 = vrot.lane.b32.xlu1 %v6386_v54, %s6028_s21 }
 0x247   :  { %v1147_v24 = vpop.permute.xlu0 %1146  ;;  %v1566_v25 = vpop.permute.xlu1 %1565 }
 0x248   :  { %v1163_v26 = vsel %vm1162_vm5, %v1147_v24, %v6398_v56  ;;  %1576 = vst.msk [vmem:[#allocation3 + $0x368] sm:$0xff] %vm207_vm0, %v1566_v25 }
 0x249   :  { %1171 = vst.msk [vmem:[#allocation3 + $0x180] sm:$0xff] %vm207_vm0, %v1163_v26  ;;  %1507 = vrot.lane.b32.xlu0 %v6388_v55, %s6030_s24  ;;  %1473 = vrot.lane.b32.xlu1 %v6388_v55, %s6031_s26  ;;  %v1780_v26 = vld [vmem:[#allocation3 + $0xe8] sm:$0xff] }
 0x24b   :  { %v1091_v27 = vpop.permute.xlu0 %1090  ;;  %v1151_v28 = vpop.permute.xlu1 %1150 }
 0x24c   :  { %1102 = vst.msk [vmem:[#allocation3 + $0x140] sm:$0xff] %vm207_vm0, %v1091_v27  ;;  %v1164_v29 = vsel %vm1162_vm5, %v1151_v28, %v6408_v63  ;;  %v1761_v27 = vld [vmem:[#allocation3 + $0x50] sm:$0xff] }
 0x24d   :  { %1172 = vst.msk [vmem:[#allocation3 + $0x188] sm:$0xff] %vm207_vm0, %v1164_v29  ;;  %1359 = vrot.lane.b32.xlu0 %v6400_v59, %s6027_s3  ;;  %1417 = vrot.lane.b32.xlu1 %v6388_v55, %s6029_s23 }
 0x24f   :  { %v1115_v56 = vpop.permute.xlu0 %1114  ;;  %v1060_v30 = vpop.permute.xlu1 %1059 }
 0x250   :  { %1126 = vst.msk [vmem:[#allocation3 + $0x160] sm:$0xff] %vm207_vm0, %v1115_v56  ;;  %v1799_v33 = vld [vmem:[#allocation3 + $0x180] sm:$0xff] }
 0x251   :  { %1383 = vrot.lane.b32.xlu0 %v6400_v59, %s6028_s21  ;;  %1421 = vrot.lane.b32.xlu1 %v6406_v60, %s6029_s23 }
 0x253   :  { %v1632_v31 = vpop.permute.xlu0 %1631  ;;  %v1093_v63 = vpop.permute.xlu1 %1092 }
 0x254   :  { %1643 = vst.msk [vmem:[#allocation3 + $0x3a0] sm:$0xff] %vm207_vm0, %v1632_v31  ;;  %1103 = vst.msk [vmem:[#allocation3 + $0x148] sm:$0xff] %vm207_vm0, %v1093_v63  ;;  %v1800_v34 = vld [vmem:[#allocation3 + $0x188] sm:$0xff] }
 0x255   :  { %1419 = vrot.lane.b32.xlu0 %v6400_v59, %s6029_s23  ;;  %1361 = vrot.lane.b32.xlu1 %v6421_v6, %s6027_s3  ;;  %v5415_v35 = vpack.c.bf16 %v1800_v34, %v1799_v33  ;;  %v1764_v31 = vld [vmem:[#allocation3 + $0x68] sm:$0xff] }
 0x257   :  { %v1656_v40 = vpop.permute.xlu0 %1655  ;;  %5416 = vmatprep.subr.bf16.mxu1 %v5415_v35  ;;  %v1117_v41 = vpop.permute.xlu1 %1116  ;;  %v1766_v35 = vld [vmem:[#allocation3 + $0x78] sm:$0xff] }
 0x258   :  { %1667 = vst.msk [vmem:[#allocation3 + $0x3c0] sm:$0xff] %vm207_vm0, %v1656_v40  ;;  %1127 = vst.msk [vmem:[#allocation3 + $0x168] sm:$0xff] %vm207_vm0, %v1117_v41  ;;  %5418 = vmatpush3.bf16.msra.mxu1 %v5417_v39  ;;  %v1765_v39 = vld [vmem:[#allocation3 + $0x70] sm:$0xff] }
 0x259   :  { %1475 = vrot.lane.b32.xlu0 %v6406_v60, %s6031_s26  ;;  %1385 = vrot.lane.b32.xlu1 %v6421_v6, %s6028_s21 }
 0x25b   :  { %v1680_v1 = vpop.permute.xlu0 %1679  ;;  %v1602_v46 = vpop.permute.xlu1 %1601 }
 0x25c   :  { %1691 = vst.msk [vmem:[#allocation3 + $0x3e0] sm:$0xff] %vm207_vm0, %v1680_v1  ;;  %v122_v1 = vld [vmem:[#allocation4 + $0x50] sm:$0xff] }
 0x25d   :  { %1511 = vrot.lane.b32.xlu0 %v6406_v60, %s6030_s24  ;;  %1477 = vrot.lane.b32.xlu1 %v6423_v7, %s6031_s26 }
 0x25f   :  { %v1058_v42 = vpop.permute.xlu0 %1057  ;;  %v1634_v8 = vpop.permute.xlu1 %1633 }
 0x260   :  { %v1071_v47 = vsel %vm1069_vm4, %v1058_v42, %v1060_v30  ;;  %1644 = vst.msk [vmem:[#allocation3 + $0x3a8] sm:$0xff] %vm207_vm0, %v1634_v8 }
 0x261   :  { %1079 = vst.msk [vmem:[#allocation3 + $0x128] sm:$0xff] %vm207_vm0, %v1071_v47  ;;  %1423 = vrot.lane.b32.xlu0 %v6421_v6, %s6029_s23  ;;  %1293 = vrot.lane.b32.xlu1 %v1282_v9, %s6026_s19  ;;  %v121_v47 = vld [vmem:[#allocation4 + $0x48] sm:$0xff] }
 0x263   :  { %v1600_v10 = vpop.permute.xlu0 %1599  ;;  %v1658_v50 = vpop.permute.xlu1 %1657 }
 0x264   :  { %v1612_v11 = vsel %vm1162_vm5, %v1600_v10, %v1602_v46  ;;  %1668 = vst.msk [vmem:[#allocation3 + $0x3c8] sm:$0xff] %vm207_vm0, %v1658_v50 }
 0x265   :  { %1620 = vst.msk [vmem:[#allocation3 + $0x388] sm:$0xff] %vm207_vm0, %v1612_v11  ;;  %1515 = vrot.lane.b32.xlu0 %v6423_v7, %s6030_s24  ;;  %1321 = vrot.lane.b32.xlu1 %v6370_v52, %s6011_s16  ;;  %v130_v11 = vld [vmem:[#allocation4 + $0x90] sm:$0xff] }
 0x267   :  { %v1026_v12 = vpop.permute.xlu0 %1025  ;;  %v1682_v49 = vpop.permute.xlu1 %1681 }
 0x268   :  { %1035 = vst.msk [vmem:[#allocation3 + $0x110] sm:$0xff] %vm207_vm0, %v1026_v12  ;;  %1692 = vst.msk [vmem:[#allocation3 + $0x3e8] sm:$0xff] %vm207_vm0, %v1682_v49  ;;  %v140_v12 = vld [vmem:[#allocation4 + $0xe0] sm:$0xff] }
 0x269   :  { %1319 = vrot.lane.b32.xlu0 %v1303_v43, %s6011_s16  ;;  %1325 = vrot.lane.b32.xlu1 %v6386_v54, %s6011_s16 }
 0x26b   :  { %v1062_v13 = vpop.permute.xlu0 %1061  ;;  %v971_v14 = vpop.permute.xlu1 %970 }
 0x26c   :  { %v979_v15 = vsel %vm976_vm3, %v6570_v57, %v971_v14 }
 0x26d   :  { %987 = vst.msk [vmem:[#allocation3 + $0xd0] sm:$0xff] %vm207_vm0, %v979_v15  ;;  %1323 = vrot.lane.b32.xlu0 %v1305_v61, %s6011_s16  ;;  %1425 = vrot.lane.b32.xlu1 %v6423_v7, %s6029_s23  ;;  %v139_v15 = vld [vmem:[#allocation4 + $0xd8] sm:$0xff]  ;;  %v117_v61 = vld [vmem:[#allocation4 + $0x28] sm:$0xff] }
 0x26f   :  { %v1604_v52 = vpop.permute.xlu0 %1603  ;;  %v6706_v45 = vpop.permute.xlu1 %1513 }
 0x271   :  { %1711 = vrot.lane.b32.xlu0 %v6492_v38, %s6018_s22  ;;  %1713 = vrot.lane.b32.xlu1 %v6484_v36, %s6018_s22 }
 0x273   :  { %v1002_v54 = vpop.permute.xlu0 %1001  ;;  %v1064_v17 = vpop.permute.xlu1 %1063 }
 0x274   :  { %1011 = vst.msk [vmem:[#allocation3 + $0xf0] sm:$0xff] %vm207_vm0, %v1002_v54  ;;  %v1072_v57 = vsel %vm1069_vm4, %v1062_v13, %v1064_v17  ;;  %v1777_v25 = vld [vmem:[#allocation3 + $0xd0] sm:$0xff] }
 0x275   :  { %1080 = vst.msk [vmem:[#allocation3 + $0x130] sm:$0xff] %vm207_vm0, %v1072_v57  ;;  %1447 = vrot.lane.b32.xlu0 %v6372_v53, %s6032_s27  ;;  %1449 = vrot.lane.b32.xlu1 %v6388_v55, %s6032_s27  ;;  %v1307_v53 = vld [vmem:[#allocation2 + $0xd8] sm:$0xff] }
 0x277   :  { %v1544_v18 = vpop.permute.xlu0 %1543  ;;  %v1606_v51 = vpop.permute.xlu1 %1605 }
 0x278   :  { %1553 = vst.msk [vmem:[#allocation3 + $0x350] sm:$0xff] %vm207_vm0, %v1544_v18  ;;  %v1613_v19 = vsel %vm1162_vm5, %v1604_v52, %v1606_v51 }
 0x279   :  { %1621 = vst.msk [vmem:[#allocation3 + $0x390] sm:$0xff] %vm207_vm0, %v1613_v19  ;;  %1715 = vrot.lane.b32.xlu0 %v6516_v3, %s6018_s22  ;;  %1717 = vrot.lane.b32.xlu1 %v6508_v2, %s6018_s22  ;;  %v1804_v19 = vld [vmem:[#allocation3 + $0x1a8] sm:$0xff] }
 0x27b   :  { %v1568_v20 = vpop.permute.xlu0 %1567  ;;  %v1028_v48 = vpop.permute.xlu1 %1027  ;;  %v1781_v33 = vld [vmem:[#allocation3 + $0xf0] sm:$0xff] }
 0x27c   :  { %1577 = vst.msk [vmem:[#allocation3 + $0x370] sm:$0xff] %vm207_vm0, %v1568_v20  ;;  %1036 = vst.msk [vmem:[#allocation3 + $0x118] sm:$0xff] %vm207_vm0, %v1028_v48  ;;  %v1785_v48 = vld [vmem:[#allocation3 + $0x110] sm:$0xff] }
 0x27d   :  { %1327 = vrot.lane.b32.xlu0 %v1307_v53, %s6011_s16  ;;  %1329 = vrot.lane.b32.xlu1 %v6400_v59, %s6011_s16 }
 0x27f   :  { %v1155_v55 = vpop.permute.xlu0 %1154  ;;  %v975_v21 = vpop.permute.xlu1 %974 }
 0x280   :  { %v1165_v44 = vsel %vm1162_vm5, %v1155_v55, %v6498_v58  ;;  %v980_v62 = vsel %vm976_vm3, %v6598_v23, %v975_v21  ;;  %v1762_v23 = vld [vmem:[#allocation3 + $0x58] sm:$0xff]  ;;  %v1803_v55 = vld [vmem:[#allocation3 + $0x1a0] sm:$0xff] }
 0x281   :  { %1173 = vst.msk [vmem:[#allocation3 + $0x190] sm:$0xff] %vm207_vm0, %v1165_v44  ;;  %988 = vst.msk [vmem:[#allocation3 + $0xd8] sm:$0xff] %vm207_vm0, %v980_v62  ;;  %1331 = vrot.lane.b32.xlu0 %v1282_v9, %s6011_s16  ;;  %1333 = vrot.lane.b32.xlu1 %v6421_v6, %s6011_s16  ;;  %v5405_v28 = vpack.c.bf16 %v1762_v23, %v1761_v27  ;;  %v131_v9 = vld [vmem:[#allocation4 + $0x98] sm:$0xff]  ;;  %v5423_v62 = vpack.c.bf16 %v1804_v19, %v1803_v55 }
 0x283   :  { %v1095_v22 = vpop.permute.xlu0 %1094  ;;  %v6740_v24 = vpop.permute.xlu1 %1517 }
 0x284   :  { %1104 = vst.msk [vmem:[#allocation3 + $0x150] sm:$0xff] %vm207_vm0, %v1095_v22  ;;  %v1788_v22 = vld [vmem:[#allocation3 + $0x128] sm:$0xff] }
 0x285   :  { %1451 = vrot.lane.b32.xlu0 %v6406_v60, %s6032_s27  ;;  %1453 = vrot.lane.b32.xlu1 %v6423_v7, %s6032_s27  ;;  %v1779_v7 = vld [vmem:[#allocation3 + $0xe0] sm:$0xff] }
 0x286   :  { %v5407_v30 = vpack.c.bf16 %v1780_v26, %v1779_v7  ;;  %v1808_v7 = vld [vmem:[#allocation3 + $0x1c8] sm:$0xff] }
 0x287   :  { %v1119_v59 = vpop.permute.xlu0 %1118  ;;  %v1004_v58 = vpop.permute.xlu1 %1003 }
 0x288   :  { %1128 = vst.msk [vmem:[#allocation3 + $0x170] sm:$0xff] %vm207_vm0, %v1119_v59  ;;  %1012 = vst.msk [vmem:[#allocation3 + $0xf8] sm:$0xff] %vm207_vm0, %v1004_v58  ;;  %v1778_v6 = vld [vmem:[#allocation3 + $0xd8] sm:$0xff]  ;;  %v1801_v18 = vld [vmem:[#allocation3 + $0x190] sm:$0xff] }
 0x289   :  { %1735 = vrot.lane.b32.xlu0 %v6492_v38, %s6026_s19  ;;  %1737 = vrot.lane.b32.xlu1 %v6484_v36, %s6026_s19  ;;  %v5403_v60 = vpack.c.bf16 %v1778_v6, %v1777_v25  ;;  %v1763_v38 = vld [vmem:[#allocation3 + $0x60] sm:$0xff]  ;;  %v1806_v59 = vld [vmem:[#allocation3 + $0x1b8] sm:$0xff]  ;;  %v1805_v25 = vld [vmem:[#allocation3 + $0x1b0] sm:$0xff] }
 0x28a   :  { %v5409_v36 = vpack.c.bf16 %v1764_v31, %v1763_v38  ;;  %v1787_v58 = vld [vmem:[#allocation3 + $0x120] sm:$0xff] }
 0x28b   :  { %v1636_v29 = vpop.permute.xlu0 %1635  ;;  %5404 = vmatprep.subr.bf16.mxu0 %v5403_v60  ;;  %v1546_v56 = vpop.permute.xlu1 %1545  ;;  %v5425_v23 = vpack.c.bf16 %v1788_v22, %v1787_v58  ;;  %v5427_v60 = vpack.c.bf16 %v1806_v59, %v1805_v25  ;;  %v124_v58 = vld [vmem:[#allocation4 + $0x60] sm:$0xff] }
 0x28c   :  { %1645 = vst.msk [vmem:[#allocation3 + $0x3b0] sm:$0xff] %vm207_vm0, %v1636_v29  ;;  %1554 = vst.msk [vmem:[#allocation3 + $0x358] sm:$0xff] %vm207_vm0, %v1546_v56  ;;  %5406 = vmatpush3.bf16.msra.mxu0 %v5405_v28  ;;  %v1789_v29 = vld [vmem:[#allocation3 + $0x130] sm:$0xff] }
 0x28d   :  { %1739 = vrot.lane.b32.xlu0 %v6516_v3, %s6026_s19  ;;  %5408 = vmatprep.subr.bf16.mxu0 %v5407_v30  ;;  %v5413_v3 = vpack.c.bf16 %v1766_v35, %v1765_v39  ;;  %v1807_v30 = vld [vmem:[#allocation3 + $0x1c0] sm:$0xff] }
 0x28e   :  { %1741 = vrot.lane.b32.xlu1 %v6508_v2, %s6026_s19  ;;  %v112_v2 = vld [vmem:[#allocation4] sm:$0xff] }
 0x28f   :  { %v1660_v63 = vpop.permute.xlu0 %1659  ;;  %v1570_v32 = vpop.permute.xlu1 %1569  ;;  %v1782_v34 = vld [vmem:[#allocation3 + $0xf8] sm:$0xff] }
 0x290   :  { %1669 = vst.msk [vmem:[#allocation3 + $0x3d0] sm:$0xff] %vm207_vm0, %v1660_v63  ;;  %1578 = vst.msk [vmem:[#allocation3 + $0x378] sm:$0xff] %vm207_vm0, %v1570_v32  ;;  %5410 = vmatpush3.bf16.msra.mxu0 %v5409_v36  ;;  %v5411_v37 = vpack.c.bf16 %v1782_v34, %v1781_v33  ;;  %v5431_v36 = vpack.c.bf16 %v1808_v7, %v1807_v30  ;;  %v1792_v63 = vld [vmem:[#allocation3 + $0x148] sm:$0xff]  ;;  %v1810_v33 = vld [vmem:[#allocation3 + $0x1d8] sm:$0xff] }
 0x291   :  { %v1791_v34 = vld [vmem:[#allocation3 + $0x140] sm:$0xff]  ;;  %v142_v30 = vld [vmem:[#allocation4 + $0xf0] sm:$0xff] }
 0x292   :  { %5412 = vmatprep.subr.bf16.mxu0 %v5411_v37  ;;  %v5433_v35 = vpack.c.bf16 %v1792_v63, %v1791_v34  ;;  %v1809_v37 = vld [vmem:[#allocation3 + $0x1d0] sm:$0xff] }
 0x293   :  { %v1684_v40 = vpop.permute.xlu0 %1683  ;;  %v1068_v41 = vpop.permute.xlu1 %1067 }
 0x294   :  { %1693 = vst.msk [vmem:[#allocation3 + $0x3f0] sm:$0xff] %vm207_vm0, %v1684_v40  ;;  %5414 = vmatpush3.bf16.msra.mxu0 %v5413_v3  ;;  %v5435_v40 = vpack.c.bf16 %v1810_v33, %v1809_v37 }
 0x297   :  { %v1066_v46 = vpop.permute.xlu0 %1065  ;;  %v1097_v42 = vpop.permute.xlu1 %1096  ;;  %2059 = vmatmul.mubr.f32.vlgmr.msra.gmra.mrb[16].mxu0 %v112_v2  ;;  %v1812_v2 = vld [vmem:[#allocation3 + $0x1e8] sm:$0xff] }
 0x298   :  { %v1073_v8 = vsel %vm1069_vm4, %v1066_v46, %v1068_v41  ;;  %1105 = vst.msk [vmem:[#allocation3 + $0x158] sm:$0xff] %vm207_vm0, %v1097_v42  ;;  %2063 = vmatprep.mubr.f32.mxu0 %v122_v1  ;;  %v1811_v46 = vld [vmem:[#allocation3 + $0x1e0] sm:$0xff]  ;;  %v1816_v42 = vld [vmem:[#allocation3 + $0x208] sm:$0xff] }
 0x299   :  { %1081 = vst.msk [vmem:[#allocation3 + $0x138] sm:$0xff] %vm207_vm0, %v1073_v8 }
 0x29b   :  { %v1608_v10 = vpop.permute.xlu0 %1607  ;;  %v1121_v50 = vpop.permute.xlu1 %1120  ;;  %2064 = vmatmul.mubr.f32.gmra.mrb[18].mxu0 %v121_v47 }
 0x29c   :  { %1129 = vst.msk [vmem:[#allocation3 + $0x178] sm:$0xff] %vm207_vm0, %v1121_v50  ;;  %2068 = vmatprep.mubr.f32.mxu0 %v131_v9  ;;  %v5439_v9 = vpack.c.bf16 %v1812_v2, %v1811_v46 }
 0x29f   :  { %v1159_v49 = vpop.permute.xlu0 %1158  ;;  %v1610_v43 = vpop.permute.xlu1 %1609  ;;  %2069 = vmatmul.mubr.f32.gmra.mrb[20].mxu0 %v130_v11  ;;  %v1794_v41 = vld [vmem:[#allocation3 + $0x158] sm:$0xff]  ;;  %v1796_v11 = vld [vmem:[#allocation3 + $0x168] sm:$0xff] }
 0x2a0   :  { %v1166_v13 = vsel %vm1162_vm5, %v1159_v49, %v6520_v4  ;;  %v1614_v14 = vsel %vm1162_vm5, %v1608_v10, %v1610_v43  ;;  %2073 = vmatprep.mubr.f32.mxu0 %v140_v12  ;;  %v1786_v4 = vld [vmem:[#allocation3 + $0x118] sm:$0xff]  ;;  %v1815_v43 = vld [vmem:[#allocation3 + $0x200] sm:$0xff] }
 0x2a1   :  { %1174 = vst.msk [vmem:[#allocation3 + $0x198] sm:$0xff] %vm207_vm0, %v1166_v13  ;;  %1622 = vst.msk [vmem:[#allocation3 + $0x398] sm:$0xff] %vm207_vm0, %v1614_v14  ;;  %v5421_v53 = vpack.c.bf16 %v1786_v4, %v1785_v48  ;;  %v1790_v27 = vld [vmem:[#allocation3 + $0x138] sm:$0xff]  ;;  %v1795_v14 = vld [vmem:[#allocation3 + $0x160] sm:$0xff] }
 0x2a2   :  { %v5429_v56 = vpack.c.bf16 %v1790_v27, %v1789_v29  ;;  %v1814_v13 = vld [vmem:[#allocation3 + $0x1f8] sm:$0xff] }
 0x2a3   :  { %v1356_v52 = vpop.permute.xlu0 %1355  ;;  %v1638_v54 = vpop.permute.xlu1 %1637  ;;  %2074 = vmatmul.mubr.f32.gmra.mrb[22].mxu0 %v139_v15  ;;  %v5449_v15 = vpack.c.bf16 %v1816_v42, %v1815_v43  ;;  %v1798_v4 = vld [vmem:[#allocation3 + $0x178] sm:$0xff] }
 0x2a4   :  { %1367 = vst.msk [vmem:[#allocation3 + $0x280] sm:$0xff] %vm207_vm0, %v1356_v52  ;;  %1646 = vst.msk [vmem:[#allocation3 + $0x3b8] sm:$0xff] %vm207_vm0, %v1638_v54  ;;  %2228 = vmatprep.mubr.f32.mxu0 %v117_v61  ;;  %v5441_v61 = vpack.c.bf16 %v1796_v11, %v1795_v14  ;;  %v1813_v52 = vld [vmem:[#allocation3 + $0x1f0] sm:$0xff]  ;;  %v123_v27 = vld [vmem:[#allocation4 + $0x58] sm:$0xff] }
 0x2a5   :  { %v1868_v11 = vld [vmem:[#allocation3 + $0x3a8] sm:$0xff] }
 0x2a7   :  { %v1380_v17 = vpop.permute.xlu0 %1379  ;;  %v1662_v57 = vpop.permute.xlu1 %1661 }
 0x2a8   :  { %1391 = vst.msk [vmem:[#allocation3 + $0x2a0] sm:$0xff] %vm207_vm0, %v1380_v17  ;;  %1670 = vst.msk [vmem:[#allocation3 + $0x3d8] sm:$0xff] %vm207_vm0, %v1662_v57  ;;  %v1802_v51 = vld [vmem:[#allocation3 + $0x198] sm:$0xff]  ;;  %v5443_v57 = vpack.c.bf16 %v1814_v13, %v1813_v52  ;;  %v1867_v52 = vld [vmem:[#allocation3 + $0x3a0] sm:$0xff] }
 0x2a9   :  { %v5419_v20 = vpack.c.bf16 %v1802_v51, %v1801_v18  ;;  %v1864_v18 = vld [vmem:[#allocation3 + $0x388] sm:$0xff]  ;;  %v1797_v51 = vld [vmem:[#allocation3 + $0x170] sm:$0xff]  ;;  %v1866_v59 = vld [vmem:[#allocation3 + $0x398] sm:$0xff] }
 0x2aa   :  { %v5445_v19 = vpack.c.bf16 %v1798_v4, %v1797_v51  ;;  %v1824_v51 = vld [vmem:[#allocation3 + $0x248] sm:$0xff] }
 0x2ab   :  { %5420 = vmatprep.subr.bf16.mxu1 %v5419_v20  ;;  %v1412_v21 = vpop.permute.xlu0 %1411  ;;  %v1686_v44 = vpop.permute.xlu1 %1685  ;;  %v1831_v10 = vld [vmem:[#allocation3 + $0x280] sm:$0xff] }
 0x2ac   :  { %5422 = vmatpush3.bf16.msra.mxu1 %v5421_v53  ;;  %1694 = vst.msk [vmem:[#allocation3 + $0x3f8] sm:$0xff] %vm207_vm0, %v1686_v44  ;;  %v1863_v20 = vld [vmem:[#allocation3 + $0x380] sm:$0xff] }
 0x2ad   :  { %5424 = vmatprep.subr.bf16.mxu1 %v5423_v62  ;;  %v5479_v55 = vpack.c.bf16 %v1864_v18, %v1863_v20  ;;  %v114_v62 = vld [vmem:[#allocation4 + $0x10] sm:$0xff]  ;;  %v1823_v18 = vld [vmem:[#allocation3 + $0x240] sm:$0xff] }
 0x2af   :  { %v1472_v6 = vpop.permute.xlu0 %1471  ;;  %v1414_v26 = vpop.permute.xlu1 %1413 }
 0x2b0   :  { %1483 = vst.msk [vmem:[#allocation3 + $0x300] sm:$0xff] %vm207_vm0, %v1472_v6  ;;  %5426 = vmatpush3.bf16.msra.mxu1 %v5425_v23  ;;  %v1427_v28 = vsel %vm976_vm3, %v1412_v21, %v1414_v26  ;;  %v1865_v23 = vld [vmem:[#allocation3 + $0x390] sm:$0xff] }
 0x2b1   :  { %1435 = vst.msk [vmem:[#allocation3 + $0x2c0] sm:$0xff] %vm207_vm0, %v1427_v28  ;;  %5428 = vmatprep.subr.bf16.mxu1 %v5427_v60  ;;  %v5483_v26 = vpack.c.bf16 %v1866_v59, %v1865_v23  ;;  %v133_v28 = vld [vmem:[#allocation4 + $0xa8] sm:$0xff] }
 0x2b3   :  { %v1504_v31 = vpop.permute.xlu0 %1503  ;;  %v1358_v38 = vpop.permute.xlu1 %1357 }
 0x2b4   :  { %v1519_v32 = vsel %vm1069_vm4, %v1504_v31, %v6590_v5  ;;  %5430 = vmatpush3.bf16.msra.mxu1 %v5429_v56  ;;  %1368 = vst.msk [vmem:[#allocation3 + $0x288] sm:$0xff] %vm207_vm0, %v1358_v38  ;;  %v1793_v5 = vld [vmem:[#allocation3 + $0x150] sm:$0xff]  ;;  %v132_v56 = vld [vmem:[#allocation4 + $0xa0] sm:$0xff]  ;;  %v1818_v38 = vld [vmem:[#allocation3 + $0x218] sm:$0xff] }
 0x2b5   :  { %1527 = vst.msk [vmem:[#allocation3 + $0x320] sm:$0xff] %vm207_vm0, %v1519_v32  ;;  %5432 = vmatprep.subr.bf16.mxu1 %v5431_v36  ;;  %v5437_v1 = vpack.c.bf16 %v1794_v41, %v1793_v5  ;;  %v1817_v31 = vld [vmem:[#allocation3 + $0x210] sm:$0xff]  ;;  %v119_v41 = vld [vmem:[#allocation4 + $0x38] sm:$0xff]  ;;  %v1819_v5 = vld [vmem:[#allocation3 + $0x220] sm:$0xff] }
 0x2b7   :  { %v1416_v39 = vpop.permute.xlu0 %1415  ;;  %v1382_v3 = vpop.permute.xlu1 %1381  ;;  %v1847_v21 = vld [vmem:[#allocation3 + $0x300] sm:$0xff] }
 0x2b8   :  { %5434 = vmatpush3.bf16.msra.mxu1 %v5433_v35  ;;  %1392 = vst.msk [vmem:[#allocation3 + $0x2a8] sm:$0xff] %vm207_vm0, %v1382_v3  ;;  %v5453_v3 = vpack.c.bf16 %v1818_v38, %v1817_v31  ;;  %v1855_v31 = vld [vmem:[#allocation3 + $0x340] sm:$0xff] }
 0x2b9   :  { %5436 = vmatprep.subr.bf16.mxu1 %v5435_v40  ;;  %v1835_v40 = vld [vmem:[#allocation3 + $0x2a0] sm:$0xff] }
 0x2bb   :  { %v1508_v8 = vpop.permute.xlu0 %1507  ;;  %v1474_v47 = vpop.permute.xlu1 %1473  ;;  %v1832_v50 = vld [vmem:[#allocation3 + $0x288] sm:$0xff] }
 0x2bc   :  { %v1520_v12 = vsel %vm1069_vm4, %v1508_v8, %v6625_v16  ;;  %5438 = vmatpush3.bf16.msra.mxu1 %v5437_v1  ;;  %1484 = vst.msk [vmem:[#allocation3 + $0x308] sm:$0xff] %vm207_vm0, %v1474_v47  ;;  %v5447_v49 = vpack.c.bf16 %v1832_v50, %v1831_v10  ;;  %v1820_v1 = vld [vmem:[#allocation3 + $0x228] sm:$0xff]  ;;  %v1821_v10 = vld [vmem:[#allocation3 + $0x230] sm:$0xff]  ;;  %v1822_v50 = vld [vmem:[#allocation3 + $0x238] sm:$0xff] }
 0x2bd   :  { %1528 = vst.msk [vmem:[#allocation3 + $0x328] sm:$0xff] %vm207_vm0, %v1520_v12  ;;  %5440 = vmatprep.subr.bf16.mxu1 %v5439_v9 }
 0x2be   :  { %5448 = vmatprep.subr.bf16.mxu0 %v5447_v49 }
 0x2bf   :  { %v1360_v54 = vpop.permute.xlu0 %1359  ;;  %v1418_v17 = vpop.permute.xlu1 %1417  ;;  %5450 = vmatpush3.bf16.msra.mxu0 %v5449_v15  ;;  %v1836_v34 = vld [vmem:[#allocation3 + $0x2a8] sm:$0xff] }
 0x2c0   :  { %1369 = vst.msk [vmem:[#allocation3 + $0x290] sm:$0xff] %vm207_vm0, %v1360_v54  ;;  %5442 = vmatpush3.bf16.msra.mxu1 %v5441_v61  ;;  %v1428_v16 = vsel %vm976_vm3, %v1416_v39, %v1418_v17  ;;  %v141_v39 = vld [vmem:[#allocation4 + $0xe8] sm:$0xff]  ;;  %v5455_v2 = vpack.c.bf16 %v1836_v34, %v1835_v40  ;;  %v5461_v54 = vpack.c.bf16 %v1822_v50, %v1821_v10  ;;  %v1859_v10 = vld [vmem:[#allocation3 + $0x360] sm:$0xff] }
 0x2c1   :  { %1436 = vst.msk [vmem:[#allocation3 + $0x2c8] sm:$0xff] %vm207_vm0, %v1428_v16  ;;  %5444 = vmatprep.subr.bf16.mxu1 %v5443_v57  ;;  %v5487_v17 = vpack.c.bf16 %v1868_v11, %v1867_v52  ;;  %v1839_v57 = vld [vmem:[#allocation3 + $0x2c0] sm:$0xff]  ;;  %v1877_v11 = vld [vmem:[#allocation3 + $0x3f0] sm:$0xff] }
 0x2c3   :  { %v1384_v48 = vpop.permute.xlu0 %1383  ;;  %v1422_v53 = vpop.permute.xlu1 %1421  ;;  %v1848_v44 = vld [vmem:[#allocation3 + $0x308] sm:$0xff] }
 0x2c4   :  { %1393 = vst.msk [vmem:[#allocation3 + $0x2b0] sm:$0xff] %vm207_vm0, %v1384_v48  ;;  %5446 = vmatpush3.bf16.msra.mxu1 %v5445_v19  ;;  %v5481_v22 = vpack.c.bf16 %v1848_v44, %v1847_v21  ;;  %v1852_v4 = vld [vmem:[#allocation3 + $0x328] sm:$0xff]  ;;  %v1870_v19 = vld [vmem:[#allocation3 + $0x3b8] sm:$0xff]  ;;  %v1869_v21 = vld [vmem:[#allocation3 + $0x3b0] sm:$0xff]  ;;  %v5465_v44 = vpack.c.bf16 %v1824_v51, %v1823_v18 }
 0x2c5   :  { %5480 = vmatprep.subr.bf16.mxu1 %v5479_v55 }
 0x2c7   :  { %v1420_v25 = vpop.permute.xlu0 %1419  ;;  %v1362_v6 = vpop.permute.xlu1 %1361  ;;  %2144 = vmatmul.mubr.f32.vlgmr.msra.gmra.mrb[32].mxu1 %v114_v62  ;;  %v1833_v32 = vld [vmem:[#allocation3 + $0x290] sm:$0xff]  ;;  %v5491_v62 = vpack.c.bf16 %v1870_v19, %v1869_v21 }
 0x2c8   :  { %v1429_v60 = vsel %vm976_vm3, %v1420_v25, %v1422_v53  ;;  %1370 = vst.msk [vmem:[#allocation3 + $0x298] sm:$0xff] %vm207_vm0, %v1362_v6  ;;  %5482 = vmatpush3.bf16.msra.mxu1 %v5481_v22  ;;  %2148 = vmatprep.mubr.f32.mxu1 %v124_v58  ;;  %v1840_v14 = vld [vmem:[#allocation3 + $0x2c8] sm:$0xff]  ;;  %v1851_v53 = vld [vmem:[#allocation3 + $0x320] sm:$0xff] }
 0x2c9   :  { %1437 = vst.msk [vmem:[#allocation3 + $0x2d0] sm:$0xff] %vm207_vm0, %v1429_v60  ;;  %5484 = vmatprep.subr.bf16.mxu1 %v5483_v26  ;;  %v5463_v16 = vpack.c.bf16 %v1840_v14, %v1839_v57  ;;  %v5489_v55 = vpack.c.bf16 %v1852_v4, %v1851_v53  ;;  %v1872_v58 = vld [vmem:[#allocation3 + $0x3c8] sm:$0xff]  ;;  %v1861_v4 = vld [vmem:[#allocation3 + $0x370] sm:$0xff] }
 0x2ca   :  { %v118_v53 = vld [vmem:[#allocation4 + $0x30] sm:$0xff] }
 0x2cb   :  { %v1476_v7 = vpop.permute.xlu0 %1475  ;;  %v1386_v29 = vpop.permute.xlu1 %1385  ;;  %2149 = vmatmul.mubr.f32.gmra.mrb[34].mxu1 %v123_v27  ;;  %v1837_v47 = vld [vmem:[#allocation3 + $0x2b0] sm:$0xff]  ;;  %v1871_v27 = vld [vmem:[#allocation3 + $0x3c0] sm:$0xff] }
 0x2cc   :  { %1485 = vst.msk [vmem:[#allocation3 + $0x310] sm:$0xff] %vm207_vm0, %v1476_v7  ;;  %1394 = vst.msk [vmem:[#allocation3 + $0x2b8] sm:$0xff] %vm207_vm0, %v1386_v29  ;;  %2153 = vmatprep.mubr.f32.mxu1 %v133_v28  ;;  %v5495_v28 = vpack.c.bf16 %v1872_v58, %v1871_v27  ;;  %v1856_v7 = vld [vmem:[#allocation3 + $0x348] sm:$0xff] }
 0x2cd   :  { %v5497_v38 = vpack.c.bf16 %v1856_v7, %v1855_v31 }
 0x2cf   :  { %v1512_v36 = vpop.permute.xlu0 %1511  ;;  %v1478_v63 = vpop.permute.xlu1 %1477  ;;  %v1834_v33 = vld [vmem:[#allocation3 + $0x298] sm:$0xff]  ;;  %2154 = vmatmul.mubr.f32.gmra.mrb[36].mxu1 %v132_v56 }
 0x2d0   :  { %v1521_v35 = vsel %vm1069_vm4, %v1512_v36, %v6706_v45  ;;  %1486 = vst.msk [vmem:[#allocation3 + $0x318] sm:$0xff] %vm207_vm0, %v1478_v63  ;;  %v5451_v37 = vpack.c.bf16 %v1834_v33, %v1833_v32  ;;  %2158 = vmatprep.mubr.f32.mxu1 %v142_v30  ;;  %v5457_v45 = vpack.c.bf16 %v1820_v1, %v1819_v5  ;;  %v1874_v30 = vld [vmem:[#allocation3 + $0x3d8] sm:$0xff]  ;;  %v1873_v36 = vld [vmem:[#allocation3 + $0x3d0] sm:$0xff]  ;;  %v1875_v5 = vld [vmem:[#allocation3 + $0x3e0] sm:$0xff] }
 0x2d1   :  { %1529 = vst.msk [vmem:[#allocation3 + $0x330] sm:$0xff] %vm207_vm0, %v1521_v35  ;;  %v5499_v63 = vpack.c.bf16 %v1874_v30, %v1873_v36  ;;  %v1858_v32 = vld [vmem:[#allocation3 + $0x358] sm:$0xff]  ;;  %v1876_v35 = vld [vmem:[#allocation3 + $0x3e8] sm:$0xff]  ;;  %v1825_v1 = vld [vmem:[#allocation3 + $0x250] sm:$0xff] }
 0x2d2   :  { %5452 = vmatprep.subr.bf16.mxu0 %v5451_v37 }
 0x2d3   :  { %v1424_v46 = vpop.permute.xlu0 %1423  ;;  %v1294_v42 = vpop.permute.xlu1 %1293  ;;  %5454 = vmatpush3.bf16.msra.mxu0 %v5453_v3  ;;  %v1838_v8 = vld [vmem:[#allocation3 + $0x2b8] sm:$0xff]  ;;  %2159 = vmatmul.mubr.f32.gmra.mrb[38].mxu1 %v141_v39  ;;  %v1849_v43 = vld [vmem:[#allocation3 + $0x310] sm:$0xff] }
 0x2d4   :  { %1302 = vst.msk [vmem:[#allocation3 + $0x258] sm:$0xff] %vm207_vm0, %v1294_v42  ;;  %5456 = vmatprep.subr.bf16.mxu0 %v5455_v2  ;;  %2313 = vmatprep.mubr.f32.mxu1 %v119_v41  ;;  %v5459_v9 = vpack.c.bf16 %v1838_v8, %v1837_v47  ;;  %v1857_v39 = vld [vmem:[#allocation3 + $0x350] sm:$0xff]  ;;  %v1860_v8 = vld [vmem:[#allocation3 + $0x368] sm:$0xff] }
 0x2d5   :  { %v1841_v3 = vld [vmem:[#allocation3 + $0x2d0] sm:$0xff]  ;;  %v5501_v41 = vpack.c.bf16 %v1858_v32, %v1857_v39  ;;  %v5505_v50 = vpack.c.bf16 %v1860_v8, %v1859_v10  ;;  %v145_v32 = vld [vmem:[#allocation4 + $0x108] sm:$0xff]  ;;  %v120_v39 = vld [vmem:[#allocation4 + $0x40] sm:$0xff] }
 0x2d6   :  { %v135_v8 = vld [vmem:[#allocation4 + $0xb8] sm:$0xff]  ;;  %v144_v10 = vld [vmem:[#allocation4 + $0x100] sm:$0xff] }
 0x2d7   :  { %v1516_v12 = vpop.permute.xlu0 %1515  ;;  %v1322_v49 = vpop.permute.xlu1 %1321  ;;  %5458 = vmatpush3.bf16.msra.mxu0 %v5457_v45  ;;  %v1850_v13 = vld [vmem:[#allocation3 + $0x318] sm:$0xff] }
 0x2d8   :  { %v1522_v15 = vsel %vm1069_vm4, %v1516_v12, %v6740_v24  ;;  %5460 = vmatprep.subr.bf16.mxu0 %v5459_v9  ;;  %v5485_v61 = vpack.c.bf16 %v1850_v13, %v1849_v43  ;;  %v1853_v6 = vld [vmem:[#allocation3 + $0x330] sm:$0xff]  ;;  %v1878_v9 = vld [vmem:[#allocation3 + $0x3f8] sm:$0xff]  ;;  %v1880_v13 = vld [vmem:[#allocation3 + $0x408] sm:$0xff] }
 0x2d9   :  { %1530 = vst.msk [vmem:[#allocation3 + $0x338] sm:$0xff] %vm207_vm0, %v1522_v15  ;;  %v5507_v12 = vpack.c.bf16 %v1878_v9, %v1877_v11  ;;  %v129_v9 = vld [vmem:[#allocation4 + $0x88] sm:$0xff]  ;;  %v143_v11 = vld [vmem:[#allocation4 + $0xf8] sm:$0xff] }
 0x2da   :  { %5486 = vmatpush3.bf16.msra.mxu1 %v5485_v61 }
 0x2db   :  { %v1320_v20 = vpop.permute.xlu0 %1319  ;;  %v1326_v48 = vpop.permute.xlu1 %1325  ;;  %5462 = vmatpush3.bf16.msra.mxu0 %v5461_v54  ;;  %5488 = vmatprep.subr.bf16.mxu1 %v5487_v17  ;;  %v1826_v37 = vld [vmem:[#allocation3 + $0x258] sm:$0xff]  ;;  %v1879_v54 = vld [vmem:[#allocation3 + $0x400] sm:$0xff] }
 0x2dc   :  { %v1335_v24 = vsel %vm883_vm1, %v1320_v20, %v1322_v49  ;;  %5464 = vmatprep.subr.bf16.mxu0 %v5463_v16  ;;  %v5469_v42 = vpack.c.bf16 %v1826_v37, %v1825_v1  ;;  %v1862_v49 = vld [vmem:[#allocation3 + $0x378] sm:$0xff]  ;;  %v5511_v19 = vpack.c.bf16 %v1880_v13, %v1879_v54  ;;  %v125_v1 = vld [vmem:[#allocation4 + $0x68] sm:$0xff]  ;;  %v2434_v13 = vld [vmem:[#allocation12] sm:$0xff] }
 0x2dd   :  { %1343 = vst.msk [vmem:[#allocation3 + $0x260] sm:$0xff] %vm207_vm0, %v1335_v24  ;;  %v5509_v18 = vpack.c.bf16 %v1862_v49, %v1861_v4  ;;  %v1881_v24 = vld [vmem:[#allocation3 + $0x410] sm:$0xff]  ;;  %v2435_v49 = vld [vmem:[#allocation12 + $0x8] sm:$0xff]  ;;  %v2449_v4 = vld [vmem:[#allocation12 + $0x78] sm:$0xff] }
 0x2de   :  { %5490 = vmatpush3.bf16.msra.mxu1 %v5489_v55  ;;  %v1882_v55 = vld [vmem:[#allocation3 + $0x418] sm:$0xff] }
 0x2df   :  { %v1324_v22 = vpop.permute.xlu0 %1323  ;;  %v1426_v59 = vpop.permute.xlu1 %1425  ;;  %5466 = vmatpush3.bf16.msra.mxu0 %v5465_v44  ;;  %5492 = vmatprep.subr.bf16.mxu1 %v5491_v62  ;;  %v128_v44 = vld [vmem:[#allocation4 + $0x80] sm:$0xff]  ;;  %v5515_v62 = vpack.c.bf16 %v1882_v55, %v1881_v24  ;;  %v2472_v24 = vld [vmem:[#allocation12 + $0x130] sm:$0xff] }
 0x2e0   :  { %v1336_v23 = vsel %vm883_vm1, %v1324_v22, %v1326_v48  ;;  %v1430_v25 = vsel %vm976_vm3, %v1424_v46, %v1426_v59  ;;  %v1854_v26 = vld [vmem:[#allocation3 + $0x338] sm:$0xff]  ;;  %v5503_v46 = vpack.c.bf16 %v1876_v35, %v1875_v5  ;;  %v126_v5 = vld [vmem:[#allocation4 + $0x70] sm:$0xff] }
 0x2e1   :  { %1344 = vst.msk [vmem:[#allocation3 + $0x268] sm:$0xff] %vm207_vm0, %v1336_v23  ;;  %1438 = vst.msk [vmem:[#allocation3 + $0x2d8] sm:$0xff] %vm207_vm0, %v1430_v25  ;;  %v5493_v60 = vpack.c.bf16 %v1854_v26, %v1853_v6  ;;  %v127_v25 = vld [vmem:[#allocation4 + $0x78] sm:$0xff]  ;;  %v137_v6 = vld [vmem:[#allocation4 + $0xc8] sm:$0xff] }
 0x2e3   :  { %v1712_v29 = vpop.permute.xlu0 %1711  ;;  %5494 = vmatpush3.bf16.msra.mxu1 %v5493_v60  ;;  %v1714_v56 = vpop.permute.xlu1 %1713 }
 0x2e4   :  { %1723 = vst.msk [vmem:[#allocation3 + $0x420] sm:$0xff] %vm207_vm0, %v1712_v29  ;;  %1724 = vst.msk [vmem:[#allocation3 + $0x428] sm:$0xff] %vm207_vm0, %v1714_v56  ;;  %5496 = vmatprep.subr.bf16.mxu1 %v5495_v28  ;;  %v1827_v16 = vld [vmem:[#allocation3 + $0x260] sm:$0xff]  ;;  %v146_v56 = vld [vmem:[#allocation4 + $0x110] sm:$0xff] }
 0x2e5   :  { %v136_v29 = vld [vmem:[#allocation4 + $0xc0] sm:$0xff] }
 0x2e7   :  { %v1448_v33 = vpop.permute.xlu0 %1447  ;;  %5498 = vmatpush3.bf16.msra.mxu1 %v5497_v38  ;;  %v1450_v34 = vpop.permute.xlu1 %1449 }
 0x2e8   :  { %1459 = vst.msk [vmem:[#allocation3 + $0x2e0] sm:$0xff] %vm207_vm0, %v1448_v33  ;;  %1460 = vst.msk [vmem:[#allocation3 + $0x2e8] sm:$0xff] %vm207_vm0, %v1450_v34  ;;  %5500 = vmatprep.subr.bf16.mxu1 %v5499_v63  ;;  %v1842_v40 = vld [vmem:[#allocation3 + $0x2d8] sm:$0xff]  ;;  %v1828_v43 = vld [vmem:[#allocation3 + $0x268] sm:$0xff] }
 0x2e9   :  { %v5467_v2 = vpack.c.bf16 %v1842_v40, %v1841_v3  ;;  %v5473_v51 = vpack.c.bf16 %v1828_v43, %v1827_v16  ;;  %v116_v3 = vld [vmem:[#allocation4 + $0x20] sm:$0xff] }
 0x2ea   :  { %v2446_v43 = vld [vmem:[#allocation12 + $0x60] sm:$0xff] }
 0x2eb   :  { %v1716_v45 = vpop.permute.xlu0 %1715  ;;  %5502 = vmatpush3.bf16.msra.mxu1 %v5501_v41  ;;  %v1718_v47 = vpop.permute.xlu1 %1717  ;;  %5468 = vmatprep.subr.bf16.mxu0 %v5467_v2  ;;  %v1883_v58 = vld [vmem:[#allocation3 + $0x420] sm:$0xff]  ;;  %v1884_v23 = vld [vmem:[#allocation3 + $0x428] sm:$0xff] }
 0x2ec   :  { %1725 = vst.msk [vmem:[#allocation3 + $0x430] sm:$0xff] %vm207_vm0, %v1716_v45  ;;  %1726 = vst.msk [vmem:[#allocation3 + $0x438] sm:$0xff] %vm207_vm0, %v1718_v47  ;;  %5504 = vmatprep.subr.bf16.mxu1 %v5503_v46  ;;  %5470 = vmatpush3.bf16.msra.mxu0 %v5469_v42  ;;  %v5519_v26 = vpack.c.bf16 %v1884_v23, %v1883_v58  ;;  %v134_v47 = vld [vmem:[#allocation4 + $0xb0] sm:$0xff]  ;;  %v2483_v58 = vld [vmem:[#allocation12 + $0x188] sm:$0xff] }
 0x2ed   :  { %v2478_v23 = vld [vmem:[#allocation12 + $0x160] sm:$0xff] }
 0x2ef   :  { %v1328_v14 = vpop.permute.xlu0 %1327  ;;  %5506 = vmatpush3.bf16.msra.mxu1 %v5505_v50  ;;  %v1330_v15 = vpop.permute.xlu1 %1329  ;;  %v1843_v61 = vld [vmem:[#allocation3 + $0x2e0] sm:$0xff]  ;;  %v1844_v52 = vld [vmem:[#allocation3 + $0x2e8] sm:$0xff]  ;;  %v138_v50 = vld [vmem:[#allocation4 + $0xd0] sm:$0xff] }
 0x2f0   :  { %v1337_v17 = vsel %vm883_vm1, %v1328_v14, %v1330_v15  ;;  %5508 = vmatprep.subr.bf16.mxu1 %v5507_v12  ;;  %v5471_v57 = vpack.c.bf16 %v1844_v52, %v1843_v61  ;;  %v147_v12 = vld [vmem:[#allocation4 + $0x118] sm:$0xff]  ;;  %v5535_v14 = vpack.c.bf16 %v2446_v43, %v2435_v49  ;;  %v2439_v61 = vld [vmem:[#allocation12 + $0x28] sm:$0xff]  ;;  %v2450_v52 = vld [vmem:[#allocation12 + $0x80] sm:$0xff] }
 0x2f1   :  { %1345 = vst.msk [vmem:[#allocation3 + $0x270] sm:$0xff] %vm207_vm0, %v1337_v17  ;;  %v2445_v15 = vld [vmem:[#allocation12 + $0x58] sm:$0xff]  ;;  %v5551_v17 = vpack.c.bf16 %v2450_v52, %v2439_v61 }
 0x2f2   :  { %5472 = vmatprep.subr.bf16.mxu0 %v5471_v57  ;;  %v5537_v54 = vpack.c.bf16 %v2445_v15, %v2434_v13  ;;  %v2438_v57 = vld [vmem:[#allocation12 + $0x20] sm:$0xff] }
 0x2f3   :  { %v1332_v20 = vpop.permute.xlu0 %1331  ;;  %5510 = vmatpush3.bf16.msra.mxu1 %v5509_v18  ;;  %v1334_v48 = vpop.permute.xlu1 %1333  ;;  %5474 = vmatpush3.bf16.msra.mxu0 %v5473_v51  ;;  %v1885_v28 = vld [vmem:[#allocation3 + $0x430] sm:$0xff]  ;;  %v1886_v7 = vld [vmem:[#allocation3 + $0x438] sm:$0xff]  ;;  %v5553_v16 = vpack.c.bf16 %v2449_v4, %v2438_v57 }
 0x2f4   :  { %v1338_v21 = vsel %vm883_vm1, %v1332_v20, %v1334_v48  ;;  %5512 = vmatprep.subr.bf16.mxu1 %v5511_v19  ;;  %v5523_v30 = vpack.c.bf16 %v1886_v7, %v1885_v28  ;;  %v2457_v18 = vld [vmem:[#allocation12 + $0xb8] sm:$0xff]  ;;  %v2468_v51 = vld [vmem:[#allocation12 + $0x110] sm:$0xff]  ;;  %v2443_v7 = vld [vmem:[#allocation12 + $0x48] sm:$0xff] }
 0x2f5   :  { %1346 = vst.msk [vmem:[#allocation3 + $0x278] sm:$0xff] %vm207_vm0, %v1338_v21  ;;  %v5539_v20 = vpack.c.bf16 %v2468_v51, %v2457_v18  ;;  %v2456_v48 = vld [vmem:[#allocation12 + $0xb0] sm:$0xff] }
 0x2f6   :  { %2314 = vmatmul.mubr.f32.vlgmr.msra.gmra.mrb[40].mxu1 %v118_v53  ;;  %v2467_v53 = vld [vmem:[#allocation12 + $0x108] sm:$0xff]  ;;  %v2448_v28 = vld [vmem:[#allocation12 + $0x70] sm:$0xff] }
 0x2f7   :  { %v1452_v22 = vpop.permute.xlu0 %1451  ;;  %5514 = vmatpush3.bf16.msra.mxu1 %v5511_v19  ;;  %v1454_v59 = vpop.permute.xlu1 %1453  ;;  %2318 = vmatprep.mubr.f32.mxu1 %v128_v44  ;;  %v2461_v19 = vld [vmem:[#allocation12 + $0xd8] sm:$0xff]  ;;  %v5541_v55 = vpack.c.bf16 %v2467_v53, %v2456_v48  ;;  %v2460_v44 = vld [vmem:[#allocation12 + $0xd0] sm:$0xff] }
 0x2f8   :  { %1461 = vst.msk [vmem:[#allocation3 + $0x2f0] sm:$0xff] %vm207_vm0, %v1452_v22  ;;  %1462 = vst.msk [vmem:[#allocation3 + $0x2f8] sm:$0xff] %vm207_vm0, %v1454_v59  ;;  %5516 = vmatprep.subr.bf16.mxu1 %v5515_v62  ;;  %v1829_v35 = vld [vmem:[#allocation3 + $0x270] sm:$0xff]  ;;  %v5555_v21 = vpack.c.bf16 %v2472_v24, %v2461_v19  ;;  %v2479_v59 = vld [vmem:[#allocation12 + $0x168] sm:$0xff] }
 0x2fa   :  { %2319 = vmatmul.mubr.f32.gmra.mrb[42].mxu1 %v127_v25  ;;  %v2482_v25 = vld [vmem:[#allocation12 + $0x180] sm:$0xff] }
 0x2fb   :  { %v1736_v60 = vpop.permute.xlu0 %1735  ;;  %5518 = vmatpush3.bf16.msra.mxu1 %v5515_v62  ;;  %v1738_v27 = vpop.permute.xlu1 %1737  ;;  %2323 = vmatprep.mubr.f32.mxu1 %v137_v6  ;;  %v2471_v62 = vld [vmem:[#allocation12 + $0x128] sm:$0xff] }
 0x2fc   :  { %1747 = vst.msk [vmem:[#allocation3 + $0x440] sm:$0xff] %vm207_vm0, %v1736_v60  ;;  %1748 = vst.msk [vmem:[#allocation3 + $0x448] sm:$0xff] %vm207_vm0, %v1738_v27  ;;  %5520 = vmatprep.subr.bf16.mxu1 %v5519_v26  ;;  %v1830_v31 = vld [vmem:[#allocation3 + $0x278] sm:$0xff]  ;;  %v5557_v22 = vpack.c.bf16 %v2471_v62, %v2460_v44 }
 0x2fd   :  { %v5477_v37 = vpack.c.bf16 %v1830_v31, %v1829_v35  ;;  %v2437_v27 = vld [vmem:[#allocation12 + $0x18] sm:$0xff] }
 0x2fe   :  { %2324 = vmatmul.mubr.f32.gmra.mrb[44].mxu1 %v136_v29 }
 0x2ff   :  { %v1740_v38 = vpop.permute.xlu0 %1739  ;;  %5522 = vmatpush3.bf16.msra.mxu1 %v5519_v26  ;;  %v1845_v36 = vld [vmem:[#allocation3 + $0x2f0] sm:$0xff]  ;;  %v1846_v63 = vld [vmem:[#allocation3 + $0x2f8] sm:$0xff]  ;;  %2328 = vmatprep.mubr.f32.mxu1 %v146_v56  ;;  %v5543_v56 = vpack.c.bf16 %v2448_v28, %v2437_v27 }
 0x300   :  { %1749 = vst.msk [vmem:[#allocation3 + $0x450] sm:$0xff] %vm207_vm0, %v1740_v38  ;;  %v1742_v33 = vpop.permute.xlu1 %1741  ;;  %5524 = vmatprep.subr.bf16.mxu1 %v5523_v30  ;;  %v5475_v34 = vpack.c.bf16 %v1846_v63, %v1845_v36 }
 0x301   :  { %1750 = vst.msk [vmem:[#allocation3 + $0x458] sm:$0xff] %vm207_vm0, %v1742_v33 }
 0x302   :  { %5476 = vmatprep.subr.bf16.mxu0 %v5475_v34  ;;  %2329 = vmatmul.mubr.f32.gmra.mrb[46].mxu1 %v145_v32 }
 0x303   :  { %5526 = vmatpush3.bf16.msra.mxu1 %v5523_v30  ;;  %5478 = vmatpush3.bf16.msra.mxu0 %v5477_v37  ;;  %v1887_v40 = vld [vmem:[#allocation3 + $0x440] sm:$0xff]  ;;  %v1888_v41 = vld [vmem:[#allocation3 + $0x448] sm:$0xff] }
 0x304   :  { %v5527_v2 = vpack.c.bf16 %v1888_v41, %v1887_v40  ;;  %5259 = vmatprep.mubr.msk.f32.mxu1 %vm1981_vm6, %v120_v39  ;;  %5536 = vmatprep.subr.bf16.mxu0 %v5535_v14  ;;  %v2454_v30 = vld [vmem:[#allocation12 + $0xa0] sm:$0xff] }
 0x305   :  { %v5567_v38 = vpack.c.bf16 %v2454_v30, %v2443_v7  ;;  %v2442_v7 = vld [vmem:[#allocation12 + $0x40] sm:$0xff] }
 0x306   :  { %2229 = vmatmul.mubr.f32.vlgmr.msra.gmra.mrb[24].mxu0 %v116_v3  ;;  %5528 = vmatprep.subr.bf16.mxu1 %v5527_v2 }
 0x307   :  { %5530 = vmatpush3.bf16.msra.mxu1 %v5527_v2  ;;  %2233 = vmatprep.mubr.f32.mxu0 %v126_v5  ;;  %v1889_v46 = vld [vmem:[#allocation3 + $0x450] sm:$0xff] }
 0x308   :  { %v1890_v42 = vld [vmem:[#allocation3 + $0x458] sm:$0xff]  ;;  %5538 = vmatpush1.bf16.msra.mxu0 %v5537_v54 }
 0x309   :  { %v5531_v45 = vpack.c.bf16 %v1890_v42, %v1889_v46  ;;  %5540 = vmatprep.subr.bf16.mxu0 %v5539_v20 }
 0x30a   :  { %2234 = vmatmul.mubr.f32.gmra.mrb[26].mxu0 %v125_v1 }
 0x30b   :  { %5532 = vmatprep.subr.bf16.mxu1 %v5531_v45  ;;  %2238 = vmatprep.mubr.f32.mxu0 %v135_v8 }
 0x30c   :  { %5534 = vmatpush3.bf16.msra.mxu1 %v5531_v45  ;;  %5542 = vmatpush1.bf16.msra.mxu0 %v5541_v55 }
 0x30d   :  { %5552 = vmatprep.subr.bf16.mxu1 %v5551_v17  ;;  %2509 = vmatprep.subr.mxu0 %v2479_v59  ;;  %v4749_v59 = vld [vmem:[%s7558_s4] ss:$0 sm:$0xff] }
 0x30e   :  { %2239 = vmatmul.mubr.f32.gmra.mrb[28].mxu0 %v134_v47 }
 0x30f   :  { %5260 = vmatmul.mubr.msk.f32.vlgmr.msra.gmra.mrb[28].mxu1 %vm1981_vm6, %v129_v9  ;;  %2243 = vmatprep.mubr.f32.mxu0 %v144_v10 }
 0x310   :  { %5262 = vmatprep.mubr.msk.f32.mxu1 %vm1981_vm6, %v138_v50  ;;  %5554 = vmatpush1.bf16.msra.mxu1 %v5553_v16 }
 0x311   :  { %5556 = vmatprep.subr.bf16.mxu1 %v5555_v21  ;;  %2510 = vmatpush1.msra.mxu0 %v2478_v23 }
 0x312   :  { %2244 = vmatmul.mubr.f32.gmra.mrb[30].mxu0 %v143_v11  ;;  %5544 = vmatprep.subr.bf16.mxu0 %v5543_v56  ;;  %v2459_v56 = vld [vmem:[#allocation12 + $0xc8] sm:$0xff] }
 0x313   :  { %5263 = vmatmul.mubr.msk.f32.gmra.mrb[30].mxu1 %vm1981_vm6, %v147_v12  ;;  %2565 = vmatprep.mubr.f32.mxu0 %v6021_v0 }
 0x314   :  { %2743 = vmatprep.mubr.f32.mxu1 %v6021_v0  ;;  %5558 = vmatpush1.bf16.msra.mxu1 %v5557_v22 }
 0x315   :  { %2687 = vmatprep.subr.mxu1 %v2483_v58 }
 0x318   :  { %2688 = vmatpush1.msra.mxu1 %v2482_v25 }
 0x319   :  { %5568 = vmatprep.subr.bf16.mxu1 %v5567_v38 }
 0x36a   :  { %v4833_v6 = vpop.f32.mrb[16].mxu0 }
 0x36b   :  { %v4834_v26 = vpop.f32.mrb[17].mxu0 }
 0x36c   :  { %v4835_v60 = vadd.f32 %v4834_v26, %v4833_v6  ;;  %v2436_v6 = vld [vmem:[#allocation12 + $0x10] sm:$0xff]  ;;  %v2447_v26 = vld [vmem:[#allocation12 + $0x68] sm:$0xff] }
 0x36e   :  { %v4836_v29 = vpop.f32.mrb[18].mxu0 }
 0x36f   :  { %v4837_v31 = vpop.f32.mrb[19].mxu0 }
 0x370   :  { %v4838_v36 = vadd.f32 %v4837_v31, %v4836_v29  ;;  %v2453_v29 = vld [vmem:[#allocation12 + $0x98] sm:$0xff] }
 0x372   :  { %v4839_v63 = vpop.f32.mrb[20].mxu0 }
 0x373   :  { %v4840_v32 = vpop.f32.mrb[21].mxu0 }
 0x374   :  { %v4841_v33 = vadd.f32 %v4840_v32, %v4839_v63  ;;  %v2465_v63 = vld [vmem:[#allocation12 + $0xf8] sm:$0xff]  ;;  %v2476_v32 = vld [vmem:[#allocation12 + $0x150] sm:$0xff] }
 0x376   :  { %v4842_v34 = vpop.f32.mrb[22].mxu0 }
 0x377   :  { %v4843_v35 = vpop.f32.mrb[23].mxu0 }
 0x378   :  { %v4844_v37 = vadd.f32 %v4843_v35, %v4842_v34 }
 0x39a   :  { %v4877_v39 = vpop.f32.mrb[32].mxu1 }
 0x39b   :  { %v4878_v3 = vpop.f32.mrb[33].mxu1 }
 0x39c   :  { %v4879_v40 = vadd.f32 %v4878_v3, %v4877_v39  ;;  %v5545_v3 = vpack.c.bf16 %v2447_v26, %v2436_v6  ;;  %v2488_v6 = vld [vmem:[#allocation12 + $0x1b0] sm:$0xff]  ;;  %v4167_v26 = vld [vmem:[#allocation13] sm:$0xff] }
 0x39e   :  { %v5747_v41 = vadd.f32 %v4879_v40, %v4835_v60  ;;  %v4880_v2 = vpop.f32.mrb[34].mxu1  ;;  %v5569_v40 = vpack.c.bf16 %v2453_v29, %v2442_v7  ;;  %v4170_v7 = vld [vmem:[#allocation13 + $0x18] sm:$0xff] }
 0x39f   :  { %v4881_v5 = vpop.f32.mrb[35].mxu1 }
 0x3a0   :  { %v4882_v1 = vadd.f32 %v4881_v5, %v4880_v2 }
 0x3a2   :  { %v5743_v46 = vadd.f32 %v4882_v1, %v4838_v36  ;;  %v4883_v42 = vpop.f32.mrb[36].mxu1  ;;  %v2470_v36 = vld [vmem:[#allocation12 + $0x120] sm:$0xff] }
 0x3a3   :  { %v4884_v8 = vpop.f32.mrb[37].mxu1  ;;  %v5547_v1 = vpack.c.bf16 %v2470_v36, %v2459_v56  ;;  %v5810_v56 = vld [vmem:[#allocation4 + $0x18] sm:$0xff] }
 0x3a4   :  { %v4885_v45 = vadd.f32 %v4884_v8, %v4883_v42  ;;  %v2469_v42 = vld [vmem:[#allocation12 + $0x118] sm:$0xff]  ;;  %v2464_v8 = vld [vmem:[#allocation12 + $0xf0] sm:$0xff] }
 0x3a6   :  { %v5755_v47 = vadd.f32 %v4885_v45, %v4841_v33  ;;  %v4886_v9 = vpop.f32.mrb[38].mxu1  ;;  %v2475_v45 = vld [vmem:[#allocation12 + $0x148] sm:$0xff] }
 0x3a7   :  { %v4887_v10 = vpop.f32.mrb[39].mxu1 }
 0x3a8   :  { %v4888_v50 = vadd.f32 %v4887_v10, %v4886_v9 }
 0x3aa   :  { %v5751_v11 = vadd.f32 %v4888_v50, %v4844_v37 }
 0x3c9   :  { %v4965_v12 = vpop.f32.mrb[40].mxu1 }
 0x3ca   :  { %v4966_v49 = vpop.f32.mrb[41].mxu1 }
 0x3cb   :  { %v4967_v43 = vadd.f32 %v4966_v49, %v4965_v12  ;;  %v2481_v49 = vld [vmem:[#allocation12 + $0x178] sm:$0xff] }
 0x3cd   :  { %v4968_v13 = vpop.f32.mrb[42].mxu1 }
 0x3ce   :  { %v4969_v14 = vpop.f32.mrb[43].mxu1 }
 0x3cf   :  { %v4970_v15 = vadd.f32 %v4969_v14, %v4968_v13  ;;  %v2441_v13 = vld [vmem:[#allocation12 + $0x38] sm:$0xff]  ;;  %v2452_v14 = vld [vmem:[#allocation12 + $0x90] sm:$0xff] }
 0x3d1   :  { %v4971_v61 = vpop.f32.mrb[44].mxu1 }
 0x3d2   :  { %v4972_v52 = vpop.f32.mrb[45].mxu1 }
 0x3d3   :  { %v4973_v54 = vadd.f32 %v4972_v52, %v4971_v61  ;;  %v2480_v52 = vld [vmem:[#allocation12 + $0x170] sm:$0xff] }
 0x3d5   :  { %v4974_v17 = vpop.f32.mrb[46].mxu1 }
 0x3d6   :  { %v4975_v57 = vpop.f32.mrb[47].mxu1 }
 0x3d7   :  { %v4976_v4 = vadd.f32 %v4975_v57, %v4974_v17  ;;  %v5559_v17 = vpack.c.bf16 %v2452_v14, %v2441_v13 }
 0x3d9   :  { %v4921_v16 = vpop.f32.mrb[24].mxu0 }
 0x3da   :  { %v4922_v18 = vpop.f32.mrb[25].mxu0 }
 0x3db   :  { %v4923_v51 = vadd.f32 %v4922_v18, %v4921_v16  ;;  %v2451_v16 = vld [vmem:[#allocation12 + $0x88] sm:$0xff] }
 0x3dc   :  { %v2463_v18 = vld [vmem:[#allocation12 + $0xe8] sm:$0xff] }
 0x3dd   :  { %v5748_v19 = vadd.f32 %v5747_v41, %v4923_v51  ;;  %v4924_v20 = vpop.f32.mrb[26].mxu0  ;;  %v2458_v41 = vld [vmem:[#allocation12 + $0xc0] sm:$0xff] }
 0x3de   :  { %v4925_v48 = vpop.f32.mrb[27].mxu0  ;;  %v5549_v50 = vpack.c.bf16 %v2469_v42, %v2458_v41  ;;  %v2474_v51 = vld [vmem:[#allocation12 + $0x140] sm:$0xff] }
 0x3df   :  { %v4926_v53 = vadd.f32 %v4925_v48, %v4924_v20  ;;  %v5749_v24 = vadd.f32 %v5748_v19, %v4967_v43  ;;  %v2487_v43 = vld [vmem:[#allocation12 + $0x1a8] sm:$0xff]  ;;  %v5563_v20 = vpack.c.bf16 %v2474_v51, %v2463_v18  ;;  %v2462_v48 = vld [vmem:[#allocation12 + $0xe0] sm:$0xff] }
 0x3e1   :  { %v5744_v55 = vadd.f32 %v5743_v46, %v4926_v53  ;;  %v4927_v21 = vpop.f32.mrb[28].mxu0  ;;  %v5571_v46 = vpack.c.bf16 %v2476_v32, %v2465_v63  ;;  %v2473_v53 = vld [vmem:[#allocation12 + $0x138] sm:$0xff] }
 0x3e2   :  { %v5261_v44 = vpop.f32.mrb[28].mxu1  ;;  %v4928_v62 = vpop.f32.mrb[29].mxu0 }
 0x3e3   :  { %v5745_v22 = vadd.f32 %v5744_v55, %v4970_v15  ;;  %v4929_v58 = vadd.f32 %v4928_v62, %v4927_v21  ;;  %v2400_v23 = vpop.f32.mrb[29].mxu1  ;;  %v2485_v55 = vld [vmem:[#allocation12 + $0x198] sm:$0xff]  ;;  %v2444_v21 = vld [vmem:[#allocation12 + $0x50] sm:$0xff] }
 0x3e4   :  { %v5750_v25 = vadd.f32 %v5749_v24, %v2400_v23  ;;  %v5565_v24 = vpack.c.bf16 %v2473_v53, %v2462_v48  ;;  %v2484_v62 = vld [vmem:[#allocation12 + $0x190] sm:$0xff]  ;;  %v5809_v23 = vld [vmem:[#allocation4 + $0x8] sm:$0xff] }
 0x3e5   :  { %v5746_v60 = vadd.f32 %v5745_v22, %v5261_v44  ;;  %v5756_v27 = vadd.f32 %v5755_v47, %v4929_v58  ;;  %v4930_v28 = vpop.f32.mrb[30].mxu0  ;;  %v2455_v44 = vld [vmem:[#allocation12 + $0xa8] sm:$0xff]  ;;  %v2477_v58 = vld [vmem:[#allocation12 + $0x158] sm:$0xff] }
 0x3e6   :  { %v2426_v30 = vadd.f32 %v5750_v25, %v4749_v59  ;;  %v5264_v31 = vpop.f32.mrb[30].mxu1  ;;  %v4931_v38 = vpop.f32.mrb[31].mxu0  ;;  %v5575_v22 = vpack.c.bf16 %v2455_v44, %v2444_v21 }
 0x3e7   :  { %v4932_v33 = vadd.f32 %v4931_v38, %v4930_v28  ;;  %v2410_v34 = vpop.f32.mrb[31].mxu1  ;;  %v5757_v35 = vadd.f32 %v5756_v27, %v4973_v54  ;;  %v2427_v37 = vadd.f32 %v5746_v60, %v4749_v59  ;;  %v2486_v54 = vld [vmem:[#allocation12 + $0x1a0] sm:$0xff]  ;;  %v4169_v28 = vld [vmem:[#allocation13 + $0x10] sm:$0xff] }
 0x3e8   :  { %v6836_v39 = vmax.f32 %v2426_v30, 0.0  ;;  %v4168_v60 = vld [vmem:[#allocation13 + $0x8] sm:$0xff]  ;;  %v5587_v29 = vpack.c.bf16 %v4170_v7, %v4169_v28 }
 0x3e9   :  { %v5752_v2 = vadd.f32 %v5751_v11, %v4932_v33  ;;  %v5758_v5 = vadd.f32 %v5757_v35, %v2410_v34  ;;  %v6844_v9 = vmax.f32 %v2427_v37, 0.0  ;;  %v5573_v11 = vpack.c.bf16 %v2475_v45, %v2464_v8 }
 0x3ea   :  { %4750 = vmatmul.mubr.msk.f32.vlgmr.msra.gmra.mrb[32].mxu0 %vm207_vm0, %v6836_v39  ;;  %4758 = vmatmul.mubr.msk.f32.vlgmr.msra.gmra.mrb[48].mxu1 %vm207_vm0, %v6836_v39  ;;  %v5583_v27 = vpack.c.bf16 %v4168_v60, %v4167_v26 }
 0x3eb   :  { %v5753_v47 = vadd.f32 %v5752_v2, %v4976_v4  ;;  %2571 = vmatprep.mubr.f32.mxu0 %v6021_v0  ;;  %2749 = vmatprep.mubr.f32.mxu1 %v6021_v0  ;;  %v2428_v10 = vadd.f32 %v5758_v5, %v4749_v59  ;;  %v2440_v4 = vld [vmem:[#allocation12 + $0x30] sm:$0xff] }
 0x3ec   :  { %5546 = vmatpush1.bf16.msra.mxu0 %v5545_v3  ;;  %5570 = vmatpush1.bf16.msra.mxu1 %v5569_v40  ;;  %v5561_v19 = vpack.c.bf16 %v2451_v16, %v2440_v4 }
 0x3ed   :  { %v5754_v12 = vadd.f32 %v5753_v47, %v5264_v31  ;;  %5548 = vmatprep.subr.bf16.mxu0 %v5547_v1  ;;  %5572 = vmatprep.subr.bf16.mxu1 %v5571_v46  ;;  %v6852_v61 = vmax.f32 %v2428_v10, 0.0 }
 0x3ee   :  { %4751 = vmatmul.mubr.msk.f32.gmra.mrb[34].mxu0 %vm207_vm0, %v6844_v9  ;;  %4759 = vmatmul.mubr.msk.f32.gmra.mrb[50].mxu1 %vm207_vm0, %v6844_v9 }
 0x3ef   :  { %2577 = vmatprep.mubr.f32.mxu0 %v6021_v0  ;;  %2755 = vmatprep.mubr.f32.mxu1 %v6021_v0  ;;  %v2429_v15 = vadd.f32 %v5754_v12, %v4749_v59  ;;  %v2466_v59 = vld [vmem:[#allocation12 + $0x100] sm:$0xff] }
 0x3f0   :  { %5550 = vmatpush1.bf16.msra.mxu0 %v5549_v50  ;;  %5574 = vmatpush1.bf16.msra.mxu1 %v5573_v11  ;;  %v5579_v25 = vpack.c.bf16 %v2477_v58, %v2466_v59 }
 0x3f1   :  { %2598 = vmatprep.subr.mxu0 %v2481_v49  ;;  %2865 = vmatprep.subr.mxu1 %v2487_v43  ;;  %v6860_v57 = vmax.f32 %v2429_v15, 0.0 }
 0x3f2   :  { %4752 = vmatmul.mubr.msk.f32.gmra.mrb[36].mxu0 %vm207_vm0, %v6852_v61  ;;  %4760 = vmatmul.mubr.msk.f32.gmra.mrb[52].mxu1 %vm207_vm0, %v6852_v61 }
 0x3f3   :  { %2583 = vmatprep.mubr.f32.mxu0 %v6021_v0  ;;  %2761 = vmatprep.mubr.f32.mxu1 %v6021_v0 }
 0x3f4   :  { %2599 = vmatpush1.msra.mxu0 %v2480_v52  ;;  %2866 = vmatpush1.msra.mxu1 %v2486_v54 }
 0x3f5   :  { %5560 = vmatprep.subr.bf16.mxu0 %v5559_v17 }
 0x3f6   :  { %4753 = vmatmul.mubr.msk.f32.gmra.mrb[38].mxu0 %vm207_vm0, %v6860_v57  ;;  %4761 = vmatmul.mubr.msk.f32.gmra.mrb[54].mxu1 %vm207_vm0, %v6860_v57 }
 0x3f7   :  { %2654 = vmatprep.mubr.f32.mxu0 %v6021_v0  ;;  %2921 = vmatprep.mubr.f32.mxu1 %v6021_v0 }
 0x3fa   :  { %4754 = vmatmul.mubr.msk.f32.vlgmr.msra.gmra.mrb[40].mxu0 %vm207_vm0, %v6836_v39  ;;  %4766 = vmatmul.mubr.msk.f32.vlgmr.msra.gmra.mrb[56].mxu1 %vm207_vm0, %v6836_v39 }
 0x3fb   :  { %2660 = vmatprep.mubr.f32.mxu0 %v6021_v0  ;;  %2927 = vmatprep.mubr.f32.mxu1 %v6021_v0 }
 0x3fc   :  { %5562 = vmatpush1.bf16.msra.mxu0 %v5561_v19 }
 0x3fd   :  { %5564 = vmatprep.subr.bf16.mxu0 %v5563_v20 }
 0x3fe   :  { %4755 = vmatmul.mubr.msk.f32.gmra.mrb[42].mxu0 %vm207_vm0, %v6844_v9  ;;  %4767 = vmatmul.mubr.msk.f32.gmra.mrb[58].mxu1 %vm207_vm0, %v6844_v9 }
 0x3ff   :  { %2666 = vmatprep.mubr.f32.mxu0 %v6021_v0  ;;  %2933 = vmatprep.mubr.f32.mxu1 %v6021_v0 }
 0x400   :  { %5566 = vmatpush1.bf16.msra.mxu0 %v5565_v24 }
 0x401   :  { %2776 = vmatprep.subr.mxu0 %v2485_v55 }
 0x402   :  { %4756 = vmatmul.mubr.msk.f32.gmra.mrb[44].mxu0 %vm207_vm0, %v6852_v61  ;;  %4768 = vmatmul.mubr.msk.f32.gmra.mrb[60].mxu1 %vm207_vm0, %v6852_v61 }
 0x403   :  { %2672 = vmatprep.mubr.f32.mxu0 %v6021_v0  ;;  %2939 = vmatprep.mubr.f32.mxu1 %v6021_v0 }
 0x404   :  { %2777 = vmatpush1.msra.mxu0 %v2484_v62 }
 0x405   :  { %5576 = vmatprep.subr.bf16.mxu0 %v5575_v22 }
 0x406   :  { %4757 = vmatmul.mubr.msk.f32.gmra.mrb[46].mxu0 %vm207_vm0, %v6860_v57  ;;  %4769 = vmatmul.mubr.msk.f32.gmra.mrb[62].mxu1 %vm207_vm0, %v6860_v57 }
 0x407   :  { %2832 = vmatprep.mubr.f32.mxu0 %v6021_v0  ;;  %4321 = vmatprep.mubr.f32.mxu1 %v5809_v23 }
 0x40a   :  { %4762 = vmatmul.mubr.msk.f32.vlgmr.msra.gmra.mrb[48].mxu0 %vm207_vm0, %v6836_v39 }
 0x40b   :  { %2838 = vmatprep.mubr.f32.mxu0 %v6021_v0  ;;  %5578 = vmatpush3.bf16.msra.mxu0 %v5575_v22 }
 0x40c   :  { %5580 = vmatprep.subr.bf16.mxu0 %v5579_v25 }
 0x40e   :  { %4763 = vmatmul.mubr.msk.f32.gmra.mrb[50].mxu0 %vm207_vm0, %v6844_v9 }
 0x40f   :  { %2844 = vmatprep.mubr.f32.mxu0 %v6021_v0  ;;  %5582 = vmatpush3.bf16.msra.mxu0 %v5579_v25 }
 0x410   :  { %5273 = vmatprep.subr.mxu0 %v2488_v6 }
 0x412   :  { %4764 = vmatmul.mubr.msk.f32.gmra.mrb[52].mxu0 %vm207_vm0, %v6852_v61 }
 0x413   :  { %2850 = vmatprep.mubr.f32.mxu0 %v6021_v0  ;;  %5274 = vmatpush3.msra.mxu0 %v2488_v6  ;;  %v4171_v0 = vld [vmem:[#allocation13 + $0x20] sm:$0xff] }
 0x414   :  { %5584 = vmatprep.subr.bf16.mxu0 %v5583_v27 }
 0x416   :  { %4765 = vmatmul.mubr.msk.f32.gmra.mrb[54].mxu0 %vm207_vm0, %v6860_v57 }
 0x417   :  { %5275 = vmatprep.mubr.msk.f32.mxu0 %vm207_vm0, %v6836_v39 }
 0x41a   :  { %5276 = vmatmul.mubr.msk.f32.vlgmr.msra.gmra.mrb[56].mxu0 %vm207_vm0, %v6844_v9 }
 0x41b   :  { %5586 = vmatpush3.bf16.msra.mxu0 %v5583_v27  ;;  %5278 = vmatprep.mubr.msk.f32.mxu0 %vm207_vm0, %v6852_v61 }
 0x41c   :  { %5588 = vmatprep.subr.bf16.mxu0 %v5587_v29 }
 0x41e   :  { %5279 = vmatmul.mubr.msk.f32.gmra.mrb[58].mxu0 %vm207_vm0, %v6860_v57 }
 0x41f   :  { %5590 = vmatpush3.bf16.msra.mxu0 %v5587_v29  ;;  %5291 = vmatprep.mubr.msk.f32.mxu0 %vm207_vm0, %v6836_v39 }
 0x420   :  { %5289 = vmatprep.subr.mxu0 %v4171_v0 }
 0x423   :  { %5290 = vmatpush3.msra.mxu0 %v4171_v0 }
 0x424   :  { %5292 = vmatmul.mubr.msk.f32.vlgmr.msra.gmra.mrb[60].mxu0 %vm207_vm0, %v6844_v9 }
 0x425   :  { %5294 = vmatprep.mubr.msk.f32.mxu0 %vm207_vm0, %v6852_v61 }
 0x428   :  { %5295 = vmatmul.mubr.msk.f32.gmra.mrb[62].mxu0 %vm207_vm0, %v6860_v57 }
 0x429   :  { %4406 = vmatprep.mubr.f32.mxu0 %v5810_v56 }
 0x4bd   :  { %v2567_v30 = vpop.f32.mrb[32].mxu0  ;;  %v2745_v31 = vpop.f32.mrb[48].mxu1 }
 0x4be   :  { %3079 = vst.msk [vmem:[#allocation3] sm:$0xff] %vm207_vm0, %v2567_v30  ;;  %v2569_v38 = vpop.f32.mrb[33].mxu0  ;;  %v6919_v36 = vpop.f32.mrb[49].mxu1  ;;  %3459 = vrot.lane.b32.xlu0 %v2745_v31, %s6023_s14  ;;  %3425 = vrot.lane.b32.xlu1 %v2745_v31, %s6022_s6 }
 0x4bf   :  { %3036 = vst [vmem:[#allocation2 + $0x28] sm:$0xff] %v6919_v36  ;;  %3527 = vst.msk [vmem:[#allocation3 + $0x200] sm:$0xff] %vm207_vm0, %v6919_v36 }
 0x4c1   :  { %v6926_v63 = vpop.f32.mrb[34].mxu0  ;;  %v2751_v32 = vpop.f32.mrb[50].mxu1 }
 0x4c2   :  { %3080 = vst.msk [vmem:[#allocation3 + $0x8] sm:$0xff] %vm207_vm0, %v6926_v63  ;;  %v6930_v33 = vpop.f32.mrb[35].mxu0  ;;  %v6932_v34 = vpop.f32.mrb[51].mxu1  ;;  %3483 = vrot.lane.b32.xlu0 %v2745_v31, %s6024_s17  ;;  %3149 = vrot.lane.b32.xlu1 %v2569_v38, %s6011_s16 }
 0x4c3   :  { %3047 = vst [vmem:[#allocation2 + $0x80] sm:$0xff] %v6932_v34  ;;  %3528 = vst.msk [vmem:[#allocation3 + $0x208] sm:$0xff] %vm207_vm0, %v6932_v34 }
 0x4c5   :  { %v6939_v35 = vpop.f32.mrb[36].mxu0  ;;  %v6941_v37 = vpop.f32.mrb[52].mxu1 }
 0x4c6   :  { %3081 = vst.msk [vmem:[#allocation3 + $0x10] sm:$0xff] %vm207_vm0, %v6939_v35  ;;  %v6945_v39 = vpop.f32.mrb[37].mxu0  ;;  %v6947_v3 = vpop.f32.mrb[53].mxu1  ;;  %3091 = vrot.lane.b32.xlu0 %v2567_v30, %s6018_s22  ;;  %3429 = vrot.lane.b32.xlu1 %v2751_v32, %s6022_s6 }
 0x4c7   :  { %3058 = vst [vmem:[#allocation2 + $0xd8] sm:$0xff] %v6947_v3  ;;  %3529 = vst.msk [vmem:[#allocation3 + $0x210] sm:$0xff] %vm207_vm0, %v6947_v3 }
 0x4c9   :  { %v6954_v40 = vpop.f32.mrb[38].mxu0  ;;  %v6956_v41 = vpop.f32.mrb[54].mxu1 }
 0x4ca   :  { %3082 = vst.msk [vmem:[#allocation3 + $0x18] sm:$0xff] %vm207_vm0, %v6954_v40  ;;  %v6960_v2 = vpop.f32.mrb[55].mxu1  ;;  %v6962_v5 = vpop.f32.mrb[39].mxu0  ;;  %3507 = vrot.lane.b32.xlu0 %v2745_v31, %s6025_s18  ;;  %3461 = vrot.lane.b32.xlu1 %v2751_v32, %s6023_s14 }
 0x4cb   :  { %3069 = vst [vmem:[#allocation2 + $0x130] sm:$0xff] %v6960_v2  ;;  %3530 = vst.msk [vmem:[#allocation3 + $0x218] sm:$0xff] %vm207_vm0, %v6960_v2 }
 0x4cd   :  { %v6969_v1 = vpop.f32.mrb[40].mxu0  ;;  %v6971_v46 = vpop.f32.mrb[56].mxu1 }
 0x4ce   :  { %v6973_v42 = vpop.f32.mrb[57].mxu1  ;;  %v6975_v8 = vpop.f32.mrb[41].mxu0  ;;  %3115 = vrot.lane.b32.xlu0 %v2567_v30, %s6026_s19  ;;  %3485 = vrot.lane.b32.xlu1 %v2751_v32, %s6024_s17 }
 0x4d1   :  { %v6979_v45 = vpop.f32.mrb[42].mxu0  ;;  %v6981_v47 = vpop.f32.mrb[58].mxu1 }
 0x4d2   :  { %v6983_v9 = vpop.f32.mrb[59].mxu1  ;;  %v6985_v10 = vpop.f32.mrb[43].mxu0  ;;  %3147 = vrot.lane.b32.xlu0 %v2567_v30, %s6011_s16  ;;  %3093 = vrot.lane.b32.xlu1 %v6926_v63, %s6018_s22 }
 0x4d5   :  { %v6990_v50 = vpop.f32.mrb[44].mxu0  ;;  %v6992_v11 = vpop.f32.mrb[60].mxu1 }
 0x4d6   :  { %v6994_v12 = vpop.f32.mrb[61].mxu1  ;;  %v6996_v49 = vpop.f32.mrb[45].mxu0  ;;  %3183 = vrot.lane.b32.xlu0 %v2569_v38, %s6027_s3  ;;  %3509 = vrot.lane.b32.xlu1 %v2751_v32, %s6025_s18  ;;  %v4028_v32 = vld [vmem:[#allocation3 + $0x8] sm:$0xff] }
 0x4d9   :  { %v7000_v43 = vpop.f32.mrb[46].mxu0  ;;  %v7002_v13 = vpop.f32.mrb[62].mxu1 }
 0x4da   :  { %v7004_v14 = vpop.f32.mrb[63].mxu1  ;;  %v7006_v15 = vpop.f32.mrb[47].mxu0  ;;  %3207 = vrot.lane.b32.xlu0 %v2569_v38, %s6028_s21  ;;  %3117 = vrot.lane.b32.xlu1 %v6926_v63, %s6026_s19 }
 0x4dd   :  { %v7011_v61 = vpop.f32.mrb[48].mxu0 }
 0x4de   :  { %v7013_v52 = vpop.f32.mrb[49].mxu0  ;;  %3239 = vrot.lane.b32.xlu0 %v2569_v38, %s6029_s23  ;;  %3185 = vrot.lane.b32.xlu1 %v6930_v33, %s6027_s3 }
 0x4e1   :  { %v7018_v54 = vpop.f32.mrb[50].mxu0 }
 0x4e2   :  { %v7020_v17 = vpop.f32.mrb[51].mxu0  ;;  %3539 = vrot.lane.b32.xlu0 %v6919_v36, %s6018_s22  ;;  %3209 = vrot.lane.b32.xlu1 %v6930_v33, %s6028_s21 }
 0x4e5   :  { %v7026_v57 = vpop.f32.mrb[52].mxu0 }
 0x4e6   :  { %v7028_v4 = vpop.f32.mrb[53].mxu0  ;;  %3563 = vrot.lane.b32.xlu0 %v6919_v36, %s6026_s19  ;;  %3153 = vrot.lane.b32.xlu1 %v6930_v33, %s6011_s16 }
 0x4e9   :  { %v7034_v16 = vpop.f32.mrb[54].mxu0 }
 0x4ea   :  { %v7036_v18 = vpop.f32.mrb[55].mxu0  ;;  %3151 = vrot.lane.b32.xlu0 %v6926_v63, %s6011_s16  ;;  %3541 = vrot.lane.b32.xlu1 %v6932_v34, %s6018_s22 }
 0x4ed   :  { %v5277_v51 = vpop.f32.mrb[56].mxu0 }
 0x4ee   :  { %3052 = vst.msk [vmem:[#allocation2 + $0xa8] sm:$0xff] %vm760_vm2, %v5277_v51  ;;  %v3012_v19 = vpop.f32.mrb[57].mxu0  ;;  %3243 = vrot.lane.b32.xlu0 %v6930_v33, %s6029_s23  ;;  %3565 = vrot.lane.b32.xlu1 %v6932_v34, %s6026_s19 }
 0x4ef   :  { %3041 = vst.msk [vmem:[#allocation2 + $0x50] sm:$0xff] %vm760_vm2, %v3012_v19 }
 0x4f1   :  { %v5280_v20 = vpop.f32.mrb[58].mxu0 }
 0x4f2   :  { %3074 = vst.msk [vmem:[#allocation2 + $0x158] sm:$0xff] %vm760_vm2, %v5280_v20  ;;  %v3022_v48 = vpop.f32.mrb[59].mxu0  ;;  %3463 = vrot.lane.b32.xlu0 %v6941_v37, %s6023_s14  ;;  %3433 = vrot.lane.b32.xlu1 %v6941_v37, %s6022_s6 }
 0x4f3   :  { %3063 = vst.msk [vmem:[#allocation2 + $0x100] sm:$0xff] %vm760_vm2, %v3022_v48 }
 0x4f5   :  { %v7054_v53 = vld [vmem:[#allocation2 + $0xa8] sm:$0xff] }
 0x4f6   :  { %3487 = vrot.lane.b32.xlu0 %v6941_v37, %s6024_s17  ;;  %3157 = vrot.lane.b32.xlu1 %v6945_v39, %s6011_s16  ;;  %v7060_v24 = vld [vmem:[#allocation2 + $0x50] sm:$0xff]  ;;  %3976 = vst.msk [vmem:[#allocation3 + $0x408] sm:$0xff] %vm207_vm0, %v7054_v53 }
 0x4f7   :  { %3975 = vst.msk [vmem:[#allocation3 + $0x400] sm:$0xff] %vm207_vm0, %v7060_v24 }
 0x4f9   :  { %v7066_v55 = vld [vmem:[#allocation2 + $0x158] sm:$0xff] }
 0x4fa   :  { %3095 = vrot.lane.b32.xlu0 %v6939_v35, %s6018_s22  ;;  %3437 = vrot.lane.b32.xlu1 %v6956_v41, %s6022_s6  ;;  %v7072_v21 = vld [vmem:[#allocation2 + $0x100] sm:$0xff]  ;;  %3978 = vst.msk [vmem:[#allocation3 + $0x418] sm:$0xff] %vm207_vm0, %v7066_v55 }
 0x4fb   :  { %3977 = vst.msk [vmem:[#allocation3 + $0x410] sm:$0xff] %vm207_vm0, %v7072_v21 }
 0x4fe   :  { %3511 = vrot.lane.b32.xlu0 %v6941_v37, %s6025_s18  ;;  %3465 = vrot.lane.b32.xlu1 %v6956_v41, %s6023_s14 }
 0x502   :  { %3119 = vrot.lane.b32.xlu0 %v6939_v35, %s6026_s19  ;;  %3489 = vrot.lane.b32.xlu1 %v6956_v41, %s6024_s17 }
 0x506   :  { %3155 = vrot.lane.b32.xlu0 %v6939_v35, %s6011_s16  ;;  %3097 = vrot.lane.b32.xlu1 %v6954_v40, %s6018_s22 }
 0x50a   :  { %3187 = vrot.lane.b32.xlu0 %v6945_v39, %s6027_s3  ;;  %3513 = vrot.lane.b32.xlu1 %v6956_v41, %s6025_s18 }
 0x50e   :  { %3211 = vrot.lane.b32.xlu0 %v6945_v39, %s6028_s21  ;;  %3121 = vrot.lane.b32.xlu1 %v6954_v40, %s6026_s19 }
 0x512   :  { %3247 = vrot.lane.b32.xlu0 %v6945_v39, %s6029_s23  ;;  %3189 = vrot.lane.b32.xlu1 %v6962_v5, %s6027_s3 }
 0x516   :  { %3543 = vrot.lane.b32.xlu0 %v6947_v3, %s6018_s22  ;;  %3213 = vrot.lane.b32.xlu1 %v6962_v5, %s6028_s21 }
 0x51a   :  { %3567 = vrot.lane.b32.xlu0 %v6947_v3, %s6026_s19  ;;  %3161 = vrot.lane.b32.xlu1 %v6962_v5, %s6011_s16  ;;  %v4027_v3 = vld [vmem:[#allocation3] sm:$0xff] }
 0x51e   :  { %3159 = vrot.lane.b32.xlu0 %v6954_v40, %s6011_s16  ;;  %3545 = vrot.lane.b32.xlu1 %v6960_v2, %s6018_s22  ;;  %v5593_v40 = vpack.c.bf16 %v4028_v32, %v4027_v3 }
 0x522   :  { %3251 = vrot.lane.b32.xlu0 %v6962_v5, %s6029_s23  ;;  %3241 = vrot.lane.b32.xlu1 %v6969_v1, %s6029_s23 }
 0x526   :  { %3299 = vrot.lane.b32.xlu0 %v6969_v1, %s6031_s26  ;;  %3781 = vrot.lane.b32.xlu1 %v6971_v46, %s6030_s24 }
 0x52a   :  { %3331 = vrot.lane.b32.xlu0 %v6969_v1, %s6030_s24  ;;  %3333 = vrot.lane.b32.xlu1 %v6975_v8, %s6030_s24 }
 0x52e   :  { %3871 = vrot.lane.b32.xlu0 %v6971_v46, %s6022_s6  ;;  %3873 = vrot.lane.b32.xlu1 %v6973_v42, %s6022_s6 }
 0x530   :  { %v3460_v44 = vpop.permute.xlu0 %3459  ;;  %v7130_v62 = vpop.permute.xlu1 %3425 }
 0x531   :  { %3471 = vst.msk [vmem:[#allocation3 + $0x1a0] sm:$0xff] %vm207_vm0, %v3460_v44 }
 0x532   :  { %3275 = vrot.lane.b32.xlu0 %v6969_v1, %s6032_s27  ;;  %3301 = vrot.lane.b32.xlu1 %v6979_v45, %s6031_s26 }
 0x534   :  { %v3484_v22 = vpop.permute.xlu0 %3483  ;;  %v3150_v59 = vpop.permute.xlu1 %3149 }
 0x535   :  { %3495 = vst.msk [vmem:[#allocation3 + $0x1c0] sm:$0xff] %vm207_vm0, %v3484_v22 }
 0x536   :  { %3815 = vrot.lane.b32.xlu0 %v6971_v46, %s6033_s2  ;;  %3245 = vrot.lane.b32.xlu1 %v6979_v45, %s6029_s23 }
 0x538   :  { %v3092_v58 = vpop.permute.xlu0 %3091  ;;  %v7142_v23 = vpop.permute.xlu1 %3429 }
 0x539   :  { %3103 = vst.msk [vmem:[#allocation3 + $0x20] sm:$0xff] %vm207_vm0, %v3092_v58 }
 0x53a   :  { %3839 = vrot.lane.b32.xlu0 %v6971_v46, %s6015_s20  ;;  %3277 = vrot.lane.b32.xlu1 %v6979_v45, %s6032_s27 }
 0x53c   :  { %v3508_v25 = vpop.permute.xlu0 %3507  ;;  %v3462_v6 = vpop.permute.xlu1 %3461 }
 0x53d   :  { %3519 = vst.msk [vmem:[#allocation3 + $0x1e0] sm:$0xff] %vm207_vm0, %v3508_v25  ;;  %3472 = vst.msk [vmem:[#allocation3 + $0x1a8] sm:$0xff] %vm207_vm0, %v3462_v6 }
 0x53e   :  { %3423 = vrot.lane.b32.xlu0 %v6975_v8, %s6022_s6  ;;  %3785 = vrot.lane.b32.xlu1 %v6981_v47, %s6030_s24 }
 0x540   :  { %v3116_v26 = vpop.permute.xlu0 %3115  ;;  %v3486_v60 = vpop.permute.xlu1 %3485  ;;  %v4031_v3 = vld [vmem:[#allocation3 + $0x20] sm:$0xff] }
 0x541   :  { %3127 = vst.msk [vmem:[#allocation3 + $0x40] sm:$0xff] %vm207_vm0, %v3116_v26  ;;  %3496 = vst.msk [vmem:[#allocation3 + $0x1c8] sm:$0xff] %vm207_vm0, %v3486_v60 }
 0x542   :  { %3367 = vrot.lane.b32.xlu0 %v6975_v8, %s6033_s2  ;;  %3817 = vrot.lane.b32.xlu1 %v6981_v47, %s6033_s2 }
 0x544   :  { %v3148_v27 = vpop.permute.xlu0 %3147  ;;  %v3094_v28 = vpop.permute.xlu1 %3093 }
 0x545   :  { %v3163_v7 = vsel %vm883_vm1, %v3148_v27, %v3150_v59  ;;  %3104 = vst.msk [vmem:[#allocation3 + $0x28] sm:$0xff] %vm207_vm0, %v3094_v28 }
 0x546   :  { %3171 = vst.msk [vmem:[#allocation3 + $0x60] sm:$0xff] %vm207_vm0, %v3163_v7  ;;  %3391 = vrot.lane.b32.xlu0 %v6975_v8, %s6015_s20  ;;  %3841 = vrot.lane.b32.xlu1 %v6981_v47, %s6015_s20 }
 0x548   :  { %v3184_v29 = vpop.permute.xlu0 %3183  ;;  %v3510_v0 = vpop.permute.xlu1 %3509 }
 0x549   :  { %3195 = vst.msk [vmem:[#allocation3 + $0x80] sm:$0xff] %vm207_vm0, %v3184_v29  ;;  %3520 = vst.msk [vmem:[#allocation3 + $0x1e8] sm:$0xff] %vm207_vm0, %v3510_v0 }
 0x54a   :  { %3907 = vrot.lane.b32.xlu0 %v6973_v42, %s6023_s14  ;;  %3337 = vrot.lane.b32.xlu1 %v6985_v10, %s6030_s24 }
 0x54c   :  { %v3208_v56 = vpop.permute.xlu0 %3207  ;;  %v3118_v30 = vpop.permute.xlu1 %3117 }
 0x54d   :  { %3219 = vst.msk [vmem:[#allocation3 + $0xa0] sm:$0xff] %vm207_vm0, %v3208_v56  ;;  %3128 = vst.msk [vmem:[#allocation3 + $0x48] sm:$0xff] %vm207_vm0, %v3118_v30 }
 0x54e   :  { %3931 = vrot.lane.b32.xlu0 %v6973_v42, %s6024_s17  ;;  %3369 = vrot.lane.b32.xlu1 %v6985_v10, %s6033_s2 }
 0x550   :  { %v7180_v31 = vpop.permute.xlu0 %3239  ;;  %v3186_v38 = vpop.permute.xlu1 %3185  ;;  %v4043_v35 = vld [vmem:[#allocation3 + $0x80] sm:$0xff] }
 0x551   :  { %3196 = vst.msk [vmem:[#allocation3 + $0x88] sm:$0xff] %vm207_vm0, %v3186_v38  ;;  %v4029_v38 = vld [vmem:[#allocation3 + $0x10] sm:$0xff] }
 0x552   :  { %3955 = vrot.lane.b32.xlu0 %v6973_v42, %s6025_s18  ;;  %3393 = vrot.lane.b32.xlu1 %v6985_v10, %s6015_s20 }
 0x554   :  { %v3540_v36 = vpop.permute.xlu0 %3539  ;;  %v3210_v63 = vpop.permute.xlu1 %3209 }
 0x555   :  { %3551 = vst.msk [vmem:[#allocation3 + $0x220] sm:$0xff] %vm207_vm0, %v3540_v36  ;;  %3220 = vst.msk [vmem:[#allocation3 + $0xa8] sm:$0xff] %vm207_vm0, %v3210_v63  ;;  %v4047_v63 = vld [vmem:[#allocation3 + $0xa0] sm:$0xff] }
 0x556   :  { %3335 = vrot.lane.b32.xlu0 %v6979_v45, %s6030_s24  ;;  %3877 = vrot.lane.b32.xlu1 %v6983_v9, %s6022_s6 }
 0x558   :  { %v3564_v33 = vpop.permute.xlu0 %3563  ;;  %v3154_v34 = vpop.permute.xlu1 %3153  ;;  %v4044_v37 = vld [vmem:[#allocation3 + $0x88] sm:$0xff] }
 0x559   :  { %3575 = vst.msk [vmem:[#allocation3 + $0x240] sm:$0xff] %vm207_vm0, %v3564_v33  ;;  %v5591_v39 = vpack.c.bf16 %v4044_v37, %v4043_v35  ;;  %v4032_v33 = vld [vmem:[#allocation3 + $0x28] sm:$0xff] }
 0x55a   :  { %3875 = vrot.lane.b32.xlu0 %v6981_v47, %s6022_s6  ;;  %3909 = vrot.lane.b32.xlu1 %v6983_v9, %s6023_s14 }
 0x55b   :  { %5592 = vmatprep.subr.bf16.mxu1 %v5591_v39 }
 0x55c   :  { %v3152_v41 = vpop.permute.xlu0 %3151  ;;  %5594 = vmatpush3.bf16.msra.mxu1 %v5593_v40  ;;  %v3542_v2 = vpop.permute.xlu1 %3541  ;;  %v4048_v56 = vld [vmem:[#allocation3 + $0xa8] sm:$0xff] }
 0x55d   :  { %v3164_v5 = vsel %vm883_vm1, %v3152_v41, %v3154_v34  ;;  %3552 = vst.msk [vmem:[#allocation3 + $0x228] sm:$0xff] %vm207_vm0, %v3542_v2  ;;  %v5599_v32 = vpack.c.bf16 %v4048_v56, %v4047_v63 }
 0x55e   :  { %3172 = vst.msk [vmem:[#allocation3 + $0x68] sm:$0xff] %vm207_vm0, %v3164_v5  ;;  %3427 = vrot.lane.b32.xlu0 %v6985_v10, %s6022_s6  ;;  %3933 = vrot.lane.b32.xlu1 %v6983_v9, %s6024_s17 }
 0x560   :  { %v7205_v1 = vpop.permute.xlu0 %3243  ;;  %v3566_v46 = vpop.permute.xlu1 %3565 }
 0x561   :  { %3576 = vst.msk [vmem:[#allocation3 + $0x248] sm:$0xff] %vm207_vm0, %v3566_v46 }
 0x562   :  { %3957 = vrot.lane.b32.xlu1 %v6983_v9, %s6025_s18  ;;  %3303 = vrot.lane.b32.xlu0 %v6990_v50, %s6031_s26 }
 0x564   :  { %v3464_v42 = vpop.permute.xlu0 %3463  ;;  %v7212_v8 = vpop.permute.xlu1 %3433 }
 0x565   :  { %3473 = vst.msk [vmem:[#allocation3 + $0x1b0] sm:$0xff] %vm207_vm0, %v3464_v42 }
 0x566   :  { %3339 = vrot.lane.b32.xlu0 %v6990_v50, %s6030_s24  ;;  %3249 = vrot.lane.b32.xlu1 %v6990_v50, %s6029_s23 }
 0x568   :  { %v3488_v45 = vpop.permute.xlu0 %3487  ;;  %v3158_v47 = vpop.permute.xlu1 %3157 }
 0x569   :  { %3497 = vst.msk [vmem:[#allocation3 + $0x1d0] sm:$0xff] %vm207_vm0, %v3488_v45 }
 0x56a   :  { %3879 = vrot.lane.b32.xlu0 %v6992_v11, %s6022_s6  ;;  %3789 = vrot.lane.b32.xlu1 %v6992_v11, %s6030_s24 }
 0x56c   :  { %v3096_v9 = vpop.permute.xlu0 %3095  ;;  %v7224_v10 = vpop.permute.xlu1 %3437 }
 0x56d   :  { %3105 = vst.msk [vmem:[#allocation3 + $0x30] sm:$0xff] %vm207_vm0, %v3096_v9 }
 0x56e   :  { %3279 = vrot.lane.b32.xlu0 %v6990_v50, %s6032_s27  ;;  %3341 = vrot.lane.b32.xlu1 %v6996_v49, %s6030_s24 }
 0x570   :  { %v3512_v51 = vpop.permute.xlu0 %3511  ;;  %v3466_v19 = vpop.permute.xlu1 %3465 }
 0x571   :  { %3521 = vst.msk [vmem:[#allocation3 + $0x1f0] sm:$0xff] %vm207_vm0, %v3512_v51  ;;  %3474 = vst.msk [vmem:[#allocation3 + $0x1b8] sm:$0xff] %vm207_vm0, %v3466_v19 }
 0x572   :  { %3819 = vrot.lane.b32.xlu0 %v6992_v11, %s6033_s2  ;;  %3881 = vrot.lane.b32.xlu1 %v6994_v12, %s6022_s6 }
 0x574   :  { %v3120_v20 = vpop.permute.xlu0 %3119  ;;  %v3490_v48 = vpop.permute.xlu1 %3489  ;;  %v4033_v45 = vld [vmem:[#allocation3 + $0x30] sm:$0xff] }
 0x575   :  { %3129 = vst.msk [vmem:[#allocation3 + $0x50] sm:$0xff] %vm207_vm0, %v3120_v20  ;;  %3498 = vst.msk [vmem:[#allocation3 + $0x1d8] sm:$0xff] %vm207_vm0, %v3490_v48 }
 0x576   :  { %3843 = vrot.lane.b32.xlu0 %v6992_v11, %s6015_s20  ;;  %3305 = vrot.lane.b32.xlu1 %v7000_v43, %s6031_s26 }
 0x578   :  { %v3156_v50 = vpop.permute.xlu0 %3155  ;;  %v3098_v44 = vpop.permute.xlu1 %3097 }
 0x579   :  { %v3165_v22 = vsel %vm883_vm1, %v3156_v50, %v3158_v47  ;;  %3106 = vst.msk [vmem:[#allocation3 + $0x38] sm:$0xff] %vm207_vm0, %v3098_v44 }
 0x57a   :  { %3173 = vst.msk [vmem:[#allocation3 + $0x70] sm:$0xff] %vm207_vm0, %v3165_v22  ;;  %3431 = vrot.lane.b32.xlu0 %v6996_v49, %s6022_s6  ;;  %3253 = vrot.lane.b32.xlu1 %v7000_v43, %s6029_s23 }
 0x57c   :  { %v3188_v59 = vpop.permute.xlu0 %3187  ;;  %v3514_v58 = vpop.permute.xlu1 %3513 }
 0x57d   :  { %3197 = vst.msk [vmem:[#allocation3 + $0x90] sm:$0xff] %vm207_vm0, %v3188_v59  ;;  %3522 = vst.msk [vmem:[#allocation3 + $0x1f8] sm:$0xff] %vm207_vm0, %v3514_v58 }
 0x57e   :  { %3371 = vrot.lane.b32.xlu0 %v6996_v49, %s6033_s2  ;;  %3281 = vrot.lane.b32.xlu1 %v7000_v43, %s6032_s27 }
 0x580   :  { %v3212_v11 = vpop.permute.xlu0 %3211  ;;  %v3122_v25 = vpop.permute.xlu1 %3121  ;;  %v4034_v2 = vld [vmem:[#allocation3 + $0x38] sm:$0xff] }
 0x581   :  { %3221 = vst.msk [vmem:[#allocation3 + $0xb0] sm:$0xff] %vm207_vm0, %v3212_v11  ;;  %3130 = vst.msk [vmem:[#allocation3 + $0x58] sm:$0xff] %vm207_vm0, %v3122_v25  ;;  %v4036_v25 = vld [vmem:[#allocation3 + $0x48] sm:$0xff] }
 0x582   :  { %3395 = vrot.lane.b32.xlu0 %v6996_v49, %s6015_s20  ;;  %3793 = vrot.lane.b32.xlu1 %v7002_v13, %s6030_s24  ;;  %v4030_v49 = vld [vmem:[#allocation3 + $0x18] sm:$0xff] }
 0x583   :  { %v5597_v36 = vpack.c.bf16 %v4030_v49, %v4029_v38 }
 0x584   :  { %v7262_v6 = vpop.permute.xlu0 %3247  ;;  %v3190_v26 = vpop.permute.xlu1 %3189  ;;  %v4045_v29 = vld [vmem:[#allocation3 + $0x90] sm:$0xff] }
 0x585   :  { %3198 = vst.msk [vmem:[#allocation3 + $0x98] sm:$0xff] %vm207_vm0, %v3190_v26 }
 0x586   :  { %3911 = vrot.lane.b32.xlu0 %v6994_v12, %s6023_s14  ;;  %3821 = vrot.lane.b32.xlu1 %v7002_v13, %s6033_s2 }
 0x588   :  { %v3544_v60 = vpop.permute.xlu0 %3543  ;;  %v3214_v27 = vpop.permute.xlu1 %3213  ;;  %v4049_v40 = vld [vmem:[#allocation3 + $0xb0] sm:$0xff] }
 0x589   :  { %3553 = vst.msk [vmem:[#allocation3 + $0x230] sm:$0xff] %vm207_vm0, %v3544_v60  ;;  %3222 = vst.msk [vmem:[#allocation3 + $0xb8] sm:$0xff] %vm207_vm0, %v3214_v27 }
 0x58a   :  { %3935 = vrot.lane.b32.xlu0 %v6994_v12, %s6024_s17  ;;  %3845 = vrot.lane.b32.xlu1 %v7002_v13, %s6015_s20 }
 0x58c   :  { %v3568_v28 = vpop.permute.xlu0 %3567  ;;  %v3162_v7 = vpop.permute.xlu1 %3161  ;;  %v4046_v0 = vld [vmem:[#allocation3 + $0x98] sm:$0xff] }
 0x58d   :  { %3577 = vst.msk [vmem:[#allocation3 + $0x250] sm:$0xff] %vm207_vm0, %v3568_v28  ;;  %v5595_v30 = vpack.c.bf16 %v4046_v0, %v4045_v29  ;;  %v4035_v28 = vld [vmem:[#allocation3 + $0x40] sm:$0xff] }
 0x58e   :  { %3959 = vrot.lane.b32.xlu0 %v6994_v12, %s6025_s18  ;;  %3345 = vrot.lane.b32.xlu1 %v7006_v15, %s6030_s24  ;;  %v5601_v12 = vpack.c.bf16 %v4032_v33, %v4031_v3 }
 0x58f   :  { %5596 = vmatprep.subr.bf16.mxu1 %v5595_v30 }
 0x590   :  { %v3160_v34 = vpop.permute.xlu0 %3159  ;;  %5598 = vmatpush3.bf16.msra.mxu1 %v5597_v36  ;;  %v3546_v35 = vpop.permute.xlu1 %3545  ;;  %v4050_v37 = vld [vmem:[#allocation3 + $0xb8] sm:$0xff] }
 0x591   :  { %v3166_v39 = vsel %vm883_vm1, %v3160_v34, %v3162_v7  ;;  %3554 = vst.msk [vmem:[#allocation3 + $0x238] sm:$0xff] %vm207_vm0, %v3546_v35  ;;  %5600 = vmatprep.subr.bf16.mxu1 %v5599_v32  ;;  %v5603_v41 = vpack.c.bf16 %v4050_v37, %v4049_v40  ;;  %v5609_v7 = vpack.c.bf16 %v4036_v25, %v4035_v28  ;;  %v3558_v40 = vld [vmem:[#allocation2 + $0x130] sm:$0xff] }
 0x592   :  { %3174 = vst.msk [vmem:[#allocation3 + $0x78] sm:$0xff] %vm207_vm0, %v3166_v39  ;;  %3343 = vrot.lane.b32.xlu0 %v7000_v43, %s6030_s24  ;;  %3373 = vrot.lane.b32.xlu1 %v7006_v15, %s6033_s2  ;;  %v5605_v43 = vpack.c.bf16 %v4034_v2, %v4033_v45 }
 0x594   :  { %v7287_v5 = vpop.permute.xlu0 %3251  ;;  %5602 = vmatpush3.bf16.msra.mxu1 %v5601_v12  ;;  %v3242_v46 = vpop.permute.xlu1 %3241 }
 0x595   :  { %v3255_v42 = vsel %vm976_vm3, %v7180_v31, %v3242_v46  ;;  %5604 = vmatprep.subr.bf16.mxu1 %v5603_v41 }
 0x596   :  { %3263 = vst.msk [vmem:[#allocation3 + $0xc0] sm:$0xff] %vm207_vm0, %v3255_v42  ;;  %3883 = vrot.lane.b32.xlu0 %v7002_v13, %s6022_s6  ;;  %3397 = vrot.lane.b32.xlu1 %v7006_v15, %s6015_s20 }
 0x598   :  { %5606 = vmatpush3.bf16.msra.mxu1 %v5605_v43  ;;  %v3300_v47 = vpop.permute.xlu0 %3299  ;;  %v7296_v9 = vpop.permute.xlu1 %3781  ;;  %v3579_v43 = vld [vmem:[#allocation2 + $0x28] sm:$0xff] }
 0x599   :  { %3311 = vst.msk [vmem:[#allocation3 + $0x100] sm:$0xff] %vm207_vm0, %v3300_v47 }
 0x59a   :  { %3435 = vrot.lane.b32.xlu0 %v7006_v15, %s6022_s6  ;;  %3885 = vrot.lane.b32.xlu1 %v7004_v14, %s6022_s6 }
 0x59c   :  { %v3332_v31 = vpop.permute.xlu0 %3331  ;;  %v3334_v51 = vpop.permute.xlu1 %3333 }
 0x59d   :  { %v3347_v13 = vsel %vm1069_vm4, %v3332_v31, %v3334_v51  ;;  %v4051_v60 = vld [vmem:[#allocation3 + $0xc0] sm:$0xff] }
 0x59e   :  { %3355 = vst.msk [vmem:[#allocation3 + $0x120] sm:$0xff] %vm207_vm0, %v3347_v13  ;;  %3913 = vrot.lane.b32.xlu1 %v7004_v14, %s6023_s14  ;;  %3631 = vrot.lane.b32.xlu0 %v7011_v61, %s6027_s3  ;;  %v3581_v13 = vld [vmem:[#allocation2 + $0x80] sm:$0xff] }
 0x5a0   :  { %v3872_v19 = vpop.permute.xlu0 %3871  ;;  %v3874_v20 = vpop.permute.xlu1 %3873 }
 0x5a1   :  { %v3887_v48 = vsel %vm1162_vm5, %v3872_v19, %v3874_v20 }
 0x5a2   :  { %3895 = vst.msk [vmem:[#allocation3 + $0x380] sm:$0xff] %vm207_vm0, %v3887_v48  ;;  %3937 = vrot.lane.b32.xlu1 %v7004_v14, %s6024_s17  ;;  %3655 = vrot.lane.b32.xlu0 %v7011_v61, %s6028_s21  ;;  %v4059_v48 = vld [vmem:[#allocation3 + $0x100] sm:$0xff] }
 0x5a4   :  { %v3276_v15 = vpop.permute.xlu0 %3275  ;;  %v3302_v50 = vpop.permute.xlu1 %3301 }
 0x5a5   :  { %3287 = vst.msk [vmem:[#allocation3 + $0xe0] sm:$0xff] %vm207_vm0, %v3276_v15  ;;  %3312 = vst.msk [vmem:[#allocation3 + $0x108] sm:$0xff] %vm207_vm0, %v3302_v50 }
 0x5a6   :  { %3961 = vrot.lane.b32.xlu1 %v7004_v14, %s6025_s18  ;;  %3687 = vrot.lane.b32.xlu0 %v7011_v61, %s6029_s23 }
 0x5a8   :  { %v3816_v44 = vpop.permute.xlu0 %3815  ;;  %v3246_v22 = vpop.permute.xlu1 %3245 }
 0x5a9   :  { %3827 = vst.msk [vmem:[#allocation3 + $0x340] sm:$0xff] %vm207_vm0, %v3816_v44  ;;  %v3256_v59 = vsel %vm976_vm3, %v7205_v1, %v3246_v22  ;;  %v3583_v22 = vld [vmem:[#allocation2 + $0xd8] sm:$0xff] }
 0x5aa   :  { %3264 = vst.msk [vmem:[#allocation3 + $0xc8] sm:$0xff] %vm207_vm0, %v3256_v59  ;;  %3747 = vrot.lane.b32.xlu0 %v7013_v52, %s6031_s26  ;;  %3689 = vrot.lane.b32.xlu1 %v7013_v52, %s6029_s23 }
 0x5ac   :  { %v3840_v58 = vpop.permute.xlu0 %3839  ;;  %v3278_v14 = vpop.permute.xlu1 %3277  ;;  %v4060_v31 = vld [vmem:[#allocation3 + $0x108] sm:$0xff] }
 0x5ad   :  { %3851 = vst.msk [vmem:[#allocation3 + $0x360] sm:$0xff] %vm207_vm0, %v3840_v58  ;;  %3288 = vst.msk [vmem:[#allocation3 + $0xe8] sm:$0xff] %vm207_vm0, %v3278_v14  ;;  %v5625_v15 = vpack.c.bf16 %v4060_v31, %v4059_v48 }
 0x5ae   :  { %3779 = vrot.lane.b32.xlu0 %v7013_v52, %s6030_s24  ;;  %3633 = vrot.lane.b32.xlu1 %v7018_v54, %s6027_s3 }
 0x5b0   :  { %v3424_v1 = vpop.permute.xlu0 %3423  ;;  %v7335_v11 = vpop.permute.xlu1 %3785 }
 0x5b1   :  { %v3439_v26 = vsel %vm1162_vm5, %v3424_v1, %v7130_v62  ;;  %v4052_v27 = vld [vmem:[#allocation3 + $0xc8] sm:$0xff] }
 0x5b2   :  { %3447 = vst.msk [vmem:[#allocation3 + $0x180] sm:$0xff] %vm207_vm0, %v3439_v26  ;;  %3691 = vrot.lane.b32.xlu0 %v7018_v54, %s6029_s23  ;;  %3657 = vrot.lane.b32.xlu1 %v7018_v54, %s6028_s21  ;;  %v5607_v49 = vpack.c.bf16 %v4052_v27, %v4051_v60  ;;  %v4038_v60 = vld [vmem:[#allocation3 + $0x58] sm:$0xff] }
 0x5b4   :  { %v3368_v29 = vpop.permute.xlu0 %3367  ;;  %5608 = vmatprep.subr.bf16.mxu1 %v5607_v49  ;;  %v3818_v0 = vpop.permute.xlu1 %3817  ;;  %v4056_v28 = vld [vmem:[#allocation3 + $0xe8] sm:$0xff] }
 0x5b5   :  { %3379 = vst.msk [vmem:[#allocation3 + $0x140] sm:$0xff] %vm207_vm0, %v3368_v29  ;;  %3828 = vst.msk [vmem:[#allocation3 + $0x348] sm:$0xff] %vm207_vm0, %v3818_v0  ;;  %5610 = vmatpush3.bf16.msra.mxu1 %v5609_v7  ;;  %v4037_v29 = vld [vmem:[#allocation3 + $0x50] sm:$0xff] }
 0x5b6   :  { %3783 = vrot.lane.b32.xlu0 %v7020_v17, %s6030_s24  ;;  %3749 = vrot.lane.b32.xlu1 %v7020_v17, %s6031_s26  ;;  %v5613_v0 = vpack.c.bf16 %v4038_v60, %v4037_v29  ;;  %v4081_v60 = vld [vmem:[#allocation3 + $0x1b0] sm:$0xff] }
 0x5b8   :  { %v3392_v62 = vpop.permute.xlu0 %3391  ;;  %v3842_v56 = vpop.permute.xlu1 %3841 }
 0x5b9   :  { %3403 = vst.msk [vmem:[#allocation3 + $0x160] sm:$0xff] %vm207_vm0, %v3392_v62  ;;  %3852 = vst.msk [vmem:[#allocation3 + $0x368] sm:$0xff] %vm207_vm0, %v3842_v56  ;;  %v4055_v62 = vld [vmem:[#allocation3 + $0xe0] sm:$0xff] }
 0x5ba   :  { %3693 = vrot.lane.b32.xlu1 %v7020_v17, %s6029_s23  ;;  %3635 = vrot.lane.b32.xlu0 %v7026_v57, %s6027_s3 }
 0x5bc   :  { %v3908_v30 = vpop.permute.xlu0 %3907  ;;  %v3338_v38 = vpop.permute.xlu1 %3337 }
 0x5bd   :  { %3919 = vst.msk [vmem:[#allocation3 + $0x3a0] sm:$0xff] %vm207_vm0, %v3908_v30 }
 0x5be   :  { %3659 = vrot.lane.b32.xlu0 %v7026_v57, %s6028_s21  ;;  %3697 = vrot.lane.b32.xlu1 %v7028_v4, %s6029_s23 }
 0x5c0   :  { %v3932_v36 = vpop.permute.xlu0 %3931  ;;  %v3370_v63 = vpop.permute.xlu1 %3369 }
 0x5c1   :  { %3943 = vst.msk [vmem:[#allocation3 + $0x3c0] sm:$0xff] %vm207_vm0, %v3932_v36  ;;  %3380 = vst.msk [vmem:[#allocation3 + $0x148] sm:$0xff] %vm207_vm0, %v3370_v63  ;;  %v4040_v36 = vld [vmem:[#allocation3 + $0x68] sm:$0xff] }
 0x5c2   :  { %3695 = vrot.lane.b32.xlu0 %v7026_v57, %s6029_s23  ;;  %3637 = vrot.lane.b32.xlu1 %v7034_v16, %s6027_s3 }
 0x5c4   :  { %v3956_v32 = vpop.permute.xlu0 %3955  ;;  %v3394_v33 = vpop.permute.xlu1 %3393 }
 0x5c5   :  { %3967 = vst.msk [vmem:[#allocation3 + $0x3e0] sm:$0xff] %vm207_vm0, %v3956_v32  ;;  %3404 = vst.msk [vmem:[#allocation3 + $0x168] sm:$0xff] %vm207_vm0, %v3394_v33 }
 0x5c6   :  { %3751 = vrot.lane.b32.xlu0 %v7028_v4, %s6031_s26  ;;  %3661 = vrot.lane.b32.xlu1 %v7034_v16, %s6028_s21 }
 0x5c8   :  { %v3336_v34 = vpop.permute.xlu0 %3335  ;;  %v3878_v35 = vpop.permute.xlu1 %3877 }
 0x5c9   :  { %v3348_v37 = vsel %vm1069_vm4, %v3336_v34, %v3338_v38  ;;  %v5615_v38 = vpack.c.bf16 %v4056_v28, %v4055_v62 }
 0x5ca   :  { %3356 = vst.msk [vmem:[#allocation3 + $0x128] sm:$0xff] %vm207_vm0, %v3348_v37  ;;  %3787 = vrot.lane.b32.xlu0 %v7028_v4, %s6030_s24  ;;  %3753 = vrot.lane.b32.xlu1 %v7036_v18, %s6031_s26  ;;  %v4042_v37 = vld [vmem:[#allocation3 + $0x78] sm:$0xff] }
 0x5cc   :  { %v3876_v39 = vpop.permute.xlu0 %3875  ;;  %v3910_v3 = vpop.permute.xlu1 %3909 }
 0x5cd   :  { %v3888_v12 = vsel %vm1162_vm5, %v3876_v39, %v3878_v35  ;;  %3920 = vst.msk [vmem:[#allocation3 + $0x3a8] sm:$0xff] %vm207_vm0, %v3910_v3  ;;  %v4041_v39 = vld [vmem:[#allocation3 + $0x70] sm:$0xff] }
 0x5ce   :  { %3896 = vst.msk [vmem:[#allocation3 + $0x388] sm:$0xff] %vm207_vm0, %v3888_v12  ;;  %3699 = vrot.lane.b32.xlu0 %v7034_v16, %s6029_s23  ;;  %3569 = vrot.lane.b32.xlu1 %v3558_v40, %s6026_s19  ;;  %v5621_v3 = vpack.c.bf16 %v4042_v37, %v4041_v39 }
 0x5d0   :  { %v3428_v41 = vpop.permute.xlu0 %3427  ;;  %v3934_v2 = vpop.permute.xlu1 %3933 }
 0x5d1   :  { %v3440_v46 = vsel %vm1162_vm5, %v3428_v41, %v7142_v23  ;;  %3944 = vst.msk [vmem:[#allocation3 + $0x3c8] sm:$0xff] %vm207_vm0, %v3934_v2  ;;  %v5811_v41 = vld [vmem:[#allocation4] sm:$0xff] }
 0x5d2   :  { %3448 = vst.msk [vmem:[#allocation3 + $0x188] sm:$0xff] %vm207_vm0, %v3440_v46  ;;  %3791 = vrot.lane.b32.xlu0 %v7036_v18, %s6030_s24  ;;  %3597 = vrot.lane.b32.xlu1 %v7011_v61, %s6011_s16  ;;  %v4075_v61 = vld [vmem:[#allocation3 + $0x180] sm:$0xff]  ;;  %v5812_v46 = vld [vmem:[#allocation4 + $0x50] sm:$0xff] }
 0x5d4   :  { %v3958_v42 = vpop.permute.xlu1 %3957  ;;  %v3304_v45 = vpop.permute.xlu0 %3303 }
 0x5d5   :  { %3968 = vst.msk [vmem:[#allocation3 + $0x3e8] sm:$0xff] %vm207_vm0, %v3958_v42  ;;  %3313 = vst.msk [vmem:[#allocation3 + $0x110] sm:$0xff] %vm207_vm0, %v3304_v45 }
 0x5d6   :  { %3595 = vrot.lane.b32.xlu0 %v3579_v43, %s6011_s16  ;;  %3601 = vrot.lane.b32.xlu1 %v7018_v54, %s6011_s16  ;;  %v5813_v43 = vld [vmem:[#allocation4 + $0x48] sm:$0xff] }
 0x5d8   :  { %v3340_v23 = vpop.permute.xlu0 %3339  ;;  %v3250_v47 = vpop.permute.xlu1 %3249 }
 0x5d9   :  { %v3257_v51 = vsel %vm976_vm3, %v7262_v6, %v3250_v47  ;;  %v4076_v19 = vld [vmem:[#allocation3 + $0x188] sm:$0xff] }
 0x5da   :  { %3265 = vst.msk [vmem:[#allocation3 + $0xd0] sm:$0xff] %vm207_vm0, %v3257_v51  ;;  %3599 = vrot.lane.b32.xlu0 %v3581_v13, %s6011_s16  ;;  %3725 = vrot.lane.b32.xlu1 %v7020_v17, %s6032_s27  ;;  %v5623_v20 = vpack.c.bf16 %v4076_v19, %v4075_v61  ;;  %v5815_v51 = vld [vmem:[#allocation4 + $0x90] sm:$0xff]  ;;  %v5816_v19 = vld [vmem:[#allocation4 + $0xe0] sm:$0xff] }
 0x5dc   :  { %5624 = vmatprep.subr.bf16.mxu0 %v5623_v20  ;;  %v3880_v54 = vpop.permute.xlu0 %3879  ;;  %v7404_v50 = vpop.permute.xlu1 %3789 }
 0x5dd   :  { %5626 = vmatpush3.bf16.msra.mxu0 %v5625_v15  ;;  %v5817_v15 = vld [vmem:[#allocation4 + $0xd8] sm:$0xff] }
 0x5de   :  { %3723 = vrot.lane.b32.xlu0 %v7013_v52, %s6032_s27  ;;  %3605 = vrot.lane.b32.xlu1 %v7026_v57, %s6011_s16 }
 0x5e0   :  { %v3280_v6 = vpop.permute.xlu0 %3279  ;;  %v3342_v44 = vpop.permute.xlu1 %3341 }
 0x5e1   :  { %3289 = vst.msk [vmem:[#allocation3 + $0xf0] sm:$0xff] %vm207_vm0, %v3280_v6  ;;  %v3349_v17 = vsel %vm1069_vm4, %v3340_v23, %v3342_v44  ;;  %v4053_v27 = vld [vmem:[#allocation3 + $0xd0] sm:$0xff]  ;;  %v5814_v23 = vld [vmem:[#allocation4 + $0x98] sm:$0xff] }
 0x5e2   :  { %3357 = vst.msk [vmem:[#allocation3 + $0x130] sm:$0xff] %vm207_vm0, %v3349_v17  ;;  %3603 = vrot.lane.b32.xlu0 %v3583_v22, %s6011_s16  ;;  %3701 = vrot.lane.b32.xlu1 %v7036_v18, %s6029_s23 }
 0x5e4   :  { %v3820_v59 = vpop.permute.xlu0 %3819  ;;  %v3882_v58 = vpop.permute.xlu1 %3881 }
 0x5e5   :  { %3829 = vst.msk [vmem:[#allocation3 + $0x350] sm:$0xff] %vm207_vm0, %v3820_v59  ;;  %v3889_v52 = vsel %vm1162_vm5, %v3880_v54, %v3882_v58  ;;  %v5818_v54 = vld [vmem:[#allocation4 + $0x28] sm:$0xff] }
 0x5e6   :  { %3897 = vst.msk [vmem:[#allocation3 + $0x390] sm:$0xff] %vm207_vm0, %v3889_v52  ;;  %3607 = vrot.lane.b32.xlu0 %v3558_v40, %s6011_s16  ;;  %3609 = vrot.lane.b32.xlu1 %v7034_v16, %s6011_s16  ;;  %v4080_v59 = vld [vmem:[#allocation3 + $0x1a8] sm:$0xff]  ;;  %v4061_v52 = vld [vmem:[#allocation3 + $0x110] sm:$0xff] }
 0x5e8   :  { %v3844_v57 = vpop.permute.xlu0 %3843  ;;  %v3306_v14 = vpop.permute.xlu1 %3305  ;;  %v4057_v32 = vld [vmem:[#allocation3 + $0xf0] sm:$0xff] }
 0x5e9   :  { %3853 = vst.msk [vmem:[#allocation3 + $0x370] sm:$0xff] %vm207_vm0, %v3844_v57  ;;  %3314 = vst.msk [vmem:[#allocation3 + $0x118] sm:$0xff] %vm207_vm0, %v3306_v14  ;;  %v4079_v14 = vld [vmem:[#allocation3 + $0x1a0] sm:$0xff]  ;;  %v4065_v62 = vld [vmem:[#allocation3 + $0x130] sm:$0xff] }
 0x5ea   :  { %3727 = vrot.lane.b32.xlu0 %v7028_v4, %s6032_s27  ;;  %3729 = vrot.lane.b32.xlu1 %v7036_v18, %s6032_s27 }
 0x5ec   :  { %v3432_v1 = vpop.permute.xlu0 %3431  ;;  %v3254_v25 = vpop.permute.xlu1 %3253 }
 0x5ed   :  { %v3441_v26 = vsel %vm1162_vm5, %v3432_v1, %v7212_v8  ;;  %v3258_v16 = vsel %vm976_vm3, %v7287_v5, %v3254_v25 }
 0x5ee   :  { %3449 = vst.msk [vmem:[#allocation3 + $0x190] sm:$0xff] %vm207_vm0, %v3441_v26  ;;  %3266 = vst.msk [vmem:[#allocation3 + $0xd8] sm:$0xff] %vm207_vm0, %v3258_v16  ;;  %3989 = vrot.lane.b32.xlu1 %v7054_v53, %s6018_s22  ;;  %3987 = vrot.lane.b32.xlu0 %v7060_v24, %s6018_s22  ;;  %v5631_v26 = vpack.c.bf16 %v4080_v59, %v4079_v14  ;;  %v4064_v16 = vld [vmem:[#allocation3 + $0x128] sm:$0xff]  ;;  %v4139_v59 = vld [vmem:[#allocation3 + $0x380] sm:$0xff] }
 0x5f0   :  { %v3372_v4 = vpop.permute.xlu0 %3371  ;;  %v3282_v18 = vpop.permute.xlu1 %3281  ;;  %v4062_v44 = vld [vmem:[#allocation3 + $0x118] sm:$0xff] }
 0x5f1   :  { %3381 = vst.msk [vmem:[#allocation3 + $0x150] sm:$0xff] %vm207_vm0, %v3372_v4  ;;  %3290 = vst.msk [vmem:[#allocation3 + $0xf8] sm:$0xff] %vm207_vm0, %v3282_v18  ;;  %v5629_v57 = vpack.c.bf16 %v4062_v44, %v4061_v52  ;;  %v4082_v4 = vld [vmem:[#allocation3 + $0x1b8] sm:$0xff]  ;;  %v4063_v18 = vld [vmem:[#allocation3 + $0x120] sm:$0xff] }
 0x5f2   :  { %3993 = vrot.lane.b32.xlu1 %v7066_v55, %s6018_s22  ;;  %3991 = vrot.lane.b32.xlu0 %v7072_v21, %s6018_s22  ;;  %v5635_v28 = vpack.c.bf16 %v4082_v4, %v4081_v60  ;;  %v4140_v44 = vld [vmem:[#allocation3 + $0x388] sm:$0xff]  ;;  %s6034_s22 = smov [#allocation15]  }
 0x5f3   :  { %s4702_s30 = sshll.u32 %s6034_s22, 4  ;;  %s4703_s30 = int_to_ptr.vmem [resolvable:$true] %s4702_s30 }
 0x5f4   :  { %v3396_v8 = vpop.permute.xlu0 %3395  ;;  %v7444_v5 = vpop.permute.xlu1 %3793  ;;  %p5982_p7 = scmp.lt.s32.totalorder %s4703_s30, %s4703_s30 }
 0x5f5   :  { %3405 = vst.msk [vmem:[#allocation3 + $0x170] sm:$0xff] %vm207_vm0, %v3396_v8  ;;  %v4054_v49 = vld [vmem:[#allocation3 + $0xd8] sm:$0xff]  ;;  %v4077_v17 = vld [vmem:[#allocation3 + $0x190] sm:$0xff]  ;;  %v5633_v8 = vpack.c.bf16 %v4064_v16, %v4063_v18 }
 0x5f6   :  { %4013 = vrot.lane.b32.xlu1 %v7054_v53, %s6026_s19  ;;  %4011 = vrot.lane.b32.xlu0 %v7060_v24, %s6026_s19  ;;  %v5611_v7 = vpack.c.bf16 %v4054_v49, %v4053_v27  ;;  %v4039_v53 = vld [vmem:[#allocation3 + $0x60] sm:$0xff]  ;;  %v4141_v16 = vld [vmem:[#allocation3 + $0x390] sm:$0xff] }
 0x5f7   :  { %v5617_v24 = vpack.c.bf16 %v4040_v36, %v4039_v53  ;;  %v4068_v53 = vld [vmem:[#allocation3 + $0x148] sm:$0xff] }
 0x5f8   :  { %v3912_v56 = vpop.permute.xlu0 %3911  ;;  %5612 = vmatprep.subr.bf16.mxu1 %v5611_v7  ;;  %v3822_v30 = vpop.permute.xlu1 %3821  ;;  %v4058_v63 = vld [vmem:[#allocation3 + $0xf8] sm:$0xff] }
 0x5f9   :  { %3921 = vst.msk [vmem:[#allocation3 + $0x3b0] sm:$0xff] %vm207_vm0, %v3912_v56  ;;  %3830 = vst.msk [vmem:[#allocation3 + $0x358] sm:$0xff] %vm207_vm0, %v3822_v30  ;;  %5614 = vmatpush3.bf16.msra.mxu1 %v5613_v0  ;;  %v5619_v35 = vpack.c.bf16 %v4058_v63, %v4057_v32  ;;  %v4084_v0 = vld [vmem:[#allocation3 + $0x1c8] sm:$0xff]  ;;  %v4083_v30 = vld [vmem:[#allocation3 + $0x1c0] sm:$0xff] }
 0x5fa   :  { %5616 = vmatprep.subr.bf16.mxu1 %v5615_v38  ;;  %4017 = vrot.lane.b32.xlu1 %v7066_v55, %s6026_s19  ;;  %v5639_v63 = vpack.c.bf16 %v4084_v0, %v4083_v30  ;;  %v4086_v32 = vld [vmem:[#allocation3 + $0x1d8] sm:$0xff]  ;;  %v5822_v0 = vld [vmem:[#allocation4 + $0xa8] sm:$0xff] }
 0x5fb   :  { %4015 = vrot.lane.b32.xlu0 %v7072_v21, %s6026_s19 }
 0x5fc   :  { %v3936_v33 = vpop.permute.xlu0 %3935  ;;  %v3846_v34 = vpop.permute.xlu1 %3845 }
 0x5fd   :  { %3945 = vst.msk [vmem:[#allocation3 + $0x3d0] sm:$0xff] %vm207_vm0, %v3936_v33  ;;  %3854 = vst.msk [vmem:[#allocation3 + $0x378] sm:$0xff] %vm207_vm0, %v3846_v34  ;;  %5618 = vmatpush3.bf16.msra.mxu1 %v5617_v24  ;;  %v4067_v33 = vld [vmem:[#allocation3 + $0x140] sm:$0xff] }
 0x5fe   :  { %5620 = vmatprep.subr.bf16.mxu1 %v5619_v35  ;;  %v5641_v34 = vpack.c.bf16 %v4068_v53, %v4067_v33  ;;  %v4085_v35 = vld [vmem:[#allocation3 + $0x1d0] sm:$0xff]  ;;  %v5823_v53 = vld [vmem:[#allocation4 + $0xa0] sm:$0xff] }
 0x5ff   :  { %v4093_v33 = vld [vmem:[#allocation3 + $0x210] sm:$0xff] }
 0x600   :  { %v3960_v12 = vpop.permute.xlu0 %3959  ;;  %v3346_v55 = vpop.permute.xlu1 %3345 }
 0x601   :  { %3969 = vst.msk [vmem:[#allocation3 + $0x3f0] sm:$0xff] %vm207_vm0, %v3960_v12  ;;  %5622 = vmatpush3.bf16.msra.mxu1 %v5621_v3  ;;  %v5643_v3 = vpack.c.bf16 %v4086_v32, %v4085_v35 }
 0x604   :  { %v3344_v21 = vpop.permute.xlu0 %3343  ;;  %v3374_v40 = vpop.permute.xlu1 %3373  ;;  %4322 = vmatmul.mubr.f32.vlgmr.msra.gmra.mrb[64].mxu1 %v5811_v41  ;;  %v4092_v41 = vld [vmem:[#allocation3 + $0x208] sm:$0xff] }
 0x605   :  { %v3350_v2 = vsel %vm1069_vm4, %v3344_v21, %v3346_v55  ;;  %3382 = vst.msk [vmem:[#allocation3 + $0x158] sm:$0xff] %vm207_vm0, %v3374_v40  ;;  %4326 = vmatprep.mubr.f32.mxu1 %v5812_v46  ;;  %v4088_v55 = vld [vmem:[#allocation3 + $0x1e8] sm:$0xff]  ;;  %v4087_v40 = vld [vmem:[#allocation3 + $0x1e0] sm:$0xff] }
 0x606   :  { %3358 = vst.msk [vmem:[#allocation3 + $0x138] sm:$0xff] %vm207_vm0, %v3350_v2 }
 0x608   :  { %v3884_v42 = vpop.permute.xlu0 %3883  ;;  %v3398_v45 = vpop.permute.xlu1 %3397  ;;  %4327 = vmatmul.mubr.f32.gmra.mrb[66].mxu1 %v5813_v43 }
 0x609   :  { %3406 = vst.msk [vmem:[#allocation3 + $0x178] sm:$0xff] %vm207_vm0, %v3398_v45  ;;  %4331 = vmatprep.mubr.f32.mxu1 %v5814_v23  ;;  %v4072_v23 = vld [vmem:[#allocation3 + $0x168] sm:$0xff] }
 0x60c   :  { %v3436_v47 = vpop.permute.xlu0 %3435  ;;  %v3886_v31 = vpop.permute.xlu1 %3885  ;;  %4332 = vmatmul.mubr.f32.gmra.mrb[68].mxu1 %v5815_v51  ;;  %v4070_v12 = vld [vmem:[#allocation3 + $0x158] sm:$0xff]  ;;  %v4091_v51 = vld [vmem:[#allocation3 + $0x200] sm:$0xff] }
 0x60d   :  { %v3442_v13 = vsel %vm1162_vm5, %v3436_v47, %v7224_v10  ;;  %v3890_v61 = vsel %vm1162_vm5, %v3884_v42, %v3886_v31  ;;  %4336 = vmatprep.mubr.f32.mxu1 %v5816_v19  ;;  %v4066_v7 = vld [vmem:[#allocation3 + $0x138] sm:$0xff]  ;;  %v5647_v42 = vpack.c.bf16 %v4088_v55, %v4087_v40  ;;  %v4071_v19 = vld [vmem:[#allocation3 + $0x160] sm:$0xff] }
 0x60e   :  { %3450 = vst.msk [vmem:[#allocation3 + $0x198] sm:$0xff] %vm207_vm0, %v3442_v13  ;;  %3898 = vst.msk [vmem:[#allocation3 + $0x398] sm:$0xff] %vm207_vm0, %v3890_v61  ;;  %v5637_v56 = vpack.c.bf16 %v4066_v7, %v4065_v62  ;;  %v4090_v13 = vld [vmem:[#allocation3 + $0x1f8] sm:$0xff]  ;;  %v5657_v61 = vpack.c.bf16 %v4092_v41, %v4091_v51 }
 0x60f   :  { %v4094_v62 = vld [vmem:[#allocation3 + $0x218] sm:$0xff] }
 0x610   :  { %v3914_v20 = vpop.permute.xlu1 %3913  ;;  %v3632_v48 = vpop.permute.xlu0 %3631  ;;  %4337 = vmatmul.mubr.f32.gmra.mrb[70].mxu1 %v5817_v15  ;;  %v5661_v35 = vpack.c.bf16 %v4094_v62, %v4093_v33  ;;  %v5826_v40 = vld [vmem:[#allocation4 + $0x38] sm:$0xff]  ;;  %v4131_v62 = vld [vmem:[#allocation3 + $0x340] sm:$0xff] }
 0x611   :  { %3922 = vst.msk [vmem:[#allocation3 + $0x3b8] sm:$0xff] %vm207_vm0, %v3914_v20  ;;  %3643 = vst.msk [vmem:[#allocation3 + $0x280] sm:$0xff] %vm207_vm0, %v3632_v48  ;;  %4491 = vmatprep.mubr.f32.mxu1 %v5818_v54  ;;  %v5649_v20 = vpack.c.bf16 %v4072_v23, %v4071_v19  ;;  %v4089_v48 = vld [vmem:[#allocation3 + $0x1f0] sm:$0xff] }
 0x612   :  { %v4097_v19 = vld [vmem:[#allocation3 + $0x230] sm:$0xff] }
 0x614   :  { %v3938_v6 = vpop.permute.xlu1 %3937  ;;  %v3656_v10 = vpop.permute.xlu0 %3655 }
 0x615   :  { %3946 = vst.msk [vmem:[#allocation3 + $0x3d8] sm:$0xff] %vm207_vm0, %v3938_v6  ;;  %3667 = vst.msk [vmem:[#allocation3 + $0x2a0] sm:$0xff] %vm207_vm0, %v3656_v10  ;;  %v4078_v22 = vld [vmem:[#allocation3 + $0x198] sm:$0xff]  ;;  %v5651_v6 = vpack.c.bf16 %v4090_v13, %v4089_v48 }
 0x616   :  { %v5627_v58 = vpack.c.bf16 %v4078_v22, %v4077_v17  ;;  %v4074_v10 = vld [vmem:[#allocation3 + $0x178] sm:$0xff]  ;;  %v4073_v17 = vld [vmem:[#allocation3 + $0x170] sm:$0xff] }
 0x617   :  { %v5653_v22 = vpack.c.bf16 %v4074_v10, %v4073_v17 }
 0x618   :  { %5628 = vmatprep.subr.bf16.mxu0 %v5627_v58  ;;  %v3962_v1 = vpop.permute.xlu1 %3961  ;;  %v3688_v25 = vpop.permute.xlu0 %3687  ;;  %v4107_v45 = vld [vmem:[#allocation3 + $0x280] sm:$0xff] }
 0x619   :  { %3970 = vst.msk [vmem:[#allocation3 + $0x3f8] sm:$0xff] %vm207_vm0, %v3962_v1  ;;  %5630 = vmatpush3.bf16.msra.mxu0 %v5629_v57  ;;  %v5687_v57 = vpack.c.bf16 %v4140_v44, %v4139_v59  ;;  %v4142_v1 = vld [vmem:[#allocation3 + $0x398] sm:$0xff] }
 0x61a   :  { %5632 = vmatprep.subr.bf16.mxu0 %v5631_v26  ;;  %v5691_v60 = vpack.c.bf16 %v4142_v1, %v4141_v16  ;;  %v4146_v44 = vld [vmem:[#allocation3 + $0x3b8] sm:$0xff]  ;;  %v4148_v16 = vld [vmem:[#allocation3 + $0x3c8] sm:$0xff] }
 0x61c   :  { %v3748_v27 = vpop.permute.xlu0 %3747  ;;  %v3690_v49 = vpop.permute.xlu1 %3689 }
 0x61d   :  { %3759 = vst.msk [vmem:[#allocation3 + $0x300] sm:$0xff] %vm207_vm0, %v3748_v27  ;;  %v3703_v29 = vsel %vm976_vm3, %v3688_v25, %v3690_v49  ;;  %5634 = vmatpush3.bf16.msra.mxu0 %v5633_v8  ;;  %v5819_v8 = vld [vmem:[#allocation4 + $0x10] sm:$0xff]  ;;  %v5820_v49 = vld [vmem:[#allocation4 + $0x60] sm:$0xff] }
 0x61e   :  { %3711 = vst.msk [vmem:[#allocation3 + $0x2c0] sm:$0xff] %vm207_vm0, %v3703_v29  ;;  %5636 = vmatprep.subr.bf16.mxu0 %v5635_v28  ;;  %v5821_v29 = vld [vmem:[#allocation4 + $0x58] sm:$0xff] }
 0x620   :  { %v3780_v38 = vpop.permute.xlu0 %3779  ;;  %v3634_v36 = vpop.permute.xlu1 %3633 }
 0x621   :  { %v3795_v24 = vsel %vm1069_vm4, %v3780_v38, %v7296_v9  ;;  %3644 = vst.msk [vmem:[#allocation3 + $0x288] sm:$0xff] %vm207_vm0, %v3634_v36  ;;  %5638 = vmatpush3.bf16.msra.mxu0 %v5637_v56  ;;  %v4069_v9 = vld [vmem:[#allocation3 + $0x150] sm:$0xff] }
 0x622   :  { %3803 = vst.msk [vmem:[#allocation3 + $0x320] sm:$0xff] %vm207_vm0, %v3795_v24  ;;  %5640 = vmatprep.subr.bf16.mxu0 %v5639_v63  ;;  %v5645_v21 = vpack.c.bf16 %v4070_v12, %v4069_v9 }
 0x624   :  { %v3692_v37 = vpop.permute.xlu0 %3691  ;;  %v3658_v39 = vpop.permute.xlu1 %3657  ;;  %v4123_v25 = vld [vmem:[#allocation3 + $0x300] sm:$0xff] }
 0x625   :  { %3668 = vst.msk [vmem:[#allocation3 + $0x2a8] sm:$0xff] %vm207_vm0, %v3658_v39  ;;  %5642 = vmatpush3.bf16.msra.mxu0 %v5641_v34  ;;  %v5824_v34 = vld [vmem:[#allocation4 + $0xf0] sm:$0xff] }
 0x626   :  { %5644 = vmatprep.subr.bf16.mxu0 %v5643_v3  ;;  %v4096_v3 = vld [vmem:[#allocation3 + $0x228] sm:$0xff] }
 0x628   :  { %v3784_v2 = vpop.permute.xlu0 %3783  ;;  %v3750_v46 = vpop.permute.xlu1 %3749  ;;  %v4108_v43 = vld [vmem:[#allocation3 + $0x288] sm:$0xff] }
 0x629   :  { %v3796_v47 = vsel %vm1069_vm4, %v3784_v2, %v7335_v11  ;;  %3760 = vst.msk [vmem:[#allocation3 + $0x308] sm:$0xff] %vm207_vm0, %v3750_v46  ;;  %5646 = vmatpush3.bf16.msra.mxu0 %v5645_v21  ;;  %v5655_v31 = vpack.c.bf16 %v4108_v43, %v4107_v45  ;;  %v5825_v21 = vld [vmem:[#allocation4 + $0xe8] sm:$0xff]  ;;  %v4127_v59 = vld [vmem:[#allocation3 + $0x320] sm:$0xff] }
 0x62a   :  { %3804 = vst.msk [vmem:[#allocation3 + $0x328] sm:$0xff] %vm207_vm0, %v3796_v47  ;;  %5648 = vmatprep.subr.bf16.mxu0 %v5647_v42  ;;  %v4098_v42 = vld [vmem:[#allocation3 + $0x238] sm:$0xff]  ;;  %v4144_v45 = vld [vmem:[#allocation3 + $0x3a8] sm:$0xff] }
 0x62b   :  { %5656 = vmatprep.subr.bf16.mxu1 %v5655_v31  ;;  %v5669_v48 = vpack.c.bf16 %v4098_v42, %v4097_v19  ;;  %v4156_v42 = vld [vmem:[#allocation3 + $0x408] sm:$0xff] }
 0x62c   :  { %5658 = vmatpush3.bf16.msra.mxu1 %v5657_v61  ;;  %v3694_v15 = vpop.permute.xlu1 %3693  ;;  %v3636_v54 = vpop.permute.xlu0 %3635  ;;  %v4112_v63 = vld [vmem:[#allocation3 + $0x2a8] sm:$0xff] }
 0x62d   :  { %v3704_v11 = vsel %vm976_vm3, %v3692_v37, %v3694_v15  ;;  %3645 = vst.msk [vmem:[#allocation3 + $0x290] sm:$0xff] %vm207_vm0, %v3636_v54  ;;  %5650 = vmatpush3.bf16.msra.mxu0 %v5649_v20  ;;  %v4111_v37 = vld [vmem:[#allocation3 + $0x2a0] sm:$0xff] }
 0x62e   :  { %3712 = vst.msk [vmem:[#allocation3 + $0x2c8] sm:$0xff] %vm207_vm0, %v3704_v11  ;;  %5652 = vmatprep.subr.bf16.mxu0 %v5651_v6  ;;  %v5663_v39 = vpack.c.bf16 %v4112_v63, %v4111_v37  ;;  %v4143_v20 = vld [vmem:[#allocation3 + $0x3a0] sm:$0xff]  ;;  %v4100_v11 = vld [vmem:[#allocation3 + $0x248] sm:$0xff] }
 0x62f   :  { %v5695_v15 = vpack.c.bf16 %v4144_v45, %v4143_v20  ;;  %v4115_v54 = vld [vmem:[#allocation3 + $0x2c0] sm:$0xff] }
 0x630   :  { %v3660_v58 = vpop.permute.xlu0 %3659  ;;  %v3698_v52 = vpop.permute.xlu1 %3697  ;;  %v4124_v14 = vld [vmem:[#allocation3 + $0x308] sm:$0xff]  ;;  %v4151_v37 = vld [vmem:[#allocation3 + $0x3e0] sm:$0xff] }
 0x631   :  { %3669 = vst.msk [vmem:[#allocation3 + $0x2b0] sm:$0xff] %vm207_vm0, %v3660_v58  ;;  %5654 = vmatpush3.bf16.msra.mxu0 %v5653_v22  ;;  %v5689_v26 = vpack.c.bf16 %v4124_v14, %v4123_v25  ;;  %v4128_v6 = vld [vmem:[#allocation3 + $0x328] sm:$0xff] }
 0x632   :  { %5688 = vmatprep.subr.bf16.mxu0 %v5687_v57  ;;  %v5697_v58 = vpack.c.bf16 %v4128_v6, %v4127_v59  ;;  %v4145_v57 = vld [vmem:[#allocation3 + $0x3b0] sm:$0xff]  ;;  %v4158_v59 = vld [vmem:[#allocation3 + $0x418] sm:$0xff] }
 0x633   :  { %v5699_v1 = vpack.c.bf16 %v4146_v44, %v4145_v57 }
 0x634   :  { %v3696_v4 = vpop.permute.xlu0 %3695  ;;  %v3638_v18 = vpop.permute.xlu1 %3637  ;;  %4407 = vmatmul.mubr.f32.vlgmr.msra.gmra.mrb[64].mxu0 %v5819_v8  ;;  %v4109_v38 = vld [vmem:[#allocation3 + $0x290] sm:$0xff] }
 0x635   :  { %v3705_v27 = vsel %vm976_vm3, %v3696_v4, %v3698_v52  ;;  %3646 = vst.msk [vmem:[#allocation3 + $0x298] sm:$0xff] %vm207_vm0, %v3638_v18  ;;  %5690 = vmatpush3.bf16.msra.mxu0 %v5689_v26  ;;  %4411 = vmatprep.mubr.f32.mxu0 %v5820_v49  ;;  %v4116_v51 = vld [vmem:[#allocation3 + $0x2c8] sm:$0xff]  ;;  %v4099_v52 = vld [vmem:[#allocation3 + $0x240] sm:$0xff] }
 0x636   :  { %3713 = vst.msk [vmem:[#allocation3 + $0x2d0] sm:$0xff] %vm207_vm0, %v3705_v27  ;;  %5692 = vmatprep.subr.bf16.mxu0 %v5691_v60  ;;  %v5671_v10 = vpack.c.bf16 %v4116_v51, %v4115_v54  ;;  %v5673_v14 = vpack.c.bf16 %v4100_v11, %v4099_v52  ;;  %v4147_v27 = vld [vmem:[#allocation3 + $0x3c0] sm:$0xff] }
 0x637   :  { %v5703_v49 = vpack.c.bf16 %v4148_v16, %v4147_v27  ;;  %v5829_v27 = vld [vmem:[#allocation4 + $0x78] sm:$0xff] }
 0x638   :  { %v3752_v28 = vpop.permute.xlu0 %3751  ;;  %v3662_v7 = vpop.permute.xlu1 %3661  ;;  %4412 = vmatmul.mubr.f32.gmra.mrb[66].mxu0 %v5821_v29  ;;  %v4113_v2 = vld [vmem:[#allocation3 + $0x2b0] sm:$0xff] }
 0x639   :  { %3761 = vst.msk [vmem:[#allocation3 + $0x310] sm:$0xff] %vm207_vm0, %v3752_v28  ;;  %3670 = vst.msk [vmem:[#allocation3 + $0x2b8] sm:$0xff] %vm207_vm0, %v3662_v7  ;;  %4416 = vmatprep.mubr.f32.mxu0 %v5822_v0  ;;  %v4132_v28 = vld [vmem:[#allocation3 + $0x348] sm:$0xff]  ;;  %v4150_v0 = vld [vmem:[#allocation3 + $0x3d8] sm:$0xff] }
 0x63c   :  { %v3788_v56 = vpop.permute.xlu0 %3787  ;;  %v3754_v30 = vpop.permute.xlu1 %3753  ;;  %v4110_v36 = vld [vmem:[#allocation3 + $0x298] sm:$0xff]  ;;  %4417 = vmatmul.mubr.f32.gmra.mrb[68].mxu0 %v5823_v53 }
 0x63d   :  { %v3797_v24 = vsel %vm1069_vm4, %v3788_v56, %v7404_v50  ;;  %3762 = vst.msk [vmem:[#allocation3 + $0x318] sm:$0xff] %vm207_vm0, %v3754_v30  ;;  %v5659_v32 = vpack.c.bf16 %v4110_v36, %v4109_v38  ;;  %4421 = vmatprep.mubr.f32.mxu0 %v5824_v34  ;;  %v4095_v50 = vld [vmem:[#allocation3 + $0x220] sm:$0xff]  ;;  %v5705_v56 = vpack.c.bf16 %v4132_v28, %v4131_v62  ;;  %v4149_v30 = vld [vmem:[#allocation3 + $0x3d0] sm:$0xff]  ;;  %v4134_v36 = vld [vmem:[#allocation3 + $0x358] sm:$0xff] }
 0x63e   :  { %3805 = vst.msk [vmem:[#allocation3 + $0x330] sm:$0xff] %vm207_vm0, %v3797_v24  ;;  %v5665_v41 = vpack.c.bf16 %v4096_v3, %v4095_v50  ;;  %v5707_v38 = vpack.c.bf16 %v4150_v0, %v4149_v30  ;;  %v4152_v24 = vld [vmem:[#allocation3 + $0x3e8] sm:$0xff]  ;;  %v4133_v34 = vld [vmem:[#allocation3 + $0x350] sm:$0xff]  ;;  %v5832_v30 = vld [vmem:[#allocation4 + $0x20] sm:$0xff] }
 0x63f   :  { %5660 = vmatprep.subr.bf16.mxu1 %v5659_v32  ;;  %v4136_v3 = vld [vmem:[#allocation3 + $0x368] sm:$0xff]  ;;  %v4117_v51 = vld [vmem:[#allocation3 + $0x2d0] sm:$0xff] }
 0x640   :  { %v7499_v12 = vpop.permute.xlu0 %3699  ;;  %5662 = vmatpush3.bf16.msra.mxu1 %v5661_v35  ;;  %v3570_v55 = vpop.permute.xlu1 %3569  ;;  %v4114_v9 = vld [vmem:[#allocation3 + $0x2b8] sm:$0xff]  ;;  %4422 = vmatmul.mubr.f32.gmra.mrb[70].mxu0 %v5825_v21  ;;  %v4125_v47 = vld [vmem:[#allocation3 + $0x310] sm:$0xff]  ;;  %v5709_v35 = vpack.c.bf16 %v4134_v36, %v4133_v34  ;;  %v5830_v0 = vld [vmem:[#allocation4 + $0xc8] sm:$0xff] }
 0x641   :  { %3578 = vst.msk [vmem:[#allocation3 + $0x258] sm:$0xff] %vm207_vm0, %v3570_v55  ;;  %5664 = vmatprep.subr.bf16.mxu1 %v5663_v39  ;;  %4576 = vmatprep.mubr.f32.mxu0 %v5826_v40  ;;  %v5667_v46 = vpack.c.bf16 %v4114_v9, %v4113_v2  ;;  %v5711_v39 = vpack.c.bf16 %v4152_v24, %v4151_v37  ;;  %v4154_v21 = vld [vmem:[#allocation3 + $0x3f8] sm:$0xff]  ;;  %v4135_v40 = vld [vmem:[#allocation3 + $0x360] sm:$0xff]  ;;  %v5833_v24 = vld [vmem:[#allocation4 + $0x70] sm:$0xff] }
 0x642   :  { %v5835_v34 = vld [vmem:[#allocation4 + $0x108] sm:$0xff] }
 0x644   :  { %5666 = vmatpush3.bf16.msra.mxu1 %v5665_v41  ;;  %v3792_v43 = vpop.permute.xlu0 %3791  ;;  %v3598_v23 = vpop.permute.xlu1 %3597  ;;  %v4126_v31 = vld [vmem:[#allocation3 + $0x318] sm:$0xff]  ;;  %v4153_v41 = vld [vmem:[#allocation3 + $0x3f0] sm:$0xff] }
 0x645   :  { %v3798_v13 = vsel %vm1069_vm4, %v3792_v43, %v7444_v5  ;;  %5668 = vmatprep.subr.bf16.mxu1 %v5667_v46  ;;  %v5693_v61 = vpack.c.bf16 %v4126_v31, %v4125_v47  ;;  %v4129_v18 = vld [vmem:[#allocation3 + $0x330] sm:$0xff]  ;;  %v5715_v2 = vpack.c.bf16 %v4154_v21, %v4153_v41  ;;  %v4138_v46 = vld [vmem:[#allocation3 + $0x378] sm:$0xff]  ;;  %v4155_v31 = vld [vmem:[#allocation3 + $0x400] sm:$0xff] }
 0x646   :  { %3806 = vst.msk [vmem:[#allocation3 + $0x338] sm:$0xff] %vm207_vm0, %v3798_v13  ;;  %v5719_v54 = vpack.c.bf16 %v4156_v42, %v4155_v31  ;;  %v5839_v21 = vld [vmem:[#allocation4 + $0xb0] sm:$0xff] }
 0x647   :  { %5694 = vmatpush3.bf16.msra.mxu0 %v5693_v61  ;;  %v5843_v42 = vld [vmem:[#allocation4 + $0xd0] sm:$0xff] }
 0x648   :  { %5670 = vmatpush3.bf16.msra.mxu1 %v5669_v48  ;;  %v3596_v17 = vpop.permute.xlu0 %3595  ;;  %5696 = vmatprep.subr.bf16.mxu0 %v5695_v15  ;;  %v3602_v22 = vpop.permute.xlu1 %3601  ;;  %v4102_v47 = vld [vmem:[#allocation3 + $0x258] sm:$0xff]  ;;  %v4101_v48 = vld [vmem:[#allocation3 + $0x250] sm:$0xff] }
 0x649   :  { %v3611_v5 = vsel %vm883_vm1, %v3596_v17, %v3598_v23  ;;  %5672 = vmatprep.subr.bf16.mxu1 %v5671_v10  ;;  %v4137_v23 = vld [vmem:[#allocation3 + $0x370] sm:$0xff]  ;;  %v5677_v15 = vpack.c.bf16 %v4102_v47, %v4101_v48 }
 0x64a   :  { %3619 = vst.msk [vmem:[#allocation3 + $0x260] sm:$0xff] %vm207_vm0, %v3611_v5  ;;  %v5717_v20 = vpack.c.bf16 %v4138_v46, %v4137_v23  ;;  %v5842_v46 = vld [vmem:[#allocation4 + $0x88] sm:$0xff] }
 0x64b   :  { %5698 = vmatpush3.bf16.msra.mxu0 %v5697_v58  ;;  %v5827_v58 = vld [vmem:[#allocation4 + $0x30] sm:$0xff] }
 0x64c   :  { %5674 = vmatpush3.bf16.msra.mxu1 %v5673_v14  ;;  %v3600_v25 = vpop.permute.xlu0 %3599  ;;  %5700 = vmatprep.subr.bf16.mxu0 %v5699_v1  ;;  %v3726_v26 = vpop.permute.xlu1 %3725 }
 0x64d   :  { %v3612_v4 = vsel %vm883_vm1, %v3600_v25, %v3602_v22  ;;  %3736 = vst.msk [vmem:[#allocation3 + $0x2e8] sm:$0xff] %vm207_vm0, %v3726_v26  ;;  %v4130_v8 = vld [vmem:[#allocation3 + $0x338] sm:$0xff]  ;;  %v4157_v22 = vld [vmem:[#allocation3 + $0x410] sm:$0xff] }
 0x64e   :  { %3620 = vst.msk [vmem:[#allocation3 + $0x268] sm:$0xff] %vm207_vm0, %v3612_v4  ;;  %v5701_v60 = vpack.c.bf16 %v4130_v8, %v4129_v18  ;;  %v5723_v57 = vpack.c.bf16 %v4158_v59, %v4157_v22  ;;  %v5828_v4 = vld [vmem:[#allocation4 + $0x80] sm:$0xff] }
 0x650   :  { %v3724_v7 = vpop.permute.xlu0 %3723  ;;  %5702 = vmatpush3.bf16.msra.mxu0 %v5701_v60  ;;  %v3606_v29 = vpop.permute.xlu1 %3605 }
 0x651   :  { %3735 = vst.msk [vmem:[#allocation3 + $0x2e0] sm:$0xff] %vm207_vm0, %v3724_v7  ;;  %5704 = vmatprep.subr.bf16.mxu0 %v5703_v49  ;;  %v4103_v5 = vld [vmem:[#allocation3 + $0x260] sm:$0xff] }
 0x654   :  { %v3604_v63 = vpop.permute.xlu0 %3603  ;;  %5706 = vmatpush3.bf16.msra.mxu0 %v5705_v56  ;;  %v3702_v53 = vpop.permute.xlu1 %3701  ;;  %v4120_v6 = vld [vmem:[#allocation3 + $0x2e8] sm:$0xff]  ;;  %v5831_v56 = vld [vmem:[#allocation4 + $0xc0] sm:$0xff] }
 0x655   :  { %v3613_v32 = vsel %vm883_vm1, %v3604_v63, %v3606_v29  ;;  %v3706_v33 = vsel %vm976_vm3, %v7499_v12, %v3702_v53  ;;  %5708 = vmatprep.subr.bf16.mxu0 %v5707_v38  ;;  %v5713_v12 = vpack.c.bf16 %v4136_v3, %v4135_v40  ;;  %v4104_v17 = vld [vmem:[#allocation3 + $0x268] sm:$0xff]  ;;  %v5837_v3 = vld [vmem:[#allocation4 + $0xb8] sm:$0xff]  ;;  %v5840_v40 = vld [vmem:[#allocation4 + $0x100] sm:$0xff] }
 0x656   :  { %3621 = vst.msk [vmem:[#allocation3 + $0x270] sm:$0xff] %vm207_vm0, %v3613_v32  ;;  %3714 = vst.msk [vmem:[#allocation3 + $0x2d8] sm:$0xff] %vm207_vm0, %v3706_v33  ;;  %v5681_v52 = vpack.c.bf16 %v4104_v17, %v4103_v5  ;;  %v5834_v33 = vld [vmem:[#allocation4 + $0x110] sm:$0xff] }
 0x658   :  { %v3608_v55 = vpop.permute.xlu0 %3607  ;;  %5710 = vmatpush3.bf16.msra.mxu0 %v5709_v35  ;;  %v3610_v9 = vpop.permute.xlu1 %3609  ;;  %v4119_v61 = vld [vmem:[#allocation3 + $0x2e0] sm:$0xff]  ;;  %v5836_v35 = vld [vmem:[#allocation4 + $0x68] sm:$0xff] }
 0x659   :  { %v3614_v50 = vsel %vm883_vm1, %v3608_v55, %v3610_v9  ;;  %5712 = vmatprep.subr.bf16.mxu0 %v5711_v39  ;;  %v5679_v44 = vpack.c.bf16 %v4120_v6, %v4119_v61  ;;  %v5838_v9 = vld [vmem:[#allocation4 + $0x40] sm:$0xff] }
 0x65a   :  { %3622 = vst.msk [vmem:[#allocation3 + $0x278] sm:$0xff] %vm207_vm0, %v3614_v50 }
 0x65c   :  { %v3728_v45 = vpop.permute.xlu0 %3727  ;;  %5714 = vmatpush3.bf16.msra.mxu0 %v5713_v12  ;;  %v3730_v43 = vpop.permute.xlu1 %3729 }
 0x65d   :  { %3737 = vst.msk [vmem:[#allocation3 + $0x2f0] sm:$0xff] %vm207_vm0, %v3728_v45  ;;  %3738 = vst.msk [vmem:[#allocation3 + $0x2f8] sm:$0xff] %vm207_vm0, %v3730_v43  ;;  %5716 = vmatprep.subr.bf16.mxu0 %v5715_v2  ;;  %v4118_v13 = vld [vmem:[#allocation3 + $0x2d8] sm:$0xff]  ;;  %v4105_v8 = vld [vmem:[#allocation3 + $0x270] sm:$0xff] }
 0x65e   :  { %v5675_v19 = vpack.c.bf16 %v4118_v13, %v4117_v51  ;;  %v5841_v2 = vld [vmem:[#allocation4 + $0xf8] sm:$0xff] }
 0x65f   :  { %v5844_v45 = vld [vmem:[#allocation4 + $0x118] sm:$0xff] }
 0x660   :  { %5676 = vmatprep.subr.bf16.mxu1 %v5675_v19  ;;  %5718 = vmatpush3.bf16.msra.mxu0 %v5717_v20  ;;  %v3990_v10 = vpop.permute.xlu1 %3989  ;;  %v3988_v11 = vpop.permute.xlu0 %3987 }
 0x661   :  { %4000 = vst.msk [vmem:[#allocation3 + $0x428] sm:$0xff] %vm207_vm0, %v3990_v10  ;;  %3999 = vst.msk [vmem:[#allocation3 + $0x420] sm:$0xff] %vm207_vm0, %v3988_v11  ;;  %5678 = vmatpush3.bf16.msra.mxu1 %v5677_v15  ;;  %5720 = vmatprep.subr.bf16.mxu0 %v5719_v54  ;;  %v4106_v16 = vld [vmem:[#allocation3 + $0x278] sm:$0xff] }
 0x662   :  { %5680 = vmatprep.subr.bf16.mxu1 %v5679_v44  ;;  %v5685_v60 = vpack.c.bf16 %v4106_v16, %v4105_v8 }
 0x663   :  { %4577 = vmatmul.mubr.f32.vlgmr.msra.gmra.mrb[72].mxu0 %v5827_v58 }
 0x664   :  { %5722 = vmatpush3.bf16.msra.mxu0 %v5719_v54  ;;  %v3994_v14 = vpop.permute.xlu1 %3993  ;;  %v3992_v1 = vpop.permute.xlu0 %3991  ;;  %v4121_v25 = vld [vmem:[#allocation3 + $0x2f0] sm:$0xff]  ;;  %v4122_v26 = vld [vmem:[#allocation3 + $0x2f8] sm:$0xff]  ;;  %4581 = vmatprep.mubr.f32.mxu0 %v5828_v4 }
 0x665   :  { %4002 = vst.msk [vmem:[#allocation3 + $0x438] sm:$0xff] %vm207_vm0, %v3994_v14  ;;  %4001 = vst.msk [vmem:[#allocation3 + $0x430] sm:$0xff] %vm207_vm0, %v3992_v1  ;;  %5682 = vmatpush3.bf16.msra.mxu1 %v5681_v52  ;;  %5724 = vmatprep.subr.bf16.mxu0 %v5723_v57  ;;  %v5683_v18 = vpack.c.bf16 %v4122_v26, %v4121_v25 }
 0x667   :  { %5684 = vmatprep.subr.bf16.mxu1 %v5683_v18  ;;  %4582 = vmatmul.mubr.f32.gmra.mrb[74].mxu0 %v5829_v27 }
 0x668   :  { %v4014_v49 = vpop.permute.xlu1 %4013  ;;  %v4012_v28 = vpop.permute.xlu0 %4011  ;;  %5726 = vmatpush3.bf16.msra.mxu0 %v5723_v57  ;;  %v4159_v7 = vld [vmem:[#allocation3 + $0x420] sm:$0xff]  ;;  %v4160_v29 = vld [vmem:[#allocation3 + $0x428] sm:$0xff]  ;;  %4586 = vmatprep.mubr.f32.mxu0 %v5830_v0 }
 0x669   :  { %4024 = vst.msk [vmem:[#allocation3 + $0x448] sm:$0xff] %vm207_vm0, %v4014_v49  ;;  %4023 = vst.msk [vmem:[#allocation3 + $0x440] sm:$0xff] %vm207_vm0, %v4012_v28  ;;  %5686 = vmatpush3.bf16.msra.mxu1 %v5685_v60  ;;  %v5727_v62 = vpack.c.bf16 %v4160_v29, %v4159_v7 }
 0x66b   :  { %5728 = vmatprep.subr.bf16.mxu0 %v5727_v62  ;;  %4587 = vmatmul.mubr.f32.gmra.mrb[76].mxu0 %v5831_v56 }
 0x66c   :  { %4492 = vmatmul.mubr.f32.vlgmr.msra.gmra.mrb[72].mxu1 %v5832_v30  ;;  %v4018_v38 = vpop.permute.xlu1 %4017  ;;  %5730 = vmatpush3.bf16.msra.mxu0 %v5727_v62  ;;  %v4161_v36 = vld [vmem:[#allocation3 + $0x430] sm:$0xff]  ;;  %v4162_v63 = vld [vmem:[#allocation3 + $0x438] sm:$0xff] }
 0x66d   :  { %4026 = vst.msk [vmem:[#allocation3 + $0x458] sm:$0xff] %vm207_vm0, %v4018_v38  ;;  %v4016_v53 = vpop.permute.xlu0 %4015  ;;  %4496 = vmatprep.mubr.f32.mxu1 %v5833_v24  ;;  %v5731_v32 = vpack.c.bf16 %v4162_v63, %v4161_v36  ;;  %4591 = vmatprep.mubr.f32.mxu0 %v5834_v33 }
 0x66e   :  { %4025 = vst.msk [vmem:[#allocation3 + $0x450] sm:$0xff] %vm207_vm0, %v4016_v53 }
 0x66f   :  { %5732 = vmatprep.subr.bf16.mxu0 %v5731_v32  ;;  %4592 = vmatmul.mubr.f32.gmra.mrb[78].mxu0 %v5835_v34 }
 0x670   :  { %4497 = vmatmul.mubr.f32.gmra.mrb[74].mxu1 %v5836_v35  ;;  %5734 = vmatpush3.bf16.msra.mxu0 %v5731_v32  ;;  %v4163_v37 = vld [vmem:[#allocation3 + $0x440] sm:$0xff]  ;;  %v4164_v39 = vld [vmem:[#allocation3 + $0x448] sm:$0xff] }
 0x671   :  { %4501 = vmatprep.mubr.f32.mxu1 %v5837_v3  ;;  %v5735_v55 = vpack.c.bf16 %v4164_v39, %v4163_v37  ;;  %5321 = vmatprep.mubr.msk.f32.mxu0 %vm1981_vm6, %v5838_v9 }
 0x673   :  { %5736 = vmatprep.subr.bf16.mxu0 %v5735_v55 }
 0x674   :  { %4502 = vmatmul.mubr.f32.gmra.mrb[76].mxu1 %v5839_v21  ;;  %5738 = vmatpush3.bf16.msra.mxu0 %v5735_v55  ;;  %v4166_v50 = vld [vmem:[#allocation3 + $0x458] sm:$0xff] }
 0x675   :  { %4506 = vmatprep.mubr.f32.mxu1 %v5840_v40  ;;  %v4165_v12 = vld [vmem:[#allocation3 + $0x450] sm:$0xff] }
 0x676   :  { %v5739_v41 = vpack.c.bf16 %v4166_v50, %v4165_v12 }
 0x678   :  { %5740 = vmatprep.subr.bf16.mxu0 %v5739_v41  ;;  %4507 = vmatmul.mubr.f32.gmra.mrb[78].mxu1 %v5841_v2  ;;  %v4782_v2 = vld [vmem:[%s7561_s7] ss:$0 sm:$0xff]  ;;  %s5977_s7 = scalar_lea.vmem %s4703_s30, 512 }
 0x679   :  { %5742 = vmatpush3.bf16.msra.mxu0 %v5739_v41  ;;  %p5978_p6 = scmp.ne.s32.totalorder %s4703_s30, %s5977_s7  ;;  %p5983_p8 = scmp.lt.s32.totalorder %s5977_s7, %s5977_s7 }
 0x67b   :  { %p5984_p9 = por %p5983_p8, %p5982_p7 }
 0x67c   :  { %5322 = vmatmul.mubr.msk.f32.vlgmr.msra.gmra.mrb[60].mxu0 %vm1981_vm6, %v5842_v46 }
 0x67d   :  { %5324 = vmatprep.mubr.msk.f32.mxu0 %vm1981_vm6, %v5843_v42  ;;  %p5985_p10 = pnand %p5984_p9, %p5978_p6 }
 0x680   :  { %5325 = vmatmul.mubr.msk.f32.gmra.mrb[62].mxu0 %vm1981_vm6, %v5844_v45 }
 0x6d7   :  { %v5043_v43 = vpop.f32.mrb[64].mxu1 }
 0x6d8   :  { %v5044_v23 = vpop.f32.mrb[65].mxu1 }
 0x6d9   :  { %v5045_v47 = vadd.f32 %v5044_v23, %v5043_v43 }
 0x6db   :  { %v5046_v31 = vpop.f32.mrb[66].mxu1 }
 0x6dc   :  { %v5047_v51 = vpop.f32.mrb[67].mxu1 }
 0x6dd   :  { %v5048_v13 = vadd.f32 %v5047_v51, %v5046_v31 }
 0x6df   :  { %v5049_v61 = vpop.f32.mrb[68].mxu1 }
 0x6e0   :  { %v5050_v19 = vpop.f32.mrb[69].mxu1 }
 0x6e1   :  { %v5051_v20 = vadd.f32 %v5050_v19, %v5049_v61 }
 0x6e3   :  { %v5052_v48 = vpop.f32.mrb[70].mxu1 }
 0x6e4   :  { %v5053_v15 = vpop.f32.mrb[71].mxu1 }
 0x6e5   :  { %v5054_v54 = vadd.f32 %v5053_v15, %v5052_v48 }
 0x707   :  { %v5087_v6 = vpop.f32.mrb[64].mxu0 }
 0x708   :  { %v5088_v10 = vpop.f32.mrb[65].mxu0 }
 0x709   :  { %v5089_v11 = vadd.f32 %v5088_v10, %v5087_v6 }
 0x70b   :  { %v5763_v44 = vadd.f32 %v5089_v11, %v5045_v47  ;;  %v5090_v17 = vpop.f32.mrb[66].mxu0 }
 0x70c   :  { %v5091_v22 = vpop.f32.mrb[67].mxu0 }
 0x70d   :  { %v5092_v59 = vadd.f32 %v5091_v22, %v5090_v17 }
 0x70f   :  { %v5759_v5 = vadd.f32 %v5092_v59, %v5048_v13  ;;  %v5093_v58 = vpop.f32.mrb[68].mxu0 }
 0x710   :  { %v5094_v52 = vpop.f32.mrb[69].mxu0 }
 0x711   :  { %v5095_v57 = vadd.f32 %v5094_v52, %v5093_v58 }
 0x713   :  { %v5771_v14 = vadd.f32 %v5095_v57, %v5051_v20  ;;  %v5096_v1 = vpop.f32.mrb[70].mxu0 }
 0x714   :  { %v5097_v25 = vpop.f32.mrb[71].mxu0 }
 0x715   :  { %v5098_v26 = vadd.f32 %v5097_v25, %v5096_v1 }
 0x717   :  { %v5767_v16 = vadd.f32 %v5098_v26, %v5054_v54 }
 0x736   :  { %v5175_v4 = vpop.f32.mrb[72].mxu0 }
 0x737   :  { %v5176_v18 = vpop.f32.mrb[73].mxu0 }
 0x738   :  { %v5177_v8 = vadd.f32 %v5176_v18, %v5175_v4 }
 0x73a   :  { %v5178_v60 = vpop.f32.mrb[74].mxu0 }
 0x73b   :  { %v5179_v27 = vpop.f32.mrb[75].mxu0 }
 0x73c   :  { %v5180_v49 = vadd.f32 %v5179_v27, %v5178_v60 }
 0x73e   :  { %v5181_v28 = vpop.f32.mrb[76].mxu0 }
 0x73f   :  { %v5131_v7 = vpop.f32.mrb[72].mxu1  ;;  %v5182_v29 = vpop.f32.mrb[77].mxu0 }
 0x740   :  { %v5132_v0 = vpop.f32.mrb[73].mxu1  ;;  %v5183_v62 = vadd.f32 %v5182_v29, %v5181_v28 }
 0x741   :  { %v5133_v56 = vadd.f32 %v5132_v0, %v5131_v7 }
 0x742   :  { %v5184_v30 = vpop.f32.mrb[78].mxu0 }
 0x743   :  { %v5764_v38 = vadd.f32 %v5763_v44, %v5133_v56  ;;  %v5134_v36 = vpop.f32.mrb[74].mxu1  ;;  %v5185_v63 = vpop.f32.mrb[79].mxu0 }
 0x744   :  { %v5135_v53 = vpop.f32.mrb[75].mxu1  ;;  %v5186_v24 = vadd.f32 %v5185_v63, %v5184_v30 }
 0x745   :  { %v5136_v32 = vadd.f32 %v5135_v53, %v5134_v36  ;;  %v5765_v33 = vadd.f32 %v5764_v38, %v5177_v8 }
 0x747   :  { %v5760_v34 = vadd.f32 %v5759_v5, %v5136_v32  ;;  %v5137_v35 = vpop.f32.mrb[76].mxu1 }
 0x748   :  { %v5138_v37 = vpop.f32.mrb[77].mxu1 }
 0x749   :  { %v5139_v39 = vadd.f32 %v5138_v37, %v5137_v35  ;;  %v5761_v3 = vadd.f32 %v5760_v34, %v5180_v49 }
 0x74b   :  { %v5772_v55 = vadd.f32 %v5771_v14, %v5139_v39  ;;  %v5140_v9 = vpop.f32.mrb[78].mxu1 }
 0x74c   :  { %v5141_v21 = vpop.f32.mrb[79].mxu1 }
 0x74d   :  { %v5142_v50 = vadd.f32 %v5141_v21, %v5140_v9  ;;  %v5773_v40 = vadd.f32 %v5772_v55, %v5183_v62 }
 0x74f   :  { %v5768_v12 = vadd.f32 %v5767_v16, %v5142_v50  ;;  %v5323_v41 = vpop.f32.mrb[60].mxu0 }
 0x750   :  { %v5762_v46 = vadd.f32 %v5761_v3, %v5323_v41  ;;  %v4663_v42 = vpop.f32.mrb[61].mxu0 }
 0x751   :  { %v5766_v45 = vadd.f32 %v5765_v33, %v4663_v42  ;;  %v5769_v43 = vadd.f32 %v5768_v12, %v5186_v24 }
 0x752   :  { %v4690_v23 = vadd.f32 %v5762_v46, %v4782_v2 }
 0x753   :  { %v4689_v47 = vadd.f32 %v5766_v45, %v4782_v2  ;;  %v5326_v31 = vpop.f32.mrb[62].mxu0 }
 0x754   :  { %4694 = vst.msk [vmem:[#allocation15 + $0x8] sm:$0xff] %vm207_vm0, %v4690_v23  ;;  %v5770_v51 = vadd.f32 %v5769_v43, %v5326_v31  ;;  %v4673_v13 = vpop.f32.mrb[63].mxu0 }
 0x755   :  { %4693 = vst.msk [vmem:[#allocation15] sm:$0xff] %vm207_vm0, %v4689_v47  ;;  %v5774_v61 = vadd.f32 %v5773_v40, %v4673_v13 }
 0x756   :  { %v4692_v19 = vadd.f32 %v5770_v51, %v4782_v2 }
 0x757   :  { %v4691_v20 = vadd.f32 %v5774_v61, %v4782_v2 }
 0x758   :  { %4696 = vst.msk [vmem:[#allocation15 + $0x18] sm:$0xff] %vm207_vm0, %v4692_v19 }
 0x759   :  { %4695 = vst.msk [vmem:[#allocation15 + $0x10] sm:$0xff] %vm207_vm0, %v4691_v20 }
 0x75a   :  { %5988 = shalt.err (!%p5985_p10)
}
 0x75b   :  { %s5989_s9 = scalar_lea.hbm %s7562_s8, 512 }
 0x75c   :  { %p5990_p11 = scmp.ne.s32.totalorder %s7562_s8, %s5989_s9  ;;  %p5993_p12 = scmp.lt.u32.totalorder %s5989_s9, %s7562_s8 }
 0x75e   :  { %p5995_p13 = pnand %p5993_p12, %p5990_p11 }
 0x760   :  { %5998 = shalt.err (!%p5995_p13)
}
 0x761   :  { %4708 = dma.vmem_to_hbm [thread:$0]  %s4703_s30, 512, %s7562_s8, [#allocation6], %s6010_s15, %s6010_s15, %s6011_s16  }
 0x762   :  { %6007 = dma.done.wait [#allocation6], 512  }
 0x763   :  { %6008 = vsyncadd [#allocation6], 4294966784 }
 0x764   :  { %4712 = vsyncpa [#allocation5], 1 }
 0x765   :  { %4713 = vsyncpa [#allocation8], 1 }
 0x766   :  { %4714 = vsyncpa [#allocation11], 1 }
 0x767   :  { %4715 = vsyncpa [#allocation14], 1 }
 0x768   :  { %4716 = vsyncpa [#allocation6], 1 }

</bundles_post_ra>
